<compile_context>
chip_gen: v7x
topology: tpu7x:2x2x1
jax: 0.10.0
libtpu: 0.0.40
codegen_flags: <defaults>
</compile_context>

<pallas_src>
import numpy as np
import jax
import jax.numpy as jnp
from jax.experimental import pallas as pl
from jax.experimental.pallas import tpu as pltpu

STATE_DIM = 246   # Conv stack: 246 -> 60 -> 14 -> 6 -> 4 -> 2, flatten = 64*2 = 128
ACT_DIM = 2
IN_PAD = 256      # 246 padded to a lane-dense width
OUT_PAD = 128     # fc_mu output (2) padded to a lane-dense width

# (C_in, C_out, kernel, stride) for conv1..conv5
CONV_CFG = [
    (1, 24, 10, 4),
    (24, 36, 8, 4),
    (36, 48, 4, 2),
    (48, 64, 3, 1),
    (64, 64, 3, 1),
]


def _round_up(n, m):
    return ((n + m - 1) // m) * m


def conv_to_toeplitz(W, b, L_in, stride, rows_pad):
    """Conv1d(valid, stride) -> padded (rows_pad, cols_pad) matmul matrix.

    Flatten layout is row-major NCL (index = c*L + l), identical to
    torch.flatten(x, 1). Rows beyond C_in*L_in and cols beyond C_out*L_out
    are zero padding."""
    C_out, C_in, K = W.shape
    L_out = (L_in - K) // stride + 1
    cols = C_out * L_out
    cols_pad = _round_up(cols, 128)
    assert rows_pad >= C_in * L_in
    M = np.zeros((rows_pad, cols_pad), np.float32)
    Wn = np.asarray(W, np.float32)
    for co in range(C_out):
        for ci in range(C_in):
            for k in range(K):
                for t in range(L_out):
                    M[ci * L_in + t * stride + k, co * L_out + t] = Wn[co, ci, k]
    bflat = np.zeros((1, cols_pad), np.float32)
    bflat[0, :cols] = np.repeat(np.asarray(b, np.float32), L_out)
    return M, bflat, L_out, cols_pad


def _pad_fc(wT, b, rows_pad, cols_pad):
    fin, fout = wT.shape
    M = np.zeros((rows_pad, cols_pad), np.float32)
    M[:fin, :fout] = np.asarray(wT, np.float32)
    bb = np.zeros((1, cols_pad), np.float32)
    bb[0, :fout] = np.asarray(b, np.float32)
    return M, bb


def critic_kernel(x_ref, a_ref,
                  m1, c1, m2, c2, m3, c3, m4, c4, m5, c5,
                  w1x, w1a, b1, w2, b2, w3, b3, wm, bm,
                  o_ref):
    f32 = jnp.float32
    bf16 = jnp.bfloat16
    h = x_ref[...]                                              # (TB, 256) f32
    # conv1..conv5 as lane-dense block-Toeplitz matmuls + ReLU (bf16 in, f32 acc)
    for m, c in ((m1, c1), (m2, c2), (m3, c3), (m4, c4), (m5, c5)):
        h = jnp.maximum(
            jnp.dot(h.astype(bf16), m[...], preferred_element_type=f32) + c[...],
            0.0)
    # fc1: conv features via MXU (K=128); the 2-wide action term on the VPU.
    act_term = (a_ref[:, 0:1] * w1a[0:1, :]) + (a_ref[:, 1:2] * w1a[1:2, :])
    h = jnp.maximum(
        jnp.dot(h.astype(bf16), w1x[...], preferred_element_type=f32)
        + act_term + b1[...], 0.0)
    h = jnp.maximum(jnp.dot(h.astype(bf16), w2[...], preferred_element_type=f32)
                    + b2[...], 0.0)
    h = jnp.maximum(jnp.dot(h.astype(bf16), w3[...], preferred_element_type=f32)
                    + b3[...], 0.0)
    o_ref[...] = jnp.dot(h.astype(bf16), wm[...], preferred_element_type=f32) + bm[...]


def tiny_critic_forward(x, action, kernel_params, *, block_b=256):
    B = x.shape[0]
    x_flat = x.reshape(B, -1).astype(jnp.float32)               # (B, 246)
    D = x_flat.shape[1]
    # Batch tile: multiple of 8 (f32 sublane), capped at block_b (budgeted well
    # inside v7x's 32 MiB scoped VMEM with bf16-resident weights).
    TB = min(block_b, _round_up(max(B, 1), 8))
    B_pad = _round_up(B, TB)

    x_p = jnp.zeros((B_pad, IN_PAD), jnp.float32).at[:B, :D].set(x_flat)
    a_p = jnp.zeros((B_pad, ACT_DIM), jnp.float32).at[:B, :].set(
        action.astype(jnp.float32))

    # Weights/biases: whole-array blocks with constant index_map -> DMA'd once,
    # VMEM-resident across all batch tiles.
    w_specs = [pl.BlockSpec(p.shape, lambda i: (0, 0)) for p in kernel_params]

    out = pl.pallas_call(
        critic_kernel,
        out_shape=jax.ShapeDtypeStruct((B_pad, OUT_PAD), jnp.float32),
        grid=(B_pad // TB,),
        in_specs=[pl.BlockSpec((TB, IN_PAD), lambda i: (i, 0)),
                  pl.BlockSpec((TB, ACT_DIM), lambda i: (i, 0))] + w_specs,
        out_specs=pl.BlockSpec((TB, OUT_PAD), lambda i: (i, 0)),
        compiler_params=pltpu.CompilerParams(
            dimension_semantics=("parallel",)),
    )(x_p, a_p, *kernel_params)
    return out[:B, :2]


def init_params(key):
    """Deterministic PyTorch-style (uniform +-1/sqrt(fan_in)) init.

    Matmul weights are quantized once to bf16 (storage dtype of the model);
    both the pure-JAX reference and the Pallas kernel consume the same
    quantized weights, so the reference mirrors the deployed parameters."""
    def q(w):  # bf16 storage, dequantized view for the f32 reference
        return w.astype(jnp.bfloat16).astype(jnp.float32)

    ks = jax.random.split(key, 9)
    convs = []
    for i, (ci, co, K, s) in enumerate(CONV_CFG):
        bound = 1.0 / np.sqrt(ci * K)
        w = q(jax.random.uniform(jax.random.fold_in(ks[i], 0), (co, ci, K),
                                 jnp.float32, -bound, bound))
        b = jax.random.uniform(jax.random.fold_in(ks[i], 1), (co,),
                               jnp.float32, -bound, bound)
        convs.append((w, b))
    raw = {"convs": convs}

    fc_cfg = [("fc1", 128 + ACT_DIM, 100), ("fc2", 100, 50),
              ("fc3", 50, 10), ("fc_mu", 10, 2)]
    for j, (name, fin, fout) in enumerate(fc_cfg):
        bound = 1.0 / np.sqrt(fin)
        w = q(jax.random.uniform(jax.random.fold_in(ks[5 + j], 0), (fout, fin),
                                 jnp.float32, -bound, bound))
        b = jax.random.uniform(jax.random.fold_in(ks[5 + j], 1), (fout,),
                               jnp.float32, -bound, bound)
        raw[name] = (w, b)

    # ---- kernel params: padded block-Toeplitz + padded FC weights ----
    kparams = []
    L = STATE_DIM
    rows = IN_PAD
    for (w, b), (ci, co, K, s) in zip(convs, CONV_CFG):
        M, c, L, rows = conv_to_toeplitz(np.asarray(w), np.asarray(b), L, s, rows)
        kparams += [jnp.asarray(M, jnp.bfloat16), jnp.asarray(c, jnp.float32)]

    w1, b1 = raw["fc1"]
    w1 = np.asarray(w1)
    w1x, b1p = _pad_fc(w1[:, :128].T, np.asarray(b1), 128, 128)
    w1a = np.zeros((ACT_DIM, 128), np.float32)
    w1a[:, :100] = w1[:, 128:].T
    kparams += [jnp.asarray(w1x, jnp.bfloat16), jnp.asarray(w1a, jnp.float32),
                jnp.asarray(b1p, jnp.float32)]
    for name in ("fc2", "fc3", "fc_mu"):
        w, b = raw[name]
        Wp, bp = _pad_fc(np.asarray(w).T, np.asarray(b), 128, 128)
        kparams += [jnp.asarray(Wp, jnp.bfloat16), jnp.asarray(bp, jnp.float32)]
    return raw, kparams


def reference_forward(x, action, raw):
    """Pure-JAX (f32) reference mirroring PyTorch TinyCriticNet.forward."""
    h = x
    for (W, b), (_, _, _, s) in zip(raw["convs"], CONV_CFG):
        h = jax.lax.conv_general_dilated(h, W, window_strides=(s,), padding="VALID",
                                         dimension_numbers=("NCW", "OIW", "NCW"))
        h = jax.nn.relu(h + b[None, :, None])
    h = h.reshape(h.shape[0], -1)
    h = jnp.concatenate([h, action], axis=1)
    h = jax.nn.relu(h @ raw["fc1"][0].T + raw["fc1"][1])
    h = jax.nn.relu(h @ raw["fc2"][0].T + raw["fc2"][1])
    h = jax.nn.relu(h @ raw["fc3"][0].T + raw["fc3"][1])
    return h @ raw["fc_mu"][0].T + raw["fc_mu"][1]


if __name__ == "__main__":
    key = jax.random.PRNGKey(0)
    k_x, k_a, k_p = jax.random.split(key, 3)
    B = 2
    x = jax.random.normal(k_x, (B, 1, STATE_DIM), jnp.float32)
    action = jax.random.normal(k_a, (B, ACT_DIM), jnp.float32)

    raw, kernel_params = init_params(k_p)

    out = tiny_critic_forward(x, action, kernel_params)
    out = jax.block_until_ready(out)

    ref = reference_forward(x, action, raw)
    assert out.shape == (B, 2)
    # Kernel uses bf16 weights + bf16 activation casts with f32 accumulation;
    # the reference uses the same (bf16-stored) weights in full f32 math, so the
    # only discrepancy is activation rounding -> 1e-2 tolerance is conservative.
    assert np.allclose(np.asarray(out), np.asarray(ref), rtol=1e-2, atol=1e-2), (out, ref)
    print("KERNEL_OK")
</pallas_src>

<mosaic_0001>
module attributes {stable_mosaic.version = 11 : i64} {
  func.func @critic_kernel(%arg0: i32, %arg1: memref<8x256xf32, #tpu.memory_space<vmem>>, %arg2: memref<8x2xf32, #tpu.memory_space<vmem>>, %arg3: memref<256x1536xbf16, #tpu.memory_space<vmem>>, %arg4: memref<1x1536xf32, #tpu.memory_space<vmem>>, %arg5: memref<1536x512xbf16, #tpu.memory_space<vmem>>, %arg6: memref<1x512xf32, #tpu.memory_space<vmem>>, %arg7: memref<512x384xbf16, #tpu.memory_space<vmem>>, %arg8: memref<1x384xf32, #tpu.memory_space<vmem>>, %arg9: memref<384x256xbf16, #tpu.memory_space<vmem>>, %arg10: memref<1x256xf32, #tpu.memory_space<vmem>>, %arg11: memref<256x128xbf16, #tpu.memory_space<vmem>>, %arg12: memref<1x128xf32, #tpu.memory_space<vmem>>, %arg13: memref<128x128xbf16, #tpu.memory_space<vmem>>, %arg14: memref<2x128xf32, #tpu.memory_space<vmem>>, %arg15: memref<1x128xf32, #tpu.memory_space<vmem>>, %arg16: memref<128x128xbf16, #tpu.memory_space<vmem>>, %arg17: memref<1x128xf32, #tpu.memory_space<vmem>>, %arg18: memref<128x128xbf16, #tpu.memory_space<vmem>>, %arg19: memref<1x128xf32, #tpu.memory_space<vmem>>, %arg20: memref<128x128xbf16, #tpu.memory_space<vmem>>, %arg21: memref<1x128xf32, #tpu.memory_space<vmem>>, %arg22: memref<8x128xf32, #tpu.memory_space<vmem>>) attributes {dimension_semantics = [#tpu.dimension_semantics<parallel>], iteration_bounds = array<i64: 1>, scalar_prefetch = 0 : i64, scratch_operands = 0 : i64, tpu.core_type = #tpu.core_type<tc>, window_params = [{transform_indices = @transform_0, window_bounds = array<i64: 8, 256>}, {transform_indices = @transform_1, window_bounds = array<i64: 8, 2>}, {pipeline_mode = #tpu.pipeline_mode<synchronous>, transform_indices = @transform_2, window_bounds = array<i64: 256, 1536>}, {pipeline_mode = #tpu.pipeline_mode<synchronous>, transform_indices = @transform_3, window_bounds = array<i64: 1, 1536>}, {pipeline_mode = #tpu.pipeline_mode<synchronous>, transform_indices = @transform_4, window_bounds = array<i64: 1536, 512>}, {pipeline_mode = #tpu.pipeline_mode<synchronous>, transform_indices = @transform_5, window_bounds = array<i64: 1, 512>}, {pipeline_mode = #tpu.pipeline_mode<synchronous>, transform_indices = @transform_6, window_bounds = array<i64: 512, 384>}, {pipeline_mode = #tpu.pipeline_mode<synchronous>, transform_indices = @transform_7, window_bounds = array<i64: 1, 384>}, {pipeline_mode = #tpu.pipeline_mode<synchronous>, transform_indices = @transform_8, window_bounds = array<i64: 384, 256>}, {pipeline_mode = #tpu.pipeline_mode<synchronous>, transform_indices = @transform_9, window_bounds = array<i64: 1, 256>}, {pipeline_mode = #tpu.pipeline_mode<synchronous>, transform_indices = @transform_10, window_bounds = array<i64: 256, 128>}, {pipeline_mode = #tpu.pipeline_mode<synchronous>, transform_indices = @transform_11, window_bounds = array<i64: 1, 128>}, {pipeline_mode = #tpu.pipeline_mode<synchronous>, transform_indices = @transform_12, window_bounds = array<i64: 128, 128>}, {pipeline_mode = #tpu.pipeline_mode<synchronous>, transform_indices = @transform_13, window_bounds = array<i64: 2, 128>}, {pipeline_mode = #tpu.pipeline_mode<synchronous>, transform_indices = @transform_14, window_bounds = array<i64: 1, 128>}, {pipeline_mode = #tpu.pipeline_mode<synchronous>, transform_indices = @transform_15, window_bounds = array<i64: 128, 128>}, {pipeline_mode = #tpu.pipeline_mode<synchronous>, transform_indices = @transform_16, window_bounds = array<i64: 1, 128>}, {pipeline_mode = #tpu.pipeline_mode<synchronous>, transform_indices = @transform_17, window_bounds = array<i64: 128, 128>}, {pipeline_mode = #tpu.pipeline_mode<synchronous>, transform_indices = @transform_18, window_bounds = array<i64: 1, 128>}, {pipeline_mode = #tpu.pipeline_mode<synchronous>, transform_indices = @transform_19, window_bounds = array<i64: 128, 128>}, {pipeline_mode = #tpu.pipeline_mode<synchronous>, transform_indices = @transform_20, window_bounds = array<i64: 1, 128>}, {transform_indices = @transform_21, window_bounds = array<i64: 8, 128>}]} {
    %c0 = arith.constant 0 : index
    %c0_0 = arith.constant 0 : index
    %0 = vector.load %arg1[%c0, %c0_0] : memref<8x256xf32, #tpu.memory_space<vmem>>, vector<8x256xf32>
    %1 = arith.truncf %0 : vector<8x256xf32> to vector<8x256xbf16>
    %c0_1 = arith.constant 0 : index
    %c0_2 = arith.constant 0 : index
    %2 = vector.load %arg3[%c0_1, %c0_2] : memref<256x1536xbf16, #tpu.memory_space<vmem>>, vector<256x1536xbf16>
    %cst = arith.constant dense<0.000000e+00> : vector<8x1536xf32>
    %3 = tpu.matmul %1, %2, %cst {dimension_numbers = #tpu.dot_dimension_numbers<[1], [0], [0], [1], [0, 0, 1, 1], [], []>} : vector<8x256xbf16>, vector<256x1536xbf16>, vector<8x1536xf32> -> vector<8x1536xf32>
    %c0_3 = arith.constant 0 : index
    %c0_4 = arith.constant 0 : index
    %4 = vector.load %arg4[%c0_3, %c0_4] : memref<1x1536xf32, #tpu.memory_space<vmem>>, vector<1x1536xf32>
    %5 = vector.broadcast %4 : vector<1x1536xf32> to vector<8x1536xf32>
    %6 = arith.addf %3, %5 : vector<8x1536xf32>
    %cst_5 = arith.constant 0.000000e+00 : f32
    %7 = vector.broadcast %cst_5 : f32 to vector<8x1536xf32>
    %8 = arith.maximumf %6, %7 : vector<8x1536xf32>
    %9 = arith.truncf %8 : vector<8x1536xf32> to vector<8x1536xbf16>
    %c0_6 = arith.constant 0 : index
    %c0_7 = arith.constant 0 : index
    %10 = vector.load %arg5[%c0_6, %c0_7] : memref<1536x512xbf16, #tpu.memory_space<vmem>>, vector<1536x512xbf16>
    %cst_8 = arith.constant dense<0.000000e+00> : vector<8x512xf32>
    %11 = tpu.matmul %9, %10, %cst_8 {dimension_numbers = #tpu.dot_dimension_numbers<[1], [0], [0], [1], [0, 0, 1, 1], [], []>} : vector<8x1536xbf16>, vector<1536x512xbf16>, vector<8x512xf32> -> vector<8x512xf32>
    %c0_9 = arith.constant 0 : index
    %c0_10 = arith.constant 0 : index
    %12 = vector.load %arg6[%c0_9, %c0_10] : memref<1x512xf32, #tpu.memory_space<vmem>>, vector<1x512xf32>
    %13 = vector.broadcast %12 : vector<1x512xf32> to vector<8x512xf32>
    %14 = arith.addf %11, %13 : vector<8x512xf32>
    %cst_11 = arith.constant 0.000000e+00 : f32
    %15 = vector.broadcast %cst_11 : f32 to vector<8x512xf32>
    %16 = arith.maximumf %14, %15 : vector<8x512xf32>
    %17 = arith.truncf %16 : vector<8x512xf32> to vector<8x512xbf16>
    %c0_12 = arith.constant 0 : index
    %c0_13 = arith.constant 0 : index
    %18 = vector.load %arg7[%c0_12, %c0_13] : memref<512x384xbf16, #tpu.memory_space<vmem>>, vector<512x384xbf16>
    %cst_14 = arith.constant dense<0.000000e+00> : vector<8x384xf32>
    %19 = tpu.matmul %17, %18, %cst_14 {dimension_numbers = #tpu.dot_dimension_numbers<[1], [0], [0], [1], [0, 0, 1, 1], [], []>} : vector<8x512xbf16>, vector<512x384xbf16>, vector<8x384xf32> -> vector<8x384xf32>
    %c0_15 = arith.constant 0 : index
    %c0_16 = arith.constant 0 : index
    %20 = vector.load %arg8[%c0_15, %c0_16] : memref<1x384xf32, #tpu.memory_space<vmem>>, vector<1x384xf32>
    %21 = vector.broadcast %20 : vector<1x384xf32> to vector<8x384xf32>
    %22 = arith.addf %19, %21 : vector<8x384xf32>
    %cst_17 = arith.constant 0.000000e+00 : f32
    %23 = vector.broadcast %cst_17 : f32 to vector<8x384xf32>
    %24 = arith.maximumf %22, %23 : vector<8x384xf32>
    %25 = arith.truncf %24 : vector<8x384xf32> to vector<8x384xbf16>
    %c0_18 = arith.constant 0 : index
    %c0_19 = arith.constant 0 : index
    %26 = vector.load %arg9[%c0_18, %c0_19] : memref<384x256xbf16, #tpu.memory_space<vmem>>, vector<384x256xbf16>
    %cst_20 = arith.constant dense<0.000000e+00> : vector<8x256xf32>
    %27 = tpu.matmul %25, %26, %cst_20 {dimension_numbers = #tpu.dot_dimension_numbers<[1], [0], [0], [1], [0, 0, 1, 1], [], []>} : vector<8x384xbf16>, vector<384x256xbf16>, vector<8x256xf32> -> vector<8x256xf32>
    %c0_21 = arith.constant 0 : index
    %c0_22 = arith.constant 0 : index
    %28 = vector.load %arg10[%c0_21, %c0_22] : memref<1x256xf32, #tpu.memory_space<vmem>>, vector<1x256xf32>
    %29 = vector.broadcast %28 : vector<1x256xf32> to vector<8x256xf32>
    %30 = arith.addf %27, %29 : vector<8x256xf32>
    %cst_23 = arith.constant 0.000000e+00 : f32
    %31 = vector.broadcast %cst_23 : f32 to vector<8x256xf32>
    %32 = arith.maximumf %30, %31 : vector<8x256xf32>
    %33 = arith.truncf %32 : vector<8x256xf32> to vector<8x256xbf16>
    %c0_24 = arith.constant 0 : index
    %c0_25 = arith.constant 0 : index
    %34 = vector.load %arg11[%c0_24, %c0_25] : memref<256x128xbf16, #tpu.memory_space<vmem>>, vector<256x128xbf16>
    %cst_26 = arith.constant dense<0.000000e+00> : vector<8x128xf32>
    %35 = tpu.matmul %33, %34, %cst_26 {dimension_numbers = #tpu.dot_dimension_numbers<[1], [0], [0], [1], [0, 0, 1, 1], [], []>} : vector<8x256xbf16>, vector<256x128xbf16>, vector<8x128xf32> -> vector<8x128xf32>
    %c0_27 = arith.constant 0 : index
    %c0_28 = arith.constant 0 : index
    %36 = vector.load %arg12[%c0_27, %c0_28] : memref<1x128xf32, #tpu.memory_space<vmem>>, vector<1x128xf32>
    %37 = vector.broadcast %36 : vector<1x128xf32> to vector<8x128xf32>
    %38 = arith.addf %35, %37 : vector<8x128xf32>
    %cst_29 = arith.constant 0.000000e+00 : f32
    %39 = vector.broadcast %cst_29 : f32 to vector<8x128xf32>
    %40 = arith.maximumf %38, %39 : vector<8x128xf32>
    %c0_30 = arith.constant 0 : index
    %c0_31 = arith.constant 0 : index
    %41 = vector.load %arg2[%c0_30, %c0_31] : memref<8x2xf32, #tpu.memory_space<vmem>>, vector<8x1xf32>
    %c0_32 = arith.constant 0 : index
    %c0_33 = arith.constant 0 : index
    %42 = vector.load %arg14[%c0_32, %c0_33] : memref<2x128xf32, #tpu.memory_space<vmem>>, vector<1x128xf32>
    %43 = vector.broadcast %41 : vector<8x1xf32> to vector<8x128xf32>
    %44 = vector.broadcast %42 : vector<1x128xf32> to vector<8x128xf32>
    %45 = arith.mulf %43, %44 : vector<8x128xf32>
    %c0_34 = arith.constant 0 : index
    %c1 = arith.constant 1 : index
    %46 = vector.load %arg2[%c0_34, %c1] : memref<8x2xf32, #tpu.memory_space<vmem>>, vector<8x1xf32>
    %c1_35 = arith.constant 1 : index
    %c0_36 = arith.constant 0 : index
    %47 = vector.load %arg14[%c1_35, %c0_36] : memref<2x128xf32, #tpu.memory_space<vmem>>, vector<1x128xf32>
    %48 = vector.broadcast %46 : vector<8x1xf32> to vector<8x128xf32>
    %49 = vector.broadcast %47 : vector<1x128xf32> to vector<8x128xf32>
    %50 = arith.mulf %48, %49 : vector<8x128xf32>
    %51 = arith.addf %45, %50 : vector<8x128xf32>
    %52 = arith.truncf %40 : vector<8x128xf32> to vector<8x128xbf16>
    %c0_37 = arith.constant 0 : index
    %c0_38 = arith.constant 0 : index
    %53 = vector.load %arg13[%c0_37, %c0_38] : memref<128x128xbf16, #tpu.memory_space<vmem>>, vector<128x128xbf16>
    %cst_39 = arith.constant dense<0.000000e+00> : vector<8x128xf32>
    %54 = tpu.matmul %52, %53, %cst_39 {dimension_numbers = #tpu.dot_dimension_numbers<[1], [0], [0], [1], [0, 0, 1, 1], [], []>} : vector<8x128xbf16>, vector<128x128xbf16>, vector<8x128xf32> -> vector<8x128xf32>
    %55 = arith.addf %54, %51 : vector<8x128xf32>
    %c0_40 = arith.constant 0 : index
    %c0_41 = arith.constant 0 : index
    %56 = vector.load %arg15[%c0_40, %c0_41] : memref<1x128xf32, #tpu.memory_space<vmem>>, vector<1x128xf32>
    %57 = vector.broadcast %56 : vector<1x128xf32> to vector<8x128xf32>
    %58 = arith.addf %55, %57 : vector<8x128xf32>
    %cst_42 = arith.constant 0.000000e+00 : f32
    %59 = vector.broadcast %cst_42 : f32 to vector<8x128xf32>
    %60 = arith.maximumf %58, %59 : vector<8x128xf32>
    %61 = arith.truncf %60 : vector<8x128xf32> to vector<8x128xbf16>
    %c0_43 = arith.constant 0 : index
    %c0_44 = arith.constant 0 : index
    %62 = vector.load %arg16[%c0_43, %c0_44] : memref<128x128xbf16, #tpu.memory_space<vmem>>, vector<128x128xbf16>
    %cst_45 = arith.constant dense<0.000000e+00> : vector<8x128xf32>
    %63 = tpu.matmul %61, %62, %cst_45 {dimension_numbers = #tpu.dot_dimension_numbers<[1], [0], [0], [1], [0, 0, 1, 1], [], []>} : vector<8x128xbf16>, vector<128x128xbf16>, vector<8x128xf32> -> vector<8x128xf32>
    %c0_46 = arith.constant 0 : index
    %c0_47 = arith.constant 0 : index
    %64 = vector.load %arg17[%c0_46, %c0_47] : memref<1x128xf32, #tpu.memory_space<vmem>>, vector<1x128xf32>
    %65 = vector.broadcast %64 : vector<1x128xf32> to vector<8x128xf32>
    %66 = arith.addf %63, %65 : vector<8x128xf32>
    %cst_48 = arith.constant 0.000000e+00 : f32
    %67 = vector.broadcast %cst_48 : f32 to vector<8x128xf32>
    %68 = arith.maximumf %66, %67 : vector<8x128xf32>
    %69 = arith.truncf %68 : vector<8x128xf32> to vector<8x128xbf16>
    %c0_49 = arith.constant 0 : index
    %c0_50 = arith.constant 0 : index
    %70 = vector.load %arg18[%c0_49, %c0_50] : memref<128x128xbf16, #tpu.memory_space<vmem>>, vector<128x128xbf16>
    %cst_51 = arith.constant dense<0.000000e+00> : vector<8x128xf32>
    %71 = tpu.matmul %69, %70, %cst_51 {dimension_numbers = #tpu.dot_dimension_numbers<[1], [0], [0], [1], [0, 0, 1, 1], [], []>} : vector<8x128xbf16>, vector<128x128xbf16>, vector<8x128xf32> -> vector<8x128xf32>
    %c0_52 = arith.constant 0 : index
    %c0_53 = arith.constant 0 : index
    %72 = vector.load %arg19[%c0_52, %c0_53] : memref<1x128xf32, #tpu.memory_space<vmem>>, vector<1x128xf32>
    %73 = vector.broadcast %72 : vector<1x128xf32> to vector<8x128xf32>
    %74 = arith.addf %71, %73 : vector<8x128xf32>
    %cst_54 = arith.constant 0.000000e+00 : f32
    %75 = vector.broadcast %cst_54 : f32 to vector<8x128xf32>
    %76 = arith.maximumf %74, %75 : vector<8x128xf32>
    %77 = arith.truncf %76 : vector<8x128xf32> to vector<8x128xbf16>
    %c0_55 = arith.constant 0 : index
    %c0_56 = arith.constant 0 : index
    %78 = vector.load %arg20[%c0_55, %c0_56] : memref<128x128xbf16, #tpu.memory_space<vmem>>, vector<128x128xbf16>
    %cst_57 = arith.constant dense<0.000000e+00> : vector<8x128xf32>
    %79 = tpu.matmul %77, %78, %cst_57 {dimension_numbers = #tpu.dot_dimension_numbers<[1], [0], [0], [1], [0, 0, 1, 1], [], []>} : vector<8x128xbf16>, vector<128x128xbf16>, vector<8x128xf32> -> vector<8x128xf32>
    %c0_58 = arith.constant 0 : index
    %c0_59 = arith.constant 0 : index
    %80 = vector.load %arg21[%c0_58, %c0_59] : memref<1x128xf32, #tpu.memory_space<vmem>>, vector<1x128xf32>
    %81 = vector.broadcast %80 : vector<1x128xf32> to vector<8x128xf32>
    %82 = arith.addf %79, %81 : vector<8x128xf32>
    %c0_60 = arith.constant 0 : index
    %c0_61 = arith.constant 0 : index
    %83 = vector.load %arg22[%c0_60, %c0_61] : memref<8x128xf32, #tpu.memory_space<vmem>>, vector<8x128xf32>
    tpu.vector_store %arg22[%c0_60, %c0_61], %82 {strides = array<i32>} : memref<8x128xf32, #tpu.memory_space<vmem>>, vector<8x128xf32>,
    return
  }
  func.func @transform_0(%arg0: i32) -> (i32, i32) {
    %c0_i32 = arith.constant 0 : i32
    %c0_i32_0 = arith.constant 0 : i32
    return %arg0, %c0_i32 : i32, i32
  }
  func.func @transform_1(%arg0: i32) -> (i32, i32) {
    %c0_i32 = arith.constant 0 : i32
    %c0_i32_0 = arith.constant 0 : i32
    return %arg0, %c0_i32 : i32, i32
  }
  func.func @transform_2(%arg0: i32) -> (i32, i32) {
    %c0_i32 = arith.constant 0 : i32
    %c0_i32_0 = arith.constant 0 : i32
    %c0_i32_1 = arith.constant 0 : i32
    return %c0_i32, %c0_i32_0 : i32, i32
  }
  func.func @transform_3(%arg0: i32) -> (i32, i32) {
    %c0_i32 = arith.constant 0 : i32
    %c0_i32_0 = arith.constant 0 : i32
    %c0_i32_1 = arith.constant 0 : i32
    return %c0_i32, %c0_i32_0 : i32, i32
  }
  func.func @transform_4(%arg0: i32) -> (i32, i32) {
    %c0_i32 = arith.constant 0 : i32
    %c0_i32_0 = arith.constant 0 : i32
    %c0_i32_1 = arith.constant 0 : i32
    return %c0_i32, %c0_i32_0 : i32, i32
  }
  func.func @transform_5(%arg0: i32) -> (i32, i32) {
    %c0_i32 = arith.constant 0 : i32
    %c0_i32_0 = arith.constant 0 : i32
    %c0_i32_1 = arith.constant 0 : i32
    return %c0_i32, %c0_i32_0 : i32, i32
  }
  func.func @transform_6(%arg0: i32) -> (i32, i32) {
    %c0_i32 = arith.constant 0 : i32
    %c0_i32_0 = arith.constant 0 : i32
    %c0_i32_1 = arith.constant 0 : i32
    return %c0_i32, %c0_i32_0 : i32, i32
  }
  func.func @transform_7(%arg0: i32) -> (i32, i32) {
    %c0_i32 = arith.constant 0 : i32
    %c0_i32_0 = arith.constant 0 : i32
    %c0_i32_1 = arith.constant 0 : i32
    return %c0_i32, %c0_i32_0 : i32, i32
  }
  func.func @transform_8(%arg0: i32) -> (i32, i32) {
    %c0_i32 = arith.constant 0 : i32
    %c0_i32_0 = arith.constant 0 : i32
    %c0_i32_1 = arith.constant 0 : i32
    return %c0_i32, %c0_i32_0 : i32, i32
  }
  func.func @transform_9(%arg0: i32) -> (i32, i32) {
    %c0_i32 = arith.constant 0 : i32
    %c0_i32_0 = arith.constant 0 : i32
    %c0_i32_1 = arith.constant 0 : i32
    return %c0_i32, %c0_i32_0 : i32, i32
  }
  func.func @transform_10(%arg0: i32) -> (i32, i32) {
    %c0_i32 = arith.constant 0 : i32
    %c0_i32_0 = arith.constant 0 : i32
    %c0_i32_1 = arith.constant 0 : i32
    return %c0_i32, %c0_i32_0 : i32, i32
  }
  func.func @transform_11(%arg0: i32) -> (i32, i32) {
    %c0_i32 = arith.constant 0 : i32
    %c0_i32_0 = arith.constant 0 : i32
    %c0_i32_1 = arith.constant 0 : i32
    return %c0_i32, %c0_i32_0 : i32, i32
  }
  func.func @transform_12(%arg0: i32) -> (i32, i32) {
    %c0_i32 = arith.constant 0 : i32
    %c0_i32_0 = arith.constant 0 : i32
    %c0_i32_1 = arith.constant 0 : i32
    return %c0_i32, %c0_i32_0 : i32, i32
  }
  func.func @transform_13(%arg0: i32) -> (i32, i32) {
    %c0_i32 = arith.constant 0 : i32
    %c0_i32_0 = arith.constant 0 : i32
    %c0_i32_1 = arith.constant 0 : i32
    return %c0_i32, %c0_i32_0 : i32, i32
  }
  func.func @transform_14(%arg0: i32) -> (i32, i32) {
    %c0_i32 = arith.constant 0 : i32
    %c0_i32_0 = arith.constant 0 : i32
    %c0_i32_1 = arith.constant 0 : i32
    return %c0_i32, %c0_i32_0 : i32, i32
  }
  func.func @transform_15(%arg0: i32) -> (i32, i32) {
    %c0_i32 = arith.constant 0 : i32
    %c0_i32_0 = arith.constant 0 : i32
    %c0_i32_1 = arith.constant 0 : i32
    return %c0_i32, %c0_i32_0 : i32, i32
  }
  func.func @transform_16(%arg0: i32) -> (i32, i32) {
    %c0_i32 = arith.constant 0 : i32
    %c0_i32_0 = arith.constant 0 : i32
    %c0_i32_1 = arith.constant 0 : i32
    return %c0_i32, %c0_i32_0 : i32, i32
  }
  func.func @transform_17(%arg0: i32) -> (i32, i32) {
    %c0_i32 = arith.constant 0 : i32
    %c0_i32_0 = arith.constant 0 : i32
    %c0_i32_1 = arith.constant 0 : i32
    return %c0_i32, %c0_i32_0 : i32, i32
  }
  func.func @transform_18(%arg0: i32) -> (i32, i32) {
    %c0_i32 = arith.constant 0 : i32
    %c0_i32_0 = arith.constant 0 : i32
    %c0_i32_1 = arith.constant 0 : i32
    return %c0_i32, %c0_i32_0 : i32, i32
  }
  func.func @transform_19(%arg0: i32) -> (i32, i32) {
    %c0_i32 = arith.constant 0 : i32
    %c0_i32_0 = arith.constant 0 : i32
    %c0_i32_1 = arith.constant 0 : i32
    return %c0_i32, %c0_i32_0 : i32, i32
  }
  func.func @transform_20(%arg0: i32) -> (i32, i32) {
    %c0_i32 = arith.constant 0 : i32
    %c0_i32_0 = arith.constant 0 : i32
    %c0_i32_1 = arith.constant 0 : i32
    return %c0_i32, %c0_i32_0 : i32, i32
  }
  func.func @transform_21(%arg0: i32) -> (i32, i32) {
    %c0_i32 = arith.constant 0 : i32
    %c0_i32_0 = arith.constant 0 : i32
    return %arg0, %c0_i32 : i32, i32
  }
}

</mosaic_0001>

<bundles_post_ra>
// kernel: tpu_custom_call.1
= control target key start
LH: loop header
LB: loop body
LE: loop exit
PB: predicated region body
PF: predicated region fallthrough
CT: control target
= control target key end

     0   :  { %s9729_s0 = inlined_call_operand.hbm [shape: f32[8,256], index: 0, kind: input, shape index: {}]   ;;  %s9730_s1 = inlined_call_operand.vmem [shape: f32[8,2], index: 1, kind: input, shape index: {}]   ;;  %s9731_s2 = inlined_call_operand.hbm [shape: bf16[256,1536], index: 2, kind: input, shape index: {}]   ;;  %s9732_s3 = inlined_call_operand.hbm [shape: f32[1,1536], index: 3, kind: input, shape index: {}]   ;;  %s9733_s4 = inlined_call_operand.hbm [shape: bf16[1536,512], index: 4, kind: input, shape index: {}]   ;;  %s9734_s5 = inlined_call_operand.hbm [shape: f32[1,512], index: 5, kind: input, shape index: {}]   ;;  %s9735_s6 = inlined_call_operand.hbm [shape: bf16[512,384], index: 6, kind: input, shape index: {}]   ;;  %s9736_s7 = inlined_call_operand.hbm [shape: f32[1,384], index: 7, kind: input, shape index: {}]   ;;  %s9737_s8 = inlined_call_operand.hbm [shape: bf16[384,256], index: 8, kind: input, shape index: {}]   ;;  %s9738_s9 = inlined_call_operand.hbm [shape: f32[1,256], index: 9, kind: input, shape index: {}]   ;;  %s9739_s10 = inlined_call_operand.hbm [shape: bf16[256,128], index: 10, kind: input, shape index: {}]   ;;  %s9740_s11 = inlined_call_operand.hbm [shape: f32[1,128], index: 11, kind: input, shape index: {}]   ;;  %s9741_s12 = inlined_call_operand.hbm [shape: bf16[128,128], index: 12, kind: input, shape index: {}]   ;;  %s9742_s13 = inlined_call_operand.hbm [shape: f32[2,128], index: 13, kind: input, shape index: {}]   ;;  %s9743_s14 = inlined_call_operand.hbm [shape: f32[1,128], index: 14, kind: input, shape index: {}]   ;;  %s9744_s15 = inlined_call_operand.hbm [shape: bf16[128,128], index: 15, kind: input, shape index: {}]   ;;  %s9745_s16 = inlined_call_operand.hbm [shape: f32[1,128], index: 16, kind: input, shape index: {}]   ;;  %s9746_s17 = inlined_call_operand.hbm [shape: bf16[128,128], index: 17, kind: input, shape index: {}]   ;;  %s9747_s18 = inlined_call_operand.hbm [shape: f32[1,128], index: 18, kind: input, shape index: {}]   ;;  %s9748_s19 = inlined_call_operand.hbm [shape: bf16[128,128], index: 19, kind: input, shape index: {}]   ;;  %s9749_s20 = inlined_call_operand.hbm [shape: f32[1,128], index: 20, kind: input, shape index: {}]   ;;  %s9750_s21 = inlined_call_operand.hbm [shape: f32[8,128], index: 21, kind: output, shape index: {}]  }
   0x1   :  { %9758 = sst [smem:[#allocation47_spill]] %s9729_s0 }
   0x2   :  { %9759 = sst [smem:[#allocation48_spill]] %s9730_s1 }
   0x3   :  { %9760 = sst [smem:[#allocation49_spill]] %s9731_s2 }
   0x4   :  { %9761 = sst [smem:[#allocation50_spill]] %s9732_s3 }
   0x5   :  { %9762 = sst [smem:[#allocation51_spill]] %s9733_s4 }
   0x6   :  { %9763 = sst [smem:[#allocation52_spill]] %s9734_s5 }
   0x7   :  { %9764 = sst [smem:[#allocation53_spill]] %s9749_s20 }
   0x8   :  { %9765 = sst [smem:[#allocation54_spill]] %s9750_s21 }
   0x9   :  { %26 = vsyncpa [#allocation3], 0 }
   0xa   :  { %27 = vsyncpa [#allocation6], 0 }
   0xb   :  { %28 = vsyncpa [#allocation9], 0 }
   0xc   :  { %29 = vsyncpa [#allocation12], 0 }
   0xd   :  { %30 = vsyncpa [#allocation15], 0 }
   0xe   :  { %31 = vsyncpa [#allocation18], 0 }
   0xf   :  { %32 = vsyncpa [#allocation21], 0 }
  0x10   :  { %33 = vsyncpa [#allocation24], 0 }
  0x11   :  { %34 = vsyncpa [#allocation27], 0 }
  0x12   :  { %35 = vsyncpa [#allocation30], 0 }
  0x13   :  { %36 = vsyncpa [#allocation33], 0 }
  0x14   :  { %37 = vsyncpa [#allocation4], 0  ;;  %s9172_s2 = smov [#allocation5]   ;;  %s9766_s3 = sld [smem:[#allocation49_spill]] }
  0x15   :  { %s55_s25 = sshll.u32 %s9172_s2, 4  ;;  %s56_s25 = int_to_ptr.vmem [resolvable:$true] %s55_s25 }
  0x1a   :  { %s8686_s28 = scalar_lea.hbm %s9766_s3, 24576 }
  0x1b   :  { %p8687_p0 = scmp.ne.s32.totalorder %s9766_s3, %s8686_s28  ;;  %p8690_p1 = scmp.lt.u32.totalorder %s8686_s28, %s9766_s3 }
  0x1d   :  { %p8692_p2 = pnand %p8690_p1, %p8687_p0 }
  0x1f   :  { %8695 = shalt.err (!%p8692_p2)
}
  0x20   :  { %s8696_s5 = scalar_lea.vmem %s56_s25, 24576  ;;  %p8701_p4 = scmp.lt.s32.totalorder %s56_s25, %s56_s25 }
  0x21   :  { %p8697_p3 = scmp.ne.s32.totalorder %s56_s25, %s8696_s5  ;;  %p8702_p5 = scmp.lt.s32.totalorder %s8696_s5, %s8696_s5 }
  0x23   :  { %p8703_p6 = por %p8702_p5, %p8701_p4 }
  0x25   :  { %p8704_p7 = pnand %p8703_p6, %p8697_p3 }
  0x27   :  { %8707 = shalt.err (!%p8704_p7)
}
  0x28   :  { %s9173_s22 = smov 768   ;;  %s9174_s23 = smov 48  }
  0x29   :  { %61 = dma.hbm_to_vmem [thread:$0]  %s9766_s3, 24576, %s56_s25, [#allocation6], %s9173_s22, %s9173_s22, %s9174_s23  }
  0x2a   :  { %s9175_s2 = smov [#allocation8]   ;;  %s9767_s29 = sld [smem:[#allocation51_spill]] }
  0x2b   :  { %s77_s26 = sshll.u32 %s9175_s2, 4  ;;  %s78_s26 = int_to_ptr.vmem [resolvable:$true] %s77_s26 }
  0x30   :  { %s8708_s0 = scalar_lea.hbm %s9767_s29, 49152 }
  0x31   :  { %p8709_p8 = scmp.ne.s32.totalorder %s9767_s29, %s8708_s0  ;;  %p8712_p9 = scmp.lt.u32.totalorder %s8708_s0, %s9767_s29 }
  0x33   :  { %p8714_p10 = pnand %p8712_p9, %p8709_p8 }
  0x35   :  { %8717 = shalt.err (!%p8714_p10)
}
  0x36   :  { %s8718_s20 = scalar_lea.vmem %s78_s26, 49152  ;;  %p8723_p12 = scmp.lt.s32.totalorder %s78_s26, %s78_s26 }
  0x37   :  { %p8719_p11 = scmp.ne.s32.totalorder %s78_s26, %s8718_s20  ;;  %p8724_p13 = scmp.lt.s32.totalorder %s8718_s20, %s8718_s20 }
  0x39   :  { %p8725_p0 = por %p8724_p13, %p8723_p12 }
  0x3b   :  { %p8726_p1 = pnand %p8725_p0, %p8719_p11 }
  0x3d   :  { %8729 = shalt.err (!%p8726_p1)
}
  0x3e   :  { %s9176_s25 = smov 256   ;;  %s9177_s3 = smov 16  }
  0x3f   :  { %83 = dma.hbm_to_vmem [thread:$0]  %s9767_s29, 49152, %s78_s26, [#allocation9], %s9176_s25, %s9176_s25, %s9177_s3  }
  0x40   :  { %s9178_s1 = smov [#allocation11]   ;;  %s8730_s27 = scalar_lea.hbm %s9735_s6, 12288 }
  0x41   :  { %s99_s24 = sshll.u32 %s9178_s1, 4  ;;  %p8731_p2 = scmp.ne.s32.totalorder %s9735_s6, %s8730_s27  ;;  %s100_s24 = int_to_ptr.vmem [resolvable:$true] %s99_s24 }
  0x42   :  { %p8734_p3 = scmp.lt.u32.totalorder %s8730_s27, %s9735_s6 }
  0x44   :  { %p8736_p4 = pnand %p8734_p3, %p8731_p2 }
  0x46   :  { %8739 = shalt.err (!%p8736_p4)
}
  0x47   :  { %s8740_s30 = scalar_lea.vmem %s100_s24, 12288  ;;  %p8745_p6 = scmp.lt.s32.totalorder %s100_s24, %s100_s24 }
  0x48   :  { %p8741_p5 = scmp.ne.s32.totalorder %s100_s24, %s8740_s30  ;;  %p8746_p7 = scmp.lt.s32.totalorder %s8740_s30, %s8740_s30 }
  0x4a   :  { %p8747_p8 = por %p8746_p7, %p8745_p6 }
  0x4c   :  { %p8748_p9 = pnand %p8747_p8, %p8741_p5 }
  0x4e   :  { %8751 = shalt.err (!%p8748_p9)
}
  0x4f   :  { %s9179_s26 = smov 192   ;;  %s9180_s29 = smov 12  }
  0x50   :  { %105 = dma.hbm_to_vmem [thread:$0]  %s9735_s6, 12288, %s100_s24, [#allocation12], %s9179_s26, %s9179_s26, %s9180_s29  }
  0x51   :  { %s9181_s3 = smov [#allocation14]   ;;  %s8752_s21 = scalar_lea.hbm %s9737_s8, 6144 }
  0x52   :  { %s121_s22 = sshll.u32 %s9181_s3, 4  ;;  %p8753_p10 = scmp.ne.s32.totalorder %s9737_s8, %s8752_s21  ;;  %s122_s22 = int_to_ptr.vmem [resolvable:$true] %s121_s22 }
  0x53   :  { %p8756_p11 = scmp.lt.u32.totalorder %s8752_s21, %s9737_s8 }
  0x55   :  { %p8758_p12 = pnand %p8756_p11, %p8753_p10 }
  0x57   :  { %8761 = shalt.err (!%p8758_p12)
}
  0x58   :  { %s8762_s20 = scalar_lea.vmem %s122_s22, 6144  ;;  %p8767_p0 = scmp.lt.s32.totalorder %s122_s22, %s122_s22 }
  0x59   :  { %p8763_p13 = scmp.ne.s32.totalorder %s122_s22, %s8762_s20  ;;  %p8768_p1 = scmp.lt.s32.totalorder %s8762_s20, %s8762_s20 }
  0x5b   :  { %p8769_p2 = por %p8768_p1, %p8767_p0 }
  0x5d   :  { %p8770_p3 = pnand %p8769_p2, %p8763_p13 }
  0x5f   :  { %8773 = shalt.err (!%p8770_p3)
}
  0x60   :  { %s9182_s6 = smov 128   ;;  %s9183_s24 = smov 8  }
  0x61   :  { %127 = dma.hbm_to_vmem [thread:$0]  %s9737_s8, 6144, %s122_s22, [#allocation15], %s9182_s6, %s9182_s6, %s9183_s24  }
  0x62   :  { %s9184_s26 = smov [#allocation17]   ;;  %s8774_s3 = scalar_lea.hbm %s9739_s10, 2048 }
  0x63   :  { %s143_s29 = sshll.u32 %s9184_s26, 4  ;;  %p8775_p4 = scmp.ne.s32.totalorder %s9739_s10, %s8774_s3  ;;  %s144_s29 = int_to_ptr.vmem [resolvable:$true] %s143_s29 }
  0x64   :  { %p8778_p5 = scmp.lt.u32.totalorder %s8774_s3, %s9739_s10 }
  0x66   :  { %p8780_p6 = pnand %p8778_p5, %p8775_p4 }
  0x68   :  { %8783 = shalt.err (!%p8780_p6)
}
  0x69   :  { %s8784_s27 = scalar_lea.vmem %s144_s29, 2048  ;;  %p8789_p8 = scmp.lt.s32.totalorder %s144_s29, %s144_s29 }
  0x6a   :  { %p8785_p7 = scmp.ne.s32.totalorder %s144_s29, %s8784_s27  ;;  %p8790_p9 = scmp.lt.s32.totalorder %s8784_s27, %s8784_s27 }
  0x6c   :  { %p8791_p10 = por %p8790_p9, %p8789_p8 }
  0x6e   :  { %p8792_p11 = pnand %p8791_p10, %p8785_p7 }
  0x70   :  { %8795 = shalt.err (!%p8792_p11)
}
  0x71   :  { %s9185_s8 = smov 64   ;;  %s9186_s22 = smov 4  }
  0x72   :  { %149 = dma.hbm_to_vmem [thread:$0]  %s9739_s10, 2048, %s144_s29, [#allocation18], %s9185_s8, %s9185_s8, %s9186_s22  }
  0x73   :  { %s9187_s20 = smov [#allocation20]   ;;  %s9188_s24 = smov [#allocation23]  }
  0x74   :  { %s165_s6 = sshll.u32 %s9187_s20, 4  ;;  %s188_s4 = sshll.u32 %s9188_s24, 4  ;;  %s166_s6 = int_to_ptr.vmem [resolvable:$true] %s165_s6  ;;  %s189_s4 = int_to_ptr.vmem [resolvable:$true] %s188_s4 }
  0x75   :  { %s8796_s5 = scalar_lea.hbm %s9741_s12, 1024 }
  0x76   :  { %p8797_p12 = scmp.ne.s32.totalorder %s9741_s12, %s8796_s5  ;;  %p8800_p13 = scmp.lt.u32.totalorder %s8796_s5, %s9741_s12 }
  0x78   :  { %p8802_p0 = pnand %p8800_p13, %p8797_p12 }
  0x7a   :  { %8805 = shalt.err (!%p8802_p0)
}
  0x7b   :  { %s8806_s10 = scalar_lea.vmem %s166_s6, 1024  ;;  %p8811_p2 = scmp.lt.s32.totalorder %s166_s6, %s166_s6 }
  0x7c   :  { %p8807_p1 = scmp.ne.s32.totalorder %s166_s6, %s8806_s10  ;;  %p8812_p3 = scmp.lt.s32.totalorder %s8806_s10, %s8806_s10 }
  0x7e   :  { %p8813_p4 = por %p8812_p3, %p8811_p2 }
  0x80   :  { %p8814_p5 = pnand %p8813_p4, %p8807_p1 }
  0x82   :  { %8817 = shalt.err (!%p8814_p5)
}
  0x83   :  { %171 = dma.hbm_to_vmem [thread:$0]  %s9741_s12, 1024, %s166_s6, [#allocation21], %s9185_s8, %s9185_s8, %s9186_s22  }
  0x84   :  { %s8818_s28 = scalar_lea.hbm %s9743_s14, 16 }
  0x85   :  { %p8819_p6 = scmp.ne.s32.totalorder %s9743_s14, %s8818_s28  ;;  %p8822_p7 = scmp.lt.u32.totalorder %s8818_s28, %s9743_s14 }
  0x87   :  { %p8824_p8 = pnand %p8822_p7, %p8819_p6 }
  0x89   :  { %8827 = shalt.err (!%p8824_p8)
}
  0x8a   :  { %s8828_s26 = scalar_lea.vmem %s189_s4, 16  ;;  %s8832_s5 = scalar_lea.vmem %s189_s4, 32 }
  0x8b   :  { %p8829_p9 = scmp.ne.s32.totalorder %s189_s4, %s8828_s26  ;;  %p8833_p10 = scmp.lt.s32.totalorder %s189_s4, %s189_s4 }
  0x8c   :  { %p8834_p11 = scmp.lt.s32.totalorder %s8832_s5, %s8828_s26 }
  0x8e   :  { %p8835_p12 = por %p8834_p11, %p8833_p10 }
  0x90   :  { %p8836_p13 = pnand %p8835_p12, %p8829_p9 }
  0x92   :  { %8839 = shalt.err (!%p8836_p13)
}
  0x93   :  { %191 = dma.hbm_to_vmem [thread:$0]  %s9743_s14, 16, %s189_s4, [#allocation24]  }
  0x94   :  { %s9189_s25 = smov [#allocation26]   ;;  %s9190_s23 = smov [#allocation29]  }
  0x95   :  { %s210_s3 = sshll.u32 %s9189_s25, 4  ;;  %s232_s1 = sshll.u32 %s9190_s23, 4  ;;  %s211_s3 = int_to_ptr.vmem [resolvable:$true] %s210_s3  ;;  %s233_s1 = int_to_ptr.vmem [resolvable:$true] %s232_s1 }
  0x96   :  { %s8840_s21 = scalar_lea.hbm %s9745_s16, 16 }
  0x97   :  { %p8841_p0 = scmp.ne.s32.totalorder %s9745_s16, %s8840_s21  ;;  %p8844_p1 = scmp.lt.u32.totalorder %s8840_s21, %s9745_s16 }
  0x99   :  { %p8846_p2 = pnand %p8844_p1, %p8841_p0 }
  0x9b   :  { %8849 = shalt.err (!%p8846_p2)
}
  0x9c   :  { %s8850_s14 = scalar_lea.vmem %s211_s3, 16  ;;  %s8854_s4 = scalar_lea.vmem %s211_s3, 32 }
  0x9d   :  { %p8851_p3 = scmp.ne.s32.totalorder %s211_s3, %s8850_s14  ;;  %p8855_p4 = scmp.lt.s32.totalorder %s211_s3, %s211_s3 }
  0x9e   :  { %p8856_p5 = scmp.lt.s32.totalorder %s8854_s4, %s8850_s14 }
  0xa0   :  { %p8857_p6 = por %p8856_p5, %p8855_p4 }
  0xa2   :  { %p8858_p7 = pnand %p8857_p6, %p8851_p3 }
  0xa4   :  { %8861 = shalt.err (!%p8858_p7)
}
  0xa5   :  { %213 = dma.hbm_to_vmem [thread:$0]  %s9745_s16, 16, %s211_s3, [#allocation27]  }
  0xa6   :  { %s8862_s5 = scalar_lea.hbm %s9747_s18, 16 }
  0xa7   :  { %p8863_p8 = scmp.ne.s32.totalorder %s9747_s18, %s8862_s5  ;;  %p8866_p9 = scmp.lt.u32.totalorder %s8862_s5, %s9747_s18 }
  0xa9   :  { %p8868_p10 = pnand %p8866_p9, %p8863_p8 }
  0xab   :  { %8871 = shalt.err (!%p8868_p10)
}
  0xac   :  { %s8872_s10 = scalar_lea.vmem %s233_s1, 16  ;;  %s8876_s29 = scalar_lea.vmem %s233_s1, 32 }
  0xad   :  { %p8873_p11 = scmp.ne.s32.totalorder %s233_s1, %s8872_s10  ;;  %p8877_p12 = scmp.lt.s32.totalorder %s233_s1, %s233_s1 }
  0xae   :  { %p8878_p13 = scmp.lt.s32.totalorder %s8876_s29, %s8872_s10 }
  0xb0   :  { %p8879_p0 = por %p8878_p13, %p8877_p12 }
  0xb2   :  { %p8880_p1 = pnand %p8879_p0, %p8873_p11 }
  0xb4   :  { %8883 = shalt.err (!%p8880_p1)
}
  0xb5   :  { %235 = dma.hbm_to_vmem [thread:$0]  %s9747_s18, 16, %s233_s1, [#allocation30]  }
  0xb6   :  { %s9191_s21 = smov [#allocation2]   ;;  %s9192_s27 = smov [#allocation7]  }
  0xb7   :  { %s44_s2 = sshll.u32 %s9191_s21, 4  ;;  %s68_s28 = sshll.u32 %s9192_s27, 4  ;;  %s45_s2 = int_to_ptr.vmem [resolvable:$true] %s44_s2  ;;  %s69_s28 = int_to_ptr.vmem [resolvable:$true] %s68_s28 }
  0xb8   :  { %s9768_s4 = sld [smem:[#allocation47_spill]] }
  0xbe   :  { %s8884_s20 = scalar_lea.hbm %s9768_s4, 256 }
  0xbf   :  { %p8885_p2 = scmp.ne.s32.totalorder %s9768_s4, %s8884_s20  ;;  %p8888_p3 = scmp.lt.u32.totalorder %s8884_s20, %s9768_s4 }
  0xc1   :  { %p8890_p4 = pnand %p8888_p3, %p8885_p2 }
  0xc3   :  { %8893 = shalt.err (!%p8890_p4)
}
  0xc4   :  { %s8894_s18 = scalar_lea.vmem %s45_s2, 256  ;;  %p8899_p6 = scmp.lt.s32.totalorder %s45_s2, %s45_s2 }
  0xc5   :  { %p8895_p5 = scmp.ne.s32.totalorder %s45_s2, %s8894_s18  ;;  %p8900_p7 = scmp.lt.s32.totalorder %s8894_s18, %s8894_s18 }
  0xc7   :  { %p8901_p8 = por %p8900_p7, %p8899_p6 }
  0xc9   :  { %p8902_p9 = pnand %p8901_p8, %p8895_p5 }
  0xcb   :  { %8905 = shalt.err (!%p8902_p9)
}
  0xcc   :  { %47 = dma.hbm_to_vmem [thread:$0]  %s9768_s4, 256, %s45_s2, [#allocation3]  }
  0xcd   :  { %s9769_s23 = sld [smem:[#allocation50_spill]] }
  0xd3   :  { %s8906_s10 = scalar_lea.hbm %s9769_s23, 192 }
  0xd4   :  { %p8907_p10 = scmp.ne.s32.totalorder %s9769_s23, %s8906_s10  ;;  %p8910_p11 = scmp.lt.u32.totalorder %s8906_s10, %s9769_s23 }
  0xd6   :  { %p8912_p12 = pnand %p8910_p11, %p8907_p10 }
  0xd8   :  { %8915 = shalt.err (!%p8912_p12)
}
  0xd9   :  { %s8916_s27 = scalar_lea.vmem %s69_s28, 192  ;;  %p8921_p0 = scmp.lt.s32.totalorder %s69_s28, %s69_s28 }
  0xda   :  { %p8917_p13 = scmp.ne.s32.totalorder %s69_s28, %s8916_s27  ;;  %p8922_p1 = scmp.lt.s32.totalorder %s8916_s27, %s8916_s27 }
  0xdc   :  { %p8923_p2 = por %p8922_p1, %p8921_p0 }
  0xde   :  { %p8924_p3 = pnand %p8923_p2, %p8917_p13 }
  0xe0   :  { %8927 = shalt.err (!%p8924_p3)
}
  0xe1   :  { %71 = dma.hbm_to_vmem [thread:$0]  %s9769_s23, 192, %s69_s28, [#allocation6]  }
  0xe2   :  { %s9193_s14 = smov [#allocation10]   ;;  %s9194_s20 = smov [#allocation13]  }
  0xe3   :  { %s90_s4 = sshll.u32 %s9193_s14, 4  ;;  %s112_s24 = sshll.u32 %s9194_s20, 4  ;;  %s91_s4 = int_to_ptr.vmem [resolvable:$true] %s90_s4  ;;  %s113_s24 = int_to_ptr.vmem [resolvable:$true] %s112_s24 }
  0xe4   :  { %s9770_s5 = sld [smem:[#allocation52_spill]] }
  0xea   :  { %s8928_s18 = scalar_lea.hbm %s9770_s5, 64 }
  0xeb   :  { %p8929_p4 = scmp.ne.s32.totalorder %s9770_s5, %s8928_s18  ;;  %p8932_p5 = scmp.lt.u32.totalorder %s8928_s18, %s9770_s5 }
  0xed   :  { %p8934_p6 = pnand %p8932_p5, %p8929_p4 }
  0xef   :  { %8937 = shalt.err (!%p8934_p6)
}
  0xf0   :  { %s8938_s28 = scalar_lea.vmem %s91_s4, 64  ;;  %p8943_p8 = scmp.lt.s32.totalorder %s91_s4, %s91_s4 }
  0xf1   :  { %p8939_p7 = scmp.ne.s32.totalorder %s91_s4, %s8938_s28  ;;  %p8944_p9 = scmp.lt.s32.totalorder %s8938_s28, %s8938_s28 }
  0xf3   :  { %p8945_p10 = por %p8944_p9, %p8943_p8 }
  0xf5   :  { %p8946_p11 = pnand %p8945_p10, %p8939_p7 }
  0xf7   :  { %8949 = shalt.err (!%p8946_p11)
}
  0xf8   :  { %93 = dma.hbm_to_vmem [thread:$0]  %s9770_s5, 64, %s91_s4, [#allocation9]  }
  0xf9   :  { %s8950_s3 = scalar_lea.hbm %s9736_s7, 48 }
  0xfa   :  { %p8951_p12 = scmp.ne.s32.totalorder %s9736_s7, %s8950_s3  ;;  %p8954_p13 = scmp.lt.u32.totalorder %s8950_s3, %s9736_s7 }
  0xfc   :  { %p8956_p0 = pnand %p8954_p13, %p8951_p12 }
  0xfe   :  { %8959 = shalt.err (!%p8956_p0)
}
  0xff   :  { %s8960_s14 = scalar_lea.vmem %s113_s24, 48  ;;  %s8964_s20 = scalar_lea.vmem %s113_s24, 64 }
 0x100   :  { %p8961_p1 = scmp.ne.s32.totalorder %s113_s24, %s8960_s14  ;;  %p8965_p2 = scmp.lt.s32.totalorder %s113_s24, %s113_s24 }
 0x101   :  { %p8966_p3 = scmp.lt.s32.totalorder %s8964_s20, %s8960_s14 }
 0x103   :  { %p8967_p4 = por %p8966_p3, %p8965_p2 }
 0x105   :  { %p8968_p5 = pnand %p8967_p4, %p8961_p1 }
 0x107   :  { %8971 = shalt.err (!%p8968_p5)
}
 0x108   :  { %115 = dma.hbm_to_vmem [thread:$0]  %s9736_s7, 48, %s113_s24, [#allocation12]  }
 0x109   :  { %s9195_s26 = smov [#allocation16]   ;;  %s9196_s18 = smov [#allocation19]  }
 0x10a   :  { %s134_s5 = sshll.u32 %s9195_s26, 4  ;;  %s156_s1 = sshll.u32 %s9196_s18, 4  ;;  %s135_s5 = int_to_ptr.vmem [resolvable:$true] %s134_s5  ;;  %s157_s1 = int_to_ptr.vmem [resolvable:$true] %s156_s1 }
 0x10b   :  { %s8972_s25 = scalar_lea.hbm %s9738_s9, 32 }
 0x10c   :  { %p8973_p6 = scmp.ne.s32.totalorder %s9738_s9, %s8972_s25  ;;  %p8976_p7 = scmp.lt.u32.totalorder %s8972_s25, %s9738_s9 }
 0x10e   :  { %p8978_p8 = pnand %p8976_p7, %p8973_p6 }
 0x110   :  { %8981 = shalt.err (!%p8978_p8)
}
 0x111   :  { %s8982_s7 = scalar_lea.vmem %s135_s5, 32  ;;  %p8987_p10 = scmp.lt.s32.totalorder %s135_s5, %s135_s5 }
 0x112   :  { %p8983_p9 = scmp.ne.s32.totalorder %s135_s5, %s8982_s7  ;;  %p8988_p11 = scmp.lt.s32.totalorder %s8982_s7, %s8982_s7 }
 0x114   :  { %p8989_p12 = por %p8988_p11, %p8987_p10 }
 0x116   :  { %p8990_p13 = pnand %p8989_p12, %p8983_p9 }
 0x118   :  { %8993 = shalt.err (!%p8990_p13)
}
 0x119   :  { %137 = dma.hbm_to_vmem [thread:$0]  %s9738_s9, 32, %s135_s5, [#allocation15]  }
 0x11a   :  { %s8994_s27 = scalar_lea.hbm %s9740_s11, 16 }
 0x11b   :  { %p8995_p0 = scmp.ne.s32.totalorder %s9740_s11, %s8994_s27  ;;  %p8998_p1 = scmp.lt.u32.totalorder %s8994_s27, %s9740_s11 }
 0x11d   :  { %p9000_p2 = pnand %p8998_p1, %p8995_p0 }
 0x11f   :  { %9003 = shalt.err (!%p9000_p2)
}
 0x120   :  { %s9004_s4 = scalar_lea.vmem %s157_s1, 16  ;;  %s9008_s30 = scalar_lea.vmem %s157_s1, 32 }
 0x121   :  { %p9005_p3 = scmp.ne.s32.totalorder %s157_s1, %s9004_s4  ;;  %p9009_p4 = scmp.lt.s32.totalorder %s157_s1, %s157_s1 }
 0x122   :  { %p9010_p5 = scmp.lt.s32.totalorder %s9008_s30, %s9004_s4 }
 0x124   :  { %p9011_p6 = por %p9010_p5, %p9009_p4 }
 0x126   :  { %p9012_p7 = pnand %p9011_p6, %p9005_p3 }
 0x128   :  { %9015 = shalt.err (!%p9012_p7)
}
 0x129   :  { %159 = dma.hbm_to_vmem [thread:$0]  %s9740_s11, 16, %s157_s1, [#allocation18]  }
 0x12a   :  { %s9197_s5 = smov [#allocation22]   ;;  %s9198_s12 = smov [#allocation25]  }
 0x12b   :  { %s178_s18 = sshll.u32 %s9197_s5, 4  ;;  %s197_s6 = sshll.u32 %s9198_s12, 4  ;;  %s179_s18 = int_to_ptr.vmem [resolvable:$true] %s178_s18  ;;  %s198_s6 = int_to_ptr.vmem [resolvable:$true] %s197_s6 }
 0x12c   :  { %s9016_s23 = scalar_lea.hbm %s9742_s13, 32 }
 0x12d   :  { %p9017_p8 = scmp.ne.s32.totalorder %s9742_s13, %s9016_s23  ;;  %p9020_p9 = scmp.lt.u32.totalorder %s9016_s23, %s9742_s13 }
 0x12f   :  { %p9022_p10 = pnand %p9020_p9, %p9017_p8 }
 0x131   :  { %9025 = shalt.err (!%p9022_p10)
}
 0x132   :  { %s9026_s11 = scalar_lea.vmem %s179_s18, 32  ;;  %p9031_p12 = scmp.lt.s32.totalorder %s179_s18, %s179_s18 }
 0x133   :  { %p9027_p11 = scmp.ne.s32.totalorder %s179_s18, %s9026_s11  ;;  %p9032_p13 = scmp.lt.s32.totalorder %s9026_s11, %s9026_s11 }
 0x135   :  { %p9033_p0 = por %p9032_p13, %p9031_p12 }
 0x137   :  { %p9034_p1 = pnand %p9033_p0, %p9027_p11 }
 0x139   :  { %9037 = shalt.err (!%p9034_p1)
}
 0x13a   :  { %181 = dma.hbm_to_vmem [thread:$0]  %s9742_s13, 32, %s179_s18, [#allocation21]  }
 0x13b   :  { %s9038_s27 = scalar_lea.hbm %s9744_s15, 1024 }
 0x13c   :  { %p9039_p2 = scmp.ne.s32.totalorder %s9744_s15, %s9038_s27  ;;  %p9042_p3 = scmp.lt.u32.totalorder %s9038_s27, %s9744_s15 }
 0x13e   :  { %p9044_p4 = pnand %p9042_p3, %p9039_p2 }
 0x140   :  { %9047 = shalt.err (!%p9044_p4)
}
 0x141   :  { %s9048_s4 = scalar_lea.vmem %s198_s6, 1024  ;;  %p9053_p6 = scmp.lt.s32.totalorder %s198_s6, %s198_s6 }
 0x142   :  { %p9049_p5 = scmp.ne.s32.totalorder %s198_s6, %s9048_s4  ;;  %p9054_p7 = scmp.lt.s32.totalorder %s9048_s4, %s9048_s4 }
 0x144   :  { %p9055_p8 = por %p9054_p7, %p9053_p6 }
 0x146   :  { %p9056_p9 = pnand %p9055_p8, %p9049_p5 }
 0x148   :  { %9059 = shalt.err (!%p9056_p9)
}
 0x149   :  { %203 = dma.hbm_to_vmem [thread:$0]  %s9744_s15, 1024, %s198_s6, [#allocation24], %s9185_s8, %s9185_s8, %s9186_s22  }
 0x14a   :  { %s9199_s9 = smov [#allocation28]   ;;  %s9200_s5 = smov [#allocation31]  }
 0x14b   :  { %s219_s26 = sshll.u32 %s9199_s9, 4  ;;  %s241_s18 = sshll.u32 %s9200_s5, 4  ;;  %s220_s26 = int_to_ptr.vmem [resolvable:$true] %s219_s26  ;;  %s242_s18 = int_to_ptr.vmem [resolvable:$true] %s241_s18 }
 0x14c   :  { %s9060_s28 = scalar_lea.hbm %s9746_s17, 1024 }
 0x14d   :  { %p9061_p10 = scmp.ne.s32.totalorder %s9746_s17, %s9060_s28  ;;  %p9064_p11 = scmp.lt.u32.totalorder %s9060_s28, %s9746_s17 }
 0x14f   :  { %p9066_p12 = pnand %p9064_p11, %p9061_p10 }
 0x151   :  { %9069 = shalt.err (!%p9066_p12)
}
 0x152   :  { %s9070_s15 = scalar_lea.vmem %s220_s26, 1024  ;;  %p9075_p0 = scmp.lt.s32.totalorder %s220_s26, %s220_s26 }
 0x153   :  { %p9071_p13 = scmp.ne.s32.totalorder %s220_s26, %s9070_s15  ;;  %p9076_p1 = scmp.lt.s32.totalorder %s9070_s15, %s9070_s15 }
 0x155   :  { %p9077_p2 = por %p9076_p1, %p9075_p0 }
 0x157   :  { %p9078_p3 = pnand %p9077_p2, %p9071_p13 }
 0x159   :  { %9081 = shalt.err (!%p9078_p3)
}
 0x15a   :  { %225 = dma.hbm_to_vmem [thread:$0]  %s9746_s17, 1024, %s220_s26, [#allocation27], %s9185_s8, %s9185_s8, %s9186_s22  }
 0x15b   :  { %s9082_s16 = scalar_lea.hbm %s9748_s19, 1024 }
 0x15c   :  { %p9083_p4 = scmp.ne.s32.totalorder %s9748_s19, %s9082_s16  ;;  %p9086_p5 = scmp.lt.u32.totalorder %s9082_s16, %s9748_s19 }
 0x15e   :  { %p9088_p6 = pnand %p9086_p5, %p9083_p4 }
 0x160   :  { %9091 = shalt.err (!%p9088_p6)
}
 0x161   :  { %s9092_s0 = scalar_lea.vmem %s242_s18, 1024  ;;  %p9097_p8 = scmp.lt.s32.totalorder %s242_s18, %s242_s18 }
 0x162   :  { %p9093_p7 = scmp.ne.s32.totalorder %s242_s18, %s9092_s0  ;;  %p9098_p9 = scmp.lt.s32.totalorder %s9092_s0, %s9092_s0 }
 0x164   :  { %p9099_p10 = por %p9098_p9, %p9097_p8 }
 0x166   :  { %p9100_p11 = pnand %p9099_p10, %p9093_p7 }
 0x168   :  { %9103 = shalt.err (!%p9100_p11)
}
 0x169   :  { %247 = dma.hbm_to_vmem [thread:$0]  %s9748_s19, 1024, %s242_s18, [#allocation30], %s9185_s8, %s9185_s8, %s9186_s22  }
 0x16a   :  { %s9201_s20 = smov [#allocation32]   ;;  %s9771_s9 = sld [smem:[#allocation53_spill]] }
 0x16b   :  { %s254_s4 = sshll.u32 %s9201_s20, 4  ;;  %s255_s4 = int_to_ptr.vmem [resolvable:$true] %s254_s4 }
 0x170   :  { %s9104_s26 = scalar_lea.hbm %s9771_s9, 16 }
 0x171   :  { %p9105_p12 = scmp.ne.s32.totalorder %s9771_s9, %s9104_s26  ;;  %p9108_p13 = scmp.lt.u32.totalorder %s9104_s26, %s9771_s9 }
 0x173   :  { %p9110_p0 = pnand %p9108_p13, %p9105_p12 }
 0x175   :  { %9113 = shalt.err (!%p9110_p0)
}
 0x176   :  { %s9114_s23 = scalar_lea.vmem %s255_s4, 16  ;;  %s9118_s19 = scalar_lea.vmem %s255_s4, 32 }
 0x177   :  { %p9115_p1 = scmp.ne.s32.totalorder %s255_s4, %s9114_s23  ;;  %p9119_p2 = scmp.lt.s32.totalorder %s255_s4, %s255_s4 }
 0x178   :  { %p9120_p3 = scmp.lt.s32.totalorder %s9118_s19, %s9114_s23 }
 0x17a   :  { %p9121_p4 = por %p9120_p3, %p9119_p2 }
 0x17c   :  { %p9122_p5 = pnand %p9121_p4, %p9115_p1 }
 0x17e   :  { %9125 = shalt.err (!%p9122_p5)
}
 0x17f   :  { %257 = dma.hbm_to_vmem [thread:$0]  %s9771_s9, 16, %s255_s4, [#allocation33]  }
 0x180   :  { %9148 = dma.done.wait [#allocation3], 256  }
 0x181   :  { %9149 = vsyncadd [#allocation3], 4294967040 }
 0x182   :  { %9150 = dma.done.wait [#allocation6], 24768  }
 0x183   :  { %9151 = vsyncadd [#allocation6], 4294942528 }
 0x184   :  { %9152 = dma.done.wait [#allocation9], 49216  }
 0x185   :  { %9153 = vsyncadd [#allocation9], 4294918080 }
 0x186   :  { %9154 = dma.done.wait [#allocation12], 12336  }
 0x187   :  { %9155 = vsyncadd [#allocation12], 4294954960 }
 0x188   :  { %9156 = dma.done.wait [#allocation15], 6176  }
 0x189   :  { %9157 = vsyncadd [#allocation15], 4294961120 }
 0x18a   :  { %9158 = dma.done.wait [#allocation18], 2064  }
 0x18b   :  { %9159 = vsyncadd [#allocation18], 4294965232 }
 0x18c   :  { %9160 = dma.done.wait [#allocation21], 1056  }
 0x18d   :  { %9161 = vsyncadd [#allocation21], 4294966240 }
 0x18e   :  { %9162 = dma.done.wait [#allocation24], 1040  }
 0x18f   :  { %9163 = vsyncadd [#allocation24], 4294966256 }
 0x190   :  { %9164 = dma.done.wait [#allocation27], 1040  }
 0x191   :  { %9165 = vsyncadd [#allocation27], 4294966256 }
 0x192   :  { %9166 = dma.done.wait [#allocation30], 1040  }
 0x193   :  { %9167 = vsyncadd [#allocation30], 4294966256 }
 0x194   :  { %9168 = dma.done.wait [#allocation33], 16  }
 0x195   :  { %9169 = vsyncadd [#allocation33], 4294967280  ;;  %v7573_v0 = vld [vmem:[#allocation5 + $0x4] ss:$48 sps:$4 sm:$0xff]   ;;  %v7575_v1 = vld [vmem:[#allocation5] ss:$48 sps:$4 sm:$0xff]  }
 0x196   :  { %1539 = vmatprep.subr.bf16.mxu0 %v7573_v0  ;;  %v7576_v2 = vld [vmem:[#allocation5 + $0x64] ss:$48 sps:$4 sm:$0xff]   ;;  %v7578_v3 = vld [vmem:[#allocation5 + $0x60] ss:$48 sps:$4 sm:$0xff]   ;;  %v7594_v7 = vld [vmem:[#allocation5 + $0xc] ss:$48 sps:$4 sm:$0xff]  }
 0x197   :  { %1540 = vmatpush1.bf16.msra.mxu0 %v7575_v1  ;;  %v7579_v4 = vld [vmem:[#allocation5 + $0xc4] ss:$48 sps:$4 sm:$0xff]   ;;  %v7581_v5 = vld [vmem:[#allocation5 + $0xc0] ss:$48 sps:$4 sm:$0xff]   ;;  %v7598_v10 = vld [vmem:[#allocation5 + $0x8] ss:$48 sps:$4 sm:$0xff]   ;;  %1580 = vmatprep.subr.bf16.mxu1 %v7594_v7 }
 0x198   :  { %1541 = vmatprep.subr.bf16.mxu0 %v7576_v2  ;;  %v7582_v6 = vld [vmem:[#allocation5 + $0x124] ss:$48 sps:$4 sm:$0xff]   ;;  %v7584_v8 = vld [vmem:[#allocation5 + $0x120] ss:$48 sps:$4 sm:$0xff]   ;;  %v7600_v11 = vld [vmem:[#allocation5 + $0x6c] ss:$48 sps:$4 sm:$0xff]   ;;  %1581 = vmatpush1.bf16.msra.mxu1 %v7598_v10 }
 0x199   :  { %v7585_v9 = vld [vmem:[#allocation5 + $0x184] ss:$48 sps:$4 sm:$0xff]   ;;  %v7587_v12 = vld [vmem:[#allocation5 + $0x180] ss:$48 sps:$4 sm:$0xff]   ;;  %1582 = vmatprep.subr.bf16.mxu1 %v7600_v11  ;;  %v7604_v13 = vld [vmem:[#allocation5 + $0x68] ss:$48 sps:$4 sm:$0xff]  }
 0x19a   :  { %v7606_v14 = vld [vmem:[#allocation5 + $0xcc] ss:$48 sps:$4 sm:$0xff]   ;;  %v7588_v15 = vld [vmem:[#allocation5 + $0x1e4] ss:$48 sps:$4 sm:$0xff]   ;;  %v7610_v16 = vld [vmem:[#allocation5 + $0xc8] ss:$48 sps:$4 sm:$0xff]  }
 0x19b   :  { %1542 = vmatpush1.bf16.msra.mxu0 %v7578_v3  ;;  %v7612_v17 = vld [vmem:[#allocation5 + $0x12c] ss:$48 sps:$4 sm:$0xff]   ;;  %v7590_v18 = vld [vmem:[#allocation5 + $0x1e0] ss:$48 sps:$4 sm:$0xff]   ;;  %v7591_v19 = vld [vmem:[#allocation5 + $0x244] ss:$48 sps:$4 sm:$0xff]  }
 0x19c   :  { %1543 = vmatprep.subr.bf16.mxu0 %v7579_v4  ;;  %1583 = vmatpush1.bf16.msra.mxu1 %v7604_v13  ;;  %v7616_v20 = vld [vmem:[#allocation5 + $0x128] ss:$48 sps:$4 sm:$0xff]   ;;  %v7618_v21 = vld [vmem:[#allocation5 + $0x18c] ss:$48 sps:$4 sm:$0xff]   ;;  %v7593_v22 = vld [vmem:[#allocation5 + $0x240] ss:$48 sps:$4 sm:$0xff]  }
 0x19d   :  { %1584 = vmatprep.subr.bf16.mxu1 %v7606_v14  ;;  %v7596_v23 = vld [vmem:[#allocation5 + $0x2a4] ss:$48 sps:$4 sm:$0xff]   ;;  %v7622_v24 = vld [vmem:[#allocation5 + $0x188] ss:$48 sps:$4 sm:$0xff]   ;;  %v7624_v25 = vld [vmem:[#allocation5 + $0x1ec] ss:$48 sps:$4 sm:$0xff]  }
 0x19e   :  { %v7599_v26 = vld [vmem:[#allocation5 + $0x2a0] ss:$48 sps:$4 sm:$0xff]   ;;  %v7602_v27 = vld [vmem:[#allocation5 + $0x304] ss:$48 sps:$4 sm:$0xff]   ;;  %v7628_v28 = vld [vmem:[#allocation5 + $0x1e8] ss:$48 sps:$4 sm:$0xff]  }
 0x19f   :  { %1544 = vmatpush1.bf16.msra.mxu0 %v7581_v5  ;;  %v7630_v29 = vld [vmem:[#allocation5 + $0x24c] ss:$48 sps:$4 sm:$0xff]   ;;  %v7605_v30 = vld [vmem:[#allocation5 + $0x300] ss:$48 sps:$4 sm:$0xff]   ;;  %v7608_v31 = vld [vmem:[#allocation5 + $0x364] ss:$48 sps:$4 sm:$0xff]  }
 0x1a0   :  { %1545 = vmatprep.subr.bf16.mxu0 %v7582_v6  ;;  %1585 = vmatpush1.bf16.msra.mxu1 %v7610_v16  ;;  %v7634_v32 = vld [vmem:[#allocation5 + $0x248] ss:$48 sps:$4 sm:$0xff]   ;;  %v7636_v34 = vld [vmem:[#allocation5 + $0x2ac] ss:$48 sps:$4 sm:$0xff]   ;;  %v7611_v36 = vld [vmem:[#allocation5 + $0x360] ss:$48 sps:$4 sm:$0xff]  }
 0x1a1   :  { %1586 = vmatprep.subr.bf16.mxu1 %v7612_v17  ;;  %v320_v33 = vld [vmem:[#allocation2 + $0x8] sm:$0xff]  ;;  %v7614_v37 = vld [vmem:[#allocation5 + $0x3c4] ss:$48 sps:$4 sm:$0xff]   ;;  %v7617_v40 = vld [vmem:[#allocation5 + $0x3c0] ss:$48 sps:$4 sm:$0xff]   ;;  %vm9204_vm0 = vmmov 0  }
 0x1a2   :  { %v9572_v35 = vpack.c.bf16 %v320_v33, %v320_v33  ;;  %v7640_v38 = vld [vmem:[#allocation5 + $0x2a8] ss:$48 sps:$4 sm:$0xff]   ;;  %v7642_v39 = vld [vmem:[#allocation5 + $0x30c] ss:$48 sps:$4 sm:$0xff]   ;;  %v7620_v41 = vld [vmem:[#allocation5 + $0x424] ss:$48 sps:$4 sm:$0xff]  }
 0x1a3   :  { %1546 = vmatpush1.bf16.msra.mxu0 %v7584_v8  ;;  %v7646_v42 = vld [vmem:[#allocation5 + $0x308] ss:$48 sps:$4 sm:$0xff]   ;;  %v7648_v43 = vld [vmem:[#allocation5 + $0x36c] ss:$48 sps:$4 sm:$0xff]   ;;  %v7623_v44 = vld [vmem:[#allocation5 + $0x420] ss:$48 sps:$4 sm:$0xff]  }
 0x1a4   :  { %1547 = vmatprep.subr.bf16.mxu0 %v7585_v9  ;;  %1587 = vmatpush1.bf16.msra.mxu1 %v7616_v20  ;;  %v7626_v45 = vld [vmem:[#allocation5 + $0x484] ss:$48 sps:$4 sm:$0xff]   ;;  %v7650_v46 = vld [vmem:[#allocation5 + $0x368] ss:$48 sps:$4 sm:$0xff]   ;;  %v7651_v47 = vld [vmem:[#allocation5 + $0x3cc] ss:$48 sps:$4 sm:$0xff]  }
 0x1a5   :  { %1588 = vmatprep.subr.bf16.mxu1 %v7618_v21  ;;  %1571 = vmatprep.mubr.bf16.mxu0 %v9572_v35  ;;  %v7629_v48 = vld [vmem:[#allocation5 + $0x480] ss:$48 sps:$4 sm:$0xff]   ;;  %v7632_v49 = vld [vmem:[#allocation5 + $0x4e4] ss:$48 sps:$4 sm:$0xff]   ;;  %v7653_v50 = vld [vmem:[#allocation5 + $0x3c8] ss:$48 sps:$4 sm:$0xff]  }
 0x1a6   :  { %1612 = vmatprep.mubr.bf16.mxu1 %v9572_v35  ;;  %v7654_v51 = vld [vmem:[#allocation5 + $0x42c] ss:$48 sps:$4 sm:$0xff]   ;;  %v7635_v52 = vld [vmem:[#allocation5 + $0x4e0] ss:$48 sps:$4 sm:$0xff]   ;;  %v7638_v53 = vld [vmem:[#allocation5 + $0x544] ss:$48 sps:$4 sm:$0xff]  }
 0x1a7   :  { %1548 = vmatpush1.bf16.msra.mxu0 %v7587_v12  ;;  %v7656_v54 = vld [vmem:[#allocation5 + $0x428] ss:$48 sps:$4 sm:$0xff]   ;;  %v7657_v55 = vld [vmem:[#allocation5 + $0x48c] ss:$48 sps:$4 sm:$0xff]   ;;  %v7641_v56 = vld [vmem:[#allocation5 + $0x540] ss:$48 sps:$4 sm:$0xff]  }
 0x1a8   :  { %1549 = vmatprep.subr.bf16.mxu0 %v7588_v15  ;;  %1589 = vmatpush1.bf16.msra.mxu1 %v7622_v24  ;;  %v7644_v57 = vld [vmem:[#allocation5 + $0x5a4] ss:$48 sps:$4 sm:$0xff]   ;;  %v7647_v58 = vld [vmem:[#allocation5 + $0x5a0] ss:$48 sps:$4 sm:$0xff]   ;;  %v7659_v59 = vld [vmem:[#allocation5 + $0x488] ss:$48 sps:$4 sm:$0xff]  }
 0x1a9   :  { %1590 = vmatprep.subr.bf16.mxu1 %v7624_v25  ;;  %v7660_v60 = vld [vmem:[#allocation5 + $0x4ec] ss:$48 sps:$4 sm:$0xff]   ;;  %v319_v61 = vld [vmem:[#allocation2] sm:$0xff]  ;;  %v7662_v63 = vld [vmem:[#allocation5 + $0x4e8] ss:$48 sps:$4 sm:$0xff]   ;;  %s9772_s29 = sld [smem:[#allocation48_spill]] }
 0x1aa   :  { %v7671_v62 = vld [vmem:[#allocation5 + $0x14] ss:$48 sps:$4 sm:$0xff]   ;;  %v9576_v0 = vpack.c.bf16 %v319_v61, %v319_v61  ;;  %v7663_v1 = vld [vmem:[#allocation5 + $0x54c] ss:$48 sps:$4 sm:$0xff]   ;;  %v7669_v2 = vld [vmem:[#allocation5 + $0x10] ss:$48 sps:$4 sm:$0xff]  }
 0x1ab   :  { %1550 = vmatpush1.bf16.msra.mxu0 %v7590_v18  ;;  %v7677_v3 = vld [vmem:[#allocation5 + $0x74] ss:$48 sps:$4 sm:$0xff]   ;;  %v7665_v4 = vld [vmem:[#allocation5 + $0x548] ss:$48 sps:$4 sm:$0xff]   ;;  %v7666_v5 = vld [vmem:[#allocation5 + $0x5ac] ss:$48 sps:$4 sm:$0xff]  }
 0x1ac   :  { %1551 = vmatprep.subr.bf16.mxu0 %v7591_v19  ;;  %1591 = vmatpush1.bf16.msra.mxu1 %v7628_v28  ;;  %v7675_v6 = vld [vmem:[#allocation5 + $0x70] ss:$48 sps:$4 sm:$0xff]   ;;  %v7683_v7 = vld [vmem:[#allocation5 + $0xd4] ss:$48 sps:$4 sm:$0xff]   ;;  %v7668_v8 = vld [vmem:[#allocation5 + $0x5a8] ss:$48 sps:$4 sm:$0xff]  }
 0x1ad   :  { %1592 = vmatprep.subr.bf16.mxu1 %v7630_v29  ;;  %v7674_v9 = vld [vmem:[#allocation5 + $0x1c] ss:$48 sps:$4 sm:$0xff]   ;;  %v7681_v10 = vld [vmem:[#allocation5 + $0xd0] ss:$48 sps:$4 sm:$0xff]   ;;  %v7689_v11 = vld [vmem:[#allocation5 + $0x134] ss:$48 sps:$4 sm:$0xff]  }
 0x1ae   :  { %v7672_v12 = vld [vmem:[#allocation5 + $0x18] ss:$48 sps:$4 sm:$0xff]   ;;  %v7680_v13 = vld [vmem:[#allocation5 + $0x7c] ss:$48 sps:$4 sm:$0xff]   ;;  %v7687_v14 = vld [vmem:[#allocation5 + $0x130] ss:$48 sps:$4 sm:$0xff]  }
 0x1af   :  { %1552 = vmatpush1.bf16.msra.mxu0 %v7593_v22  ;;  %v7695_v15 = vld [vmem:[#allocation5 + $0x194] ss:$48 sps:$4 sm:$0xff]   ;;  %v7678_v16 = vld [vmem:[#allocation5 + $0x78] ss:$48 sps:$4 sm:$0xff]   ;;  %v7686_v17 = vld [vmem:[#allocation5 + $0xdc] ss:$48 sps:$4 sm:$0xff]  }
 0x1b0   :  { %1553 = vmatprep.subr.bf16.mxu0 %v7596_v23  ;;  %1593 = vmatpush1.bf16.msra.mxu1 %v7634_v32  ;;  %v7693_v18 = vld [vmem:[#allocation5 + $0x190] ss:$48 sps:$4 sm:$0xff]   ;;  %v7701_v19 = vld [vmem:[#allocation5 + $0x1f4] ss:$48 sps:$4 sm:$0xff]   ;;  %v7684_v20 = vld [vmem:[#allocation5 + $0xd8] ss:$48 sps:$4 sm:$0xff]  }
 0x1b1   :  { %1594 = vmatprep.subr.bf16.mxu1 %v7636_v34  ;;  %v7692_v21 = vld [vmem:[#allocation5 + $0x13c] ss:$48 sps:$4 sm:$0xff]   ;;  %v7699_v22 = vld [vmem:[#allocation5 + $0x1f0] ss:$48 sps:$4 sm:$0xff]   ;;  %v7707_v23 = vld [vmem:[#allocation5 + $0x254] ss:$48 sps:$4 sm:$0xff]  }
 0x1b2   :  { %v7690_v24 = vld [vmem:[#allocation5 + $0x138] ss:$48 sps:$4 sm:$0xff]   ;;  %v7698_v25 = vld [vmem:[#allocation5 + $0x19c] ss:$48 sps:$4 sm:$0xff]   ;;  %v7717_v34 = vld [vmem:[#allocation5 + $0x310] ss:$48 sps:$4 sm:$0xff]  }
 0x1b3   :  { %1554 = vmatpush1.bf16.msra.mxu0 %v7599_v26  ;;  %v7705_v26 = vld [vmem:[#allocation5 + $0x250] ss:$48 sps:$4 sm:$0xff]   ;;  %v7696_v28 = vld [vmem:[#allocation5 + $0x198] ss:$48 sps:$4 sm:$0xff]   ;;  %v7704_v29 = vld [vmem:[#allocation5 + $0x1fc] ss:$48 sps:$4 sm:$0xff]  }
 0x1b4   :  { %1555 = vmatprep.subr.bf16.mxu0 %v7602_v27  ;;  %1595 = vmatpush1.bf16.msra.mxu1 %v7640_v38  ;;  %v7713_v27 = vld [vmem:[#allocation5 + $0x2b4] ss:$48 sps:$4 sm:$0xff]   ;;  %v7702_v32 = vld [vmem:[#allocation5 + $0x1f8] ss:$48 sps:$4 sm:$0xff]   ;;  %v7710_v33 = vld [vmem:[#allocation5 + $0x25c] ss:$48 sps:$4 sm:$0xff]  }
 0x1b5   :  { %1596 = vmatprep.subr.bf16.mxu1 %v7642_v39  ;;  %v7716_v38 = vld [vmem:[#allocation5 + $0x2bc] ss:$48 sps:$4 sm:$0xff]   ;;  %v7723_v39 = vld [vmem:[#allocation5 + $0x370] ss:$48 sps:$4 sm:$0xff]   ;;  %v7744_v61 = vld [vmem:[#allocation5 + $0x498] ss:$48 sps:$4 sm:$0xff]  }
 0x1b6   :  { %s9206_s7 = smov [#allocation34]  }
 0x1b7   :  { %1556 = vmatpush1.bf16.msra.mxu0 %v7605_v30  ;;  %v7711_v30 = vld [vmem:[#allocation5 + $0x2b0] ss:$48 sps:$4 sm:$0xff]   ;;  %s6504_s15 = sshll.u32 %s9206_s7, 4  ;;  %s6505_s15 = int_to_ptr.vmem [resolvable:$true] %s6504_s15 }
 0x1b8   :  { %1557 = vmatprep.subr.bf16.mxu0 %v7608_v31  ;;  %1597 = vmatpush1.bf16.msra.mxu1 %v7646_v42  ;;  %v7719_v31 = vld [vmem:[#allocation5 + $0x314] ss:$48 sps:$4 sm:$0xff]   ;;  %v7722_v42 = vld [vmem:[#allocation5 + $0x31c] ss:$48 sps:$4 sm:$0xff]   ;;  %s9126_s6 = scalar_lea.vmem %s6505_s15, 128  ;;  %p9131_p7 = scmp.lt.s32.totalorder %s6505_s15, %s6505_s15 }
 0x1b9   :  { %1598 = vmatprep.subr.bf16.mxu1 %v7648_v43  ;;  %v7729_v43 = vld [vmem:[#allocation5 + $0x3d0] ss:$48 sps:$4 sm:$0xff]   ;;  %p9127_p6 = scmp.ne.s32.totalorder %s6505_s15, %s9126_s6  ;;  %p9132_p8 = scmp.lt.s32.totalorder %s9126_s6, %s9126_s6 }
 0x1bb   :  { %1558 = vmatpush1.bf16.msra.mxu0 %v7611_v36  ;;  %v7725_v36 = vld [vmem:[#allocation5 + $0x374] ss:$48 sps:$4 sm:$0xff]   ;;  %p9133_p9 = por %p9132_p8, %p9131_p7 }
 0x1bc   :  { %1559 = vmatprep.subr.bf16.mxu0 %v7614_v37  ;;  %1599 = vmatpush1.bf16.msra.mxu1 %v7650_v46  ;;  %v7708_v37 = vld [vmem:[#allocation5 + $0x258] ss:$48 sps:$4 sm:$0xff]   ;;  %v7728_v46 = vld [vmem:[#allocation5 + $0x37c] ss:$48 sps:$4 sm:$0xff]  }
 0x1bd   :  { %1600 = vmatprep.subr.bf16.mxu1 %v7651_v47  ;;  %v7735_v47 = vld [vmem:[#allocation5 + $0x430] ss:$48 sps:$4 sm:$0xff]   ;;  %p9134_p10 = pnand %p9133_p9, %p9127_p6 }
 0x1bf   :  { %1560 = vmatpush1.bf16.msra.mxu0 %v7617_v40  ;;  %v7731_v40 = vld [vmem:[#allocation5 + $0x3d4] ss:$48 sps:$4 sm:$0xff]  }
 0x1c0   :  { %1561 = vmatprep.subr.bf16.mxu0 %v7620_v41  ;;  %1601 = vmatpush1.bf16.msra.mxu1 %v7653_v50  ;;  %v7714_v41 = vld [vmem:[#allocation5 + $0x2b8] ss:$48 sps:$4 sm:$0xff]   ;;  %v7734_v50 = vld [vmem:[#allocation5 + $0x3dc] ss:$48 sps:$4 sm:$0xff]  }
 0x1c1   :  { %1602 = vmatprep.subr.bf16.mxu1 %v7654_v51  ;;  %v7741_v51 = vld [vmem:[#allocation5 + $0x490] ss:$48 sps:$4 sm:$0xff]  }
 0x1c3   :  { %1562 = vmatpush1.bf16.msra.mxu0 %v7623_v44  ;;  %v7737_v44 = vld [vmem:[#allocation5 + $0x434] ss:$48 sps:$4 sm:$0xff]  }
 0x1c4   :  { %1563 = vmatprep.subr.bf16.mxu0 %v7626_v45  ;;  %1603 = vmatpush1.bf16.msra.mxu1 %v7656_v54  ;;  %v7720_v45 = vld [vmem:[#allocation5 + $0x318] ss:$48 sps:$4 sm:$0xff]   ;;  %v7740_v54 = vld [vmem:[#allocation5 + $0x43c] ss:$48 sps:$4 sm:$0xff]  }
 0x1c5   :  { %1604 = vmatprep.subr.bf16.mxu1 %v7657_v55  ;;  %v7747_v55 = vld [vmem:[#allocation5 + $0x4f0] ss:$48 sps:$4 sm:$0xff]  }
 0x1c7   :  { %1564 = vmatpush1.bf16.msra.mxu0 %v7629_v48  ;;  %v7743_v48 = vld [vmem:[#allocation5 + $0x494] ss:$48 sps:$4 sm:$0xff]  }
 0x1c8   :  { %1565 = vmatprep.subr.bf16.mxu0 %v7632_v49  ;;  %1605 = vmatpush1.bf16.msra.mxu1 %v7659_v59  ;;  %v7726_v49 = vld [vmem:[#allocation5 + $0x378] ss:$48 sps:$4 sm:$0xff]   ;;  %v7753_v59 = vld [vmem:[#allocation5 + $0x550] ss:$48 sps:$4 sm:$0xff]  }
 0x1c9   :  { %1606 = vmatprep.subr.bf16.mxu1 %v7660_v60  ;;  %v7761_v60 = vld [vmem:[#allocation5 + $0x5b4] ss:$48 sps:$4 sm:$0xff]  }
 0x1cb   :  { %1566 = vmatpush1.bf16.msra.mxu0 %v7635_v52  ;;  %v7749_v52 = vld [vmem:[#allocation5 + $0x4f4] ss:$48 sps:$4 sm:$0xff]  }
 0x1cc   :  { %1567 = vmatprep.subr.bf16.mxu0 %v7638_v53  ;;  %1607 = vmatpush1.bf16.msra.mxu1 %v7662_v63  ;;  %v7732_v53 = vld [vmem:[#allocation5 + $0x3d8] ss:$48 sps:$4 sm:$0xff]   ;;  %v7759_v63 = vld [vmem:[#allocation5 + $0x5b0] ss:$48 sps:$4 sm:$0xff]  }
 0x1cd   :  { %1608 = vmatprep.subr.bf16.mxu1 %v7663_v1  ;;  %v7767_v1 = vld [vmem:[#allocation5 + $0x24] ss:$48 sps:$4 sm:$0xff]  }
 0x1cf   :  { %1568 = vmatpush1.bf16.msra.mxu0 %v7641_v56  ;;  %v7755_v56 = vld [vmem:[#allocation5 + $0x554] ss:$48 sps:$4 sm:$0xff]  }
 0x1d0   :  { %1569 = vmatprep.subr.bf16.mxu0 %v7644_v57  ;;  %1609 = vmatpush1.bf16.msra.mxu1 %v7665_v4  ;;  %v7738_v57 = vld [vmem:[#allocation5 + $0x438] ss:$48 sps:$4 sm:$0xff]   ;;  %v7765_v4 = vld [vmem:[#allocation5 + $0x20] ss:$48 sps:$4 sm:$0xff]  }
 0x1d1   :  { %1610 = vmatprep.subr.bf16.mxu1 %v7666_v5  ;;  %v7773_v5 = vld [vmem:[#allocation5 + $0x84] ss:$48 sps:$4 sm:$0xff]  }
 0x1d3   :  { %1570 = vmatpush1.bf16.msra.mxu0 %v7647_v58  ;;  %v7746_v58 = vld [vmem:[#allocation5 + $0x49c] ss:$48 sps:$4 sm:$0xff]  }
 0x1d4   :  { %1621 = vmatprep.subr.bf16.mxu0 %v7671_v62  ;;  %1611 = vmatpush1.bf16.msra.mxu1 %v7668_v8  ;;  %v7752_v62 = vld [vmem:[#allocation5 + $0x4fc] ss:$48 sps:$4 sm:$0xff]   ;;  %v7771_v8 = vld [vmem:[#allocation5 + $0x80] ss:$48 sps:$4 sm:$0xff]  }
 0x1d5   :  { %1662 = vmatprep.subr.bf16.mxu1 %v7674_v9  ;;  %v7779_v9 = vld [vmem:[#allocation5 + $0xe4] ss:$48 sps:$4 sm:$0xff]  }
 0x1d6   :  { %1572 = vmatmul.mubr.bf16.vlgmr.msra.gmra.mrb[0].mxu0 %v9576_v0 }
 0x1d7   :  { %1622 = vmatpush1.bf16.msra.mxu0 %v7669_v2  ;;  %1653 = vmatprep.mubr.bf16.mxu0 %v9572_v35  ;;  %v7750_v2 = vld [vmem:[#allocation5 + $0x4f8] ss:$48 sps:$4 sm:$0xff]  }
 0x1d8   :  { %1623 = vmatprep.subr.bf16.mxu0 %v7677_v3  ;;  %1613 = vmatmul.mubr.bf16.vlgmr.msra.gmra.mrb[0].mxu1 %v9576_v0  ;;  %v7758_v3 = vld [vmem:[#allocation5 + $0x55c] ss:$48 sps:$4 sm:$0xff]  }
 0x1d9   :  { %1663 = vmatpush1.bf16.msra.mxu1 %v7672_v12  ;;  %1694 = vmatprep.mubr.bf16.mxu1 %v9572_v35  ;;  %v7777_v12 = vld [vmem:[#allocation5 + $0xe0] ss:$48 sps:$4 sm:$0xff]  }
 0x1da   :  { %1664 = vmatprep.subr.bf16.mxu1 %v7680_v13  ;;  %v7785_v13 = vld [vmem:[#allocation5 + $0x144] ss:$48 sps:$4 sm:$0xff]  }
 0x1db   :  { %1624 = vmatpush1.bf16.msra.mxu0 %v7675_v6  ;;  %v7756_v6 = vld [vmem:[#allocation5 + $0x558] ss:$48 sps:$4 sm:$0xff]  }
 0x1dc   :  { %1625 = vmatprep.subr.bf16.mxu0 %v7683_v7  ;;  %v7764_v7 = vld [vmem:[#allocation5 + $0x5bc] ss:$48 sps:$4 sm:$0xff]  }
 0x1dd   :  { %1665 = vmatpush1.bf16.msra.mxu1 %v7678_v16  ;;  %v7783_v16 = vld [vmem:[#allocation5 + $0x140] ss:$48 sps:$4 sm:$0xff]  }
 0x1de   :  { %1666 = vmatprep.subr.bf16.mxu1 %v7686_v17  ;;  %v7791_v17 = vld [vmem:[#allocation5 + $0x1a4] ss:$48 sps:$4 sm:$0xff]  }
 0x1df   :  { %1626 = vmatpush1.bf16.msra.mxu0 %v7681_v10  ;;  %v7762_v10 = vld [vmem:[#allocation5 + $0x5b8] ss:$48 sps:$4 sm:$0xff]  }
 0x1e0   :  { %1627 = vmatprep.subr.bf16.mxu0 %v7689_v11  ;;  %v7770_v11 = vld [vmem:[#allocation5 + $0x2c] ss:$48 sps:$4 sm:$0xff]  }
 0x1e1   :  { %1667 = vmatpush1.bf16.msra.mxu1 %v7684_v20  ;;  %v7789_v20 = vld [vmem:[#allocation5 + $0x1a0] ss:$48 sps:$4 sm:$0xff]  }
 0x1e2   :  { %1668 = vmatprep.subr.bf16.mxu1 %v7692_v21  ;;  %v7797_v21 = vld [vmem:[#allocation5 + $0x204] ss:$48 sps:$4 sm:$0xff]  }
 0x1e3   :  { %1628 = vmatpush1.bf16.msra.mxu0 %v7687_v14  ;;  %v7768_v14 = vld [vmem:[#allocation5 + $0x28] ss:$48 sps:$4 sm:$0xff]  }
 0x1e4   :  { %1629 = vmatprep.subr.bf16.mxu0 %v7695_v15  ;;  %v7776_v15 = vld [vmem:[#allocation5 + $0x8c] ss:$48 sps:$4 sm:$0xff]  }
 0x1e5   :  { %1669 = vmatpush1.bf16.msra.mxu1 %v7690_v24  ;;  %v7795_v24 = vld [vmem:[#allocation5 + $0x200] ss:$48 sps:$4 sm:$0xff]  }
 0x1e6   :  { %1670 = vmatprep.subr.bf16.mxu1 %v7698_v25  ;;  %v7803_v25 = vld [vmem:[#allocation5 + $0x264] ss:$48 sps:$4 sm:$0xff]  }
 0x1e7   :  { %1630 = vmatpush1.bf16.msra.mxu0 %v7693_v18  ;;  %v7774_v18 = vld [vmem:[#allocation5 + $0x88] ss:$48 sps:$4 sm:$0xff]  }
 0x1e8   :  { %1631 = vmatprep.subr.bf16.mxu0 %v7701_v19  ;;  %v7782_v19 = vld [vmem:[#allocation5 + $0xec] ss:$48 sps:$4 sm:$0xff]  }
 0x1e9   :  { %1671 = vmatpush1.bf16.msra.mxu1 %v7696_v28  ;;  %v7809_v28 = vld [vmem:[#allocation5 + $0x2c4] ss:$48 sps:$4 sm:$0xff]  }
 0x1ea   :  { %1672 = vmatprep.subr.bf16.mxu1 %v7704_v29  ;;  %v7792_v29 = vld [vmem:[#allocation5 + $0x1a8] ss:$48 sps:$4 sm:$0xff]  }
 0x1eb   :  { %1632 = vmatpush1.bf16.msra.mxu0 %v7699_v22  ;;  %v7780_v22 = vld [vmem:[#allocation5 + $0xe8] ss:$48 sps:$4 sm:$0xff]  }
 0x1ec   :  { %1633 = vmatprep.subr.bf16.mxu0 %v7707_v23  ;;  %v7788_v23 = vld [vmem:[#allocation5 + $0x14c] ss:$48 sps:$4 sm:$0xff]  }
 0x1ed   :  { %1673 = vmatpush1.bf16.msra.mxu1 %v7702_v32  ;;  %v7815_v32 = vld [vmem:[#allocation5 + $0x324] ss:$48 sps:$4 sm:$0xff]  }
 0x1ee   :  { %1674 = vmatprep.subr.bf16.mxu1 %v7710_v33  ;;  %v7798_v33 = vld [vmem:[#allocation5 + $0x208] ss:$48 sps:$4 sm:$0xff]  }
 0x1ef   :  { %1634 = vmatpush1.bf16.msra.mxu0 %v7705_v26  ;;  %v7786_v26 = vld [vmem:[#allocation5 + $0x148] ss:$48 sps:$4 sm:$0xff]  }
 0x1f0   :  { %1635 = vmatprep.subr.bf16.mxu0 %v7713_v27  ;;  %v7794_v27 = vld [vmem:[#allocation5 + $0x1ac] ss:$48 sps:$4 sm:$0xff]  }
 0x1f1   :  { %1675 = vmatpush1.bf16.msra.mxu1 %v7708_v37  ;;  %v7821_v37 = vld [vmem:[#allocation5 + $0x384] ss:$48 sps:$4 sm:$0xff]  }
 0x1f2   :  { %1676 = vmatprep.subr.bf16.mxu1 %v7716_v38  ;;  %v7804_v38 = vld [vmem:[#allocation5 + $0x268] ss:$48 sps:$4 sm:$0xff]  }
 0x1f3   :  { %1636 = vmatpush1.bf16.msra.mxu0 %v7711_v30  ;;  %v7800_v30 = vld [vmem:[#allocation5 + $0x20c] ss:$48 sps:$4 sm:$0xff]  }
 0x1f4   :  { %1637 = vmatprep.subr.bf16.mxu0 %v7719_v31  ;;  %v7807_v31 = vld [vmem:[#allocation5 + $0x2c0] ss:$48 sps:$4 sm:$0xff]  }
 0x1f5   :  { %1677 = vmatpush1.bf16.msra.mxu1 %v7714_v41  ;;  %v7827_v41 = vld [vmem:[#allocation5 + $0x3e4] ss:$48 sps:$4 sm:$0xff]  }
 0x1f6   :  { %1678 = vmatprep.subr.bf16.mxu1 %v7722_v42  ;;  %v7810_v42 = vld [vmem:[#allocation5 + $0x2c8] ss:$48 sps:$4 sm:$0xff]  }
 0x1f7   :  { %1638 = vmatpush1.bf16.msra.mxu0 %v7717_v34  ;;  %v7806_v34 = vld [vmem:[#allocation5 + $0x26c] ss:$48 sps:$4 sm:$0xff]  }
 0x1f8   :  { %1639 = vmatprep.subr.bf16.mxu0 %v7725_v36  ;;  %v7813_v36 = vld [vmem:[#allocation5 + $0x320] ss:$48 sps:$4 sm:$0xff]  }
 0x1f9   :  { %1679 = vmatpush1.bf16.msra.mxu1 %v7720_v45  ;;  %v7833_v45 = vld [vmem:[#allocation5 + $0x444] ss:$48 sps:$4 sm:$0xff]  }
 0x1fa   :  { %1680 = vmatprep.subr.bf16.mxu1 %v7728_v46  ;;  %v7816_v46 = vld [vmem:[#allocation5 + $0x328] ss:$48 sps:$4 sm:$0xff]  }
 0x1fb   :  { %1640 = vmatpush1.bf16.msra.mxu0 %v7723_v39  ;;  %v7812_v39 = vld [vmem:[#allocation5 + $0x2cc] ss:$48 sps:$4 sm:$0xff]  }
 0x1fc   :  { %1641 = vmatprep.subr.bf16.mxu0 %v7731_v40  ;;  %v7819_v40 = vld [vmem:[#allocation5 + $0x380] ss:$48 sps:$4 sm:$0xff]  }
 0x1fd   :  { %1681 = vmatpush1.bf16.msra.mxu1 %v7726_v49  ;;  %v7839_v49 = vld [vmem:[#allocation5 + $0x4a4] ss:$48 sps:$4 sm:$0xff]  }
 0x1fe   :  { %1682 = vmatprep.subr.bf16.mxu1 %v7734_v50  ;;  %v7822_v50 = vld [vmem:[#allocation5 + $0x388] ss:$48 sps:$4 sm:$0xff]  }
 0x1ff   :  { %1642 = vmatpush1.bf16.msra.mxu0 %v7729_v43  ;;  %v7818_v43 = vld [vmem:[#allocation5 + $0x32c] ss:$48 sps:$4 sm:$0xff]  }
 0x200   :  { %1643 = vmatprep.subr.bf16.mxu0 %v7737_v44  ;;  %v7825_v44 = vld [vmem:[#allocation5 + $0x3e0] ss:$48 sps:$4 sm:$0xff]  }
 0x201   :  { %1683 = vmatpush1.bf16.msra.mxu1 %v7732_v53  ;;  %v7845_v53 = vld [vmem:[#allocation5 + $0x504] ss:$48 sps:$4 sm:$0xff]  }
 0x202   :  { %1684 = vmatprep.subr.bf16.mxu1 %v7740_v54  ;;  %v7828_v54 = vld [vmem:[#allocation5 + $0x3e8] ss:$48 sps:$4 sm:$0xff]  }
 0x203   :  { %1644 = vmatpush1.bf16.msra.mxu0 %v7735_v47  ;;  %v7824_v47 = vld [vmem:[#allocation5 + $0x38c] ss:$48 sps:$4 sm:$0xff]  }
 0x204   :  { %1645 = vmatprep.subr.bf16.mxu0 %v7743_v48  ;;  %v7831_v48 = vld [vmem:[#allocation5 + $0x440] ss:$48 sps:$4 sm:$0xff]  }
 0x205   :  { %1685 = vmatpush1.bf16.msra.mxu1 %v7738_v57  ;;  %v7851_v57 = vld [vmem:[#allocation5 + $0x564] ss:$48 sps:$4 sm:$0xff]  }
 0x206   :  { %1686 = vmatprep.subr.bf16.mxu1 %v7746_v58  ;;  %v7834_v58 = vld [vmem:[#allocation5 + $0x448] ss:$48 sps:$4 sm:$0xff]  }
 0x207   :  { %1646 = vmatpush1.bf16.msra.mxu0 %v7741_v51  ;;  %v7830_v51 = vld [vmem:[#allocation5 + $0x3ec] ss:$48 sps:$4 sm:$0xff]  }
 0x208   :  { %1647 = vmatprep.subr.bf16.mxu0 %v7749_v52  ;;  %v7837_v52 = vld [vmem:[#allocation5 + $0x4a0] ss:$48 sps:$4 sm:$0xff]  }
 0x209   :  { %1687 = vmatpush1.bf16.msra.mxu1 %v7744_v61  ;;  %v7857_v61 = vld [vmem:[#allocation5 + $0x5c4] ss:$48 sps:$4 sm:$0xff]  }
 0x20a   :  { %1688 = vmatprep.subr.bf16.mxu1 %v7752_v62  ;;  %v7840_v62 = vld [vmem:[#allocation5 + $0x4a8] ss:$48 sps:$4 sm:$0xff]  }
 0x20b   :  { %1648 = vmatpush1.bf16.msra.mxu0 %v7747_v55  ;;  %v7836_v55 = vld [vmem:[#allocation5 + $0x44c] ss:$48 sps:$4 sm:$0xff]  }
 0x20c   :  { %1649 = vmatprep.subr.bf16.mxu0 %v7755_v56  ;;  %v7843_v56 = vld [vmem:[#allocation5 + $0x500] ss:$48 sps:$4 sm:$0xff]  }
 0x20d   :  { %1689 = vmatpush1.bf16.msra.mxu1 %v7750_v2  ;;  %v7863_v2 = vld [vmem:[#allocation8 + $0x4] ss:$16 sps:$4 sm:$0xff]  }
 0x20e   :  { %1690 = vmatprep.subr.bf16.mxu1 %v7758_v3  ;;  %v7846_v3 = vld [vmem:[#allocation5 + $0x508] ss:$48 sps:$4 sm:$0xff]  }
 0x20f   :  { %1650 = vmatpush1.bf16.msra.mxu0 %v7753_v59  ;;  %v7842_v59 = vld [vmem:[#allocation5 + $0x4ac] ss:$48 sps:$4 sm:$0xff]  }
 0x210   :  { %1651 = vmatprep.subr.bf16.mxu0 %v7761_v60  ;;  %v7849_v60 = vld [vmem:[#allocation5 + $0x560] ss:$48 sps:$4 sm:$0xff]  }
 0x211   :  { %1691 = vmatpush1.bf16.msra.mxu1 %v7756_v6  ;;  %v7869_v6 = vld [vmem:[#allocation8 + $0x24] ss:$16 sps:$4 sm:$0xff]  }
 0x212   :  { %1692 = vmatprep.subr.bf16.mxu1 %v7764_v7  ;;  %v7852_v7 = vld [vmem:[#allocation5 + $0x568] ss:$48 sps:$4 sm:$0xff]  }
 0x213   :  { %1652 = vmatpush1.bf16.msra.mxu0 %v7759_v63  ;;  %v7848_v63 = vld [vmem:[#allocation5 + $0x50c] ss:$48 sps:$4 sm:$0xff]  }
 0x214   :  { %1703 = vmatprep.subr.bf16.mxu0 %v7767_v1  ;;  %v7855_v1 = vld [vmem:[#allocation5 + $0x5c0] ss:$48 sps:$4 sm:$0xff]  }
 0x215   :  { %1693 = vmatpush1.bf16.msra.mxu1 %v7762_v10  ;;  %v7875_v10 = vld [vmem:[#allocation8 + $0x44] ss:$16 sps:$4 sm:$0xff]  }
 0x216   :  { %1654 = vmatmul.mubr.bf16.vlgmr.msra.gmra.mrb[4].mxu0 %v9576_v0  ;;  %1744 = vmatprep.subr.bf16.mxu1 %v7770_v11  ;;  %v7858_v11 = vld [vmem:[#allocation5 + $0x5c8] ss:$48 sps:$4 sm:$0xff]  }
 0x217   :  { %1704 = vmatpush1.bf16.msra.mxu0 %v7765_v4  ;;  %1735 = vmatprep.mubr.bf16.mxu0 %v9572_v35  ;;  %v7854_v4 = vld [vmem:[#allocation5 + $0x56c] ss:$48 sps:$4 sm:$0xff]  }
 0x218   :  { %1705 = vmatprep.subr.bf16.mxu0 %v7773_v5  ;;  %1695 = vmatmul.mubr.bf16.vlgmr.msra.gmra.mrb[4].mxu1 %v9576_v0  ;;  %v7861_v5 = vld [vmem:[#allocation8] ss:$16 sps:$4 sm:$0xff]  }
 0x219   :  { %1745 = vmatpush1.bf16.msra.mxu1 %v7768_v14  ;;  %1776 = vmatprep.mubr.bf16.mxu1 %v9572_v35  ;;  %v7801_v35 = vld [vmem:[#allocation5 + $0x260] ss:$48 sps:$4 sm:$0xff]  }
 0x21a   :  { %1746 = vmatprep.subr.bf16.mxu1 %v7776_v15  ;;  %v7881_v14 = vld [vmem:[#allocation8 + $0x64] ss:$16 sps:$4 sm:$0xff]   ;;  %v7864_v15 = vld [vmem:[#allocation8 + $0x8] ss:$16 sps:$4 sm:$0xff]  }
 0x21b   :  { %1706 = vmatpush1.bf16.msra.mxu0 %v7771_v8  ;;  %v7860_v8 = vld [vmem:[#allocation5 + $0x5cc] ss:$48 sps:$4 sm:$0xff]  }
 0x21c   :  { %1707 = vmatprep.subr.bf16.mxu0 %v7779_v9  ;;  %v7867_v9 = vld [vmem:[#allocation8 + $0x20] ss:$16 sps:$4 sm:$0xff]  }
 0x21d   :  { %1747 = vmatpush1.bf16.msra.mxu1 %v7774_v18  ;;  %v7887_v18 = vld [vmem:[#allocation8 + $0x84] ss:$16 sps:$4 sm:$0xff]  }
 0x21e   :  { %1748 = vmatprep.subr.bf16.mxu1 %v7782_v19  ;;  %v7870_v19 = vld [vmem:[#allocation8 + $0x28] ss:$16 sps:$4 sm:$0xff]  }
 0x21f   :  { %1708 = vmatpush1.bf16.msra.mxu0 %v7777_v12  ;;  %v7866_v12 = vld [vmem:[#allocation8 + $0xc] ss:$16 sps:$4 sm:$0xff]  }
 0x220   :  { %1709 = vmatprep.subr.bf16.mxu0 %v7785_v13  ;;  %v7873_v13 = vld [vmem:[#allocation8 + $0x40] ss:$16 sps:$4 sm:$0xff]  }
 0x221   :  { %1749 = vmatpush1.bf16.msra.mxu1 %v7780_v22  ;;  %v7885_v22 = vld [vmem:[#allocation8 + $0x80] ss:$16 sps:$4 sm:$0xff]  }
 0x222   :  { %1750 = vmatprep.subr.bf16.mxu1 %v7788_v23  ;;  %v7884_v23 = vld [vmem:[#allocation8 + $0x6c] ss:$16 sps:$4 sm:$0xff]  }
 0x223   :  { %1710 = vmatpush1.bf16.msra.mxu0 %v7783_v16  ;;  %v7872_v16 = vld [vmem:[#allocation8 + $0x2c] ss:$16 sps:$4 sm:$0xff]  }
 0x224   :  { %1711 = vmatprep.subr.bf16.mxu0 %v7791_v17  ;;  %v7879_v17 = vld [vmem:[#allocation8 + $0x60] ss:$16 sps:$4 sm:$0xff]  }
 0x225   :  { %1751 = vmatpush1.bf16.msra.mxu1 %v7786_v26  ;;  %v7891_v26 = vld [vmem:[#allocation8 + $0xa0] ss:$16 sps:$4 sm:$0xff]  }
 0x226   :  { %1752 = vmatprep.subr.bf16.mxu1 %v7794_v27  ;;  %v7890_v27 = vld [vmem:[#allocation8 + $0x8c] ss:$16 sps:$4 sm:$0xff]  }
 0x227   :  { %1712 = vmatpush1.bf16.msra.mxu0 %v7789_v20  ;;  %v7878_v20 = vld [vmem:[#allocation8 + $0x4c] ss:$16 sps:$4 sm:$0xff]  }
 0x228   :  { %1713 = vmatprep.subr.bf16.mxu0 %v7797_v21  ;;  %v7876_v21 = vld [vmem:[#allocation8 + $0x48] ss:$16 sps:$4 sm:$0xff]  }
 0x229   :  { %1753 = vmatpush1.bf16.msra.mxu1 %v7792_v29  ;;  %v7896_v29 = vld [vmem:[#allocation8 + $0xac] ss:$16 sps:$4 sm:$0xff]  }
 0x22a   :  { %1754 = vmatprep.subr.bf16.mxu1 %v7800_v30  ;;  %v7905_v30 = vld [vmem:[#allocation8 + $0xe4] ss:$16 sps:$4 sm:$0xff]  }
 0x22b   :  { %1714 = vmatpush1.bf16.msra.mxu0 %v7795_v24  ;;  %v7893_v24 = vld [vmem:[#allocation8 + $0xa4] ss:$16 sps:$4 sm:$0xff]  }
 0x22c   :  { %1715 = vmatprep.subr.bf16.mxu0 %v7803_v25  ;;  %v7882_v25 = vld [vmem:[#allocation8 + $0x68] ss:$16 sps:$4 sm:$0xff]  }
 0x22d   :  { %1755 = vmatpush1.bf16.msra.mxu1 %v7798_v33  ;;  %v7894_v33 = vld [vmem:[#allocation8 + $0xa8] ss:$16 sps:$4 sm:$0xff]  }
 0x22e   :  { %1756 = vmatprep.subr.bf16.mxu1 %v7806_v34  ;;  %v7902_v34 = vld [vmem:[#allocation8 + $0xcc] ss:$16 sps:$4 sm:$0xff]  }
 0x22f   :  { %1716 = vmatpush1.bf16.msra.mxu0 %v7801_v35  ;;  %v7888_v35 = vld [vmem:[#allocation8 + $0x88] ss:$16 sps:$4 sm:$0xff]  }
 0x230   :  { %1717 = vmatprep.subr.bf16.mxu0 %v7809_v28  ;;  %v7897_v28 = vld [vmem:[#allocation8 + $0xc0] ss:$16 sps:$4 sm:$0xff]  }
 0x231   :  { %1757 = vmatpush1.bf16.msra.mxu1 %v7804_v38  ;;  %v7908_v38 = vld [vmem:[#allocation8 + $0xec] ss:$16 sps:$4 sm:$0xff]  }
 0x232   :  { %1758 = vmatprep.subr.bf16.mxu1 %v7812_v39  ;;  %v7917_v39 = vld [vmem:[#allocation8 + $0x124] ss:$16 sps:$4 sm:$0xff]  }
 0x233   :  { %1718 = vmatpush1.bf16.msra.mxu0 %v7807_v31  ;;  %v7903_v31 = vld [vmem:[#allocation8 + $0xe0] ss:$16 sps:$4 sm:$0xff]  }
 0x234   :  { %1719 = vmatprep.subr.bf16.mxu0 %v7815_v32  ;;  %v7911_v32 = vld [vmem:[#allocation8 + $0x104] ss:$16 sps:$4 sm:$0xff]  }
 0x235   :  { %1759 = vmatpush1.bf16.msra.mxu1 %v7810_v42  ;;  %v7914_v42 = vld [vmem:[#allocation8 + $0x10c] ss:$16 sps:$4 sm:$0xff]  }
 0x236   :  { %1760 = vmatprep.subr.bf16.mxu1 %v7818_v43  ;;  %v7923_v43 = vld [vmem:[#allocation8 + $0x144] ss:$16 sps:$4 sm:$0xff]  }
 0x237   :  { %1720 = vmatpush1.bf16.msra.mxu0 %v7813_v36  ;;  %v7900_v36 = vld [vmem:[#allocation8 + $0xc8] ss:$16 sps:$4 sm:$0xff]  }
 0x238   :  { %1721 = vmatprep.subr.bf16.mxu0 %v7821_v37  ;;  %v7909_v37 = vld [vmem:[#allocation8 + $0x100] ss:$16 sps:$4 sm:$0xff]  }
 0x239   :  { %1761 = vmatpush1.bf16.msra.mxu1 %v7816_v46  ;;  %v7920_v46 = vld [vmem:[#allocation8 + $0x12c] ss:$16 sps:$4 sm:$0xff]  }
 0x23a   :  { %1762 = vmatprep.subr.bf16.mxu1 %v7824_v47  ;;  %v7929_v47 = vld [vmem:[#allocation8 + $0x164] ss:$16 sps:$4 sm:$0xff]  }
 0x23b   :  { %1722 = vmatpush1.bf16.msra.mxu0 %v7819_v40  ;;  %v7906_v40 = vld [vmem:[#allocation8 + $0xe8] ss:$16 sps:$4 sm:$0xff]  }
 0x23c   :  { %1723 = vmatprep.subr.bf16.mxu0 %v7827_v41  ;;  %v7915_v41 = vld [vmem:[#allocation8 + $0x120] ss:$16 sps:$4 sm:$0xff]  }
 0x23d   :  { %1763 = vmatpush1.bf16.msra.mxu1 %v7822_v50  ;;  %v7926_v50 = vld [vmem:[#allocation8 + $0x14c] ss:$16 sps:$4 sm:$0xff]  }
 0x23e   :  { %1764 = vmatprep.subr.bf16.mxu1 %v7830_v51  ;;  %v7935_v51 = vld [vmem:[#allocation8 + $0x184] ss:$16 sps:$4 sm:$0xff]  }
 0x23f   :  { %1724 = vmatpush1.bf16.msra.mxu0 %v7825_v44  ;;  %v7912_v44 = vld [vmem:[#allocation8 + $0x108] ss:$16 sps:$4 sm:$0xff]  }
 0x240   :  { %1725 = vmatprep.subr.bf16.mxu0 %v7833_v45  ;;  %v7921_v45 = vld [vmem:[#allocation8 + $0x140] ss:$16 sps:$4 sm:$0xff]  }
 0x241   :  { %1765 = vmatpush1.bf16.msra.mxu1 %v7828_v54  ;;  %v7932_v54 = vld [vmem:[#allocation8 + $0x16c] ss:$16 sps:$4 sm:$0xff]  }
 0x242   :  { %1766 = vmatprep.subr.bf16.mxu1 %v7836_v55  ;;  %v7941_v55 = vld [vmem:[#allocation8 + $0x1a4] ss:$16 sps:$4 sm:$0xff]  }
 0x243   :  { %1726 = vmatpush1.bf16.msra.mxu0 %v7831_v48  ;;  %v7918_v48 = vld [vmem:[#allocation8 + $0x128] ss:$16 sps:$4 sm:$0xff]  }
 0x244   :  { %1727 = vmatprep.subr.bf16.mxu0 %v7839_v49  ;;  %v7927_v49 = vld [vmem:[#allocation8 + $0x160] ss:$16 sps:$4 sm:$0xff]  }
 0x245   :  { %1767 = vmatpush1.bf16.msra.mxu1 %v7834_v58  ;;  %v7938_v58 = vld [vmem:[#allocation8 + $0x18c] ss:$16 sps:$4 sm:$0xff]  }
 0x246   :  { %1768 = vmatprep.subr.bf16.mxu1 %v7842_v59  ;;  %v7947_v59 = vld [vmem:[#allocation8 + $0x1c4] ss:$16 sps:$4 sm:$0xff]  }
 0x247   :  { %1728 = vmatpush1.bf16.msra.mxu0 %v7837_v52  ;;  %v7924_v52 = vld [vmem:[#allocation8 + $0x148] ss:$16 sps:$4 sm:$0xff]  }
 0x248   :  { %1729 = vmatprep.subr.bf16.mxu0 %v7845_v53  ;;  %v7933_v53 = vld [vmem:[#allocation8 + $0x180] ss:$16 sps:$4 sm:$0xff]  }
 0x249   :  { %1769 = vmatpush1.bf16.msra.mxu1 %v7840_v62  ;;  %v7944_v62 = vld [vmem:[#allocation8 + $0x1ac] ss:$16 sps:$4 sm:$0xff]  }
 0x24a   :  { %1770 = vmatprep.subr.bf16.mxu1 %v7848_v63  ;;  %v7953_v63 = vld [vmem:[#allocation8 + $0x1e4] ss:$16 sps:$4 sm:$0xff]  }
 0x24b   :  { %1730 = vmatpush1.bf16.msra.mxu0 %v7843_v56  ;;  %v7930_v56 = vld [vmem:[#allocation8 + $0x168] ss:$16 sps:$4 sm:$0xff]  }
 0x24c   :  { %1731 = vmatprep.subr.bf16.mxu0 %v7851_v57  ;;  %v7939_v57 = vld [vmem:[#allocation8 + $0x1a0] ss:$16 sps:$4 sm:$0xff]  }
 0x24d   :  { %1771 = vmatpush1.bf16.msra.mxu1 %v7846_v3  ;;  %v7950_v3 = vld [vmem:[#allocation8 + $0x1cc] ss:$16 sps:$4 sm:$0xff]  }
 0x24e   :  { %1772 = vmatprep.subr.bf16.mxu1 %v7854_v4  ;;  %v7959_v4 = vld [vmem:[#allocation8 + $0x204] ss:$16 sps:$4 sm:$0xff]  }
 0x24f   :  { %1732 = vmatpush1.bf16.msra.mxu0 %v7849_v60  ;;  %v7936_v60 = vld [vmem:[#allocation8 + $0x188] ss:$16 sps:$4 sm:$0xff]  }
 0x250   :  { %1733 = vmatprep.subr.bf16.mxu0 %v7857_v61  ;;  %v7945_v61 = vld [vmem:[#allocation8 + $0x1c0] ss:$16 sps:$4 sm:$0xff]  }
 0x251   :  { %1773 = vmatpush1.bf16.msra.mxu1 %v7852_v7  ;;  %v7954_v7 = vld [vmem:[#allocation8 + $0x1e8] ss:$16 sps:$4 sm:$0xff]  }
 0x252   :  { %1774 = vmatprep.subr.bf16.mxu1 %v7860_v8  ;;  %v7962_v8 = vld [vmem:[#allocation8 + $0x20c] ss:$16 sps:$4 sm:$0xff]  }
 0x253   :  { %1734 = vmatpush1.bf16.msra.mxu0 %v7855_v1  ;;  %v7942_v1 = vld [vmem:[#allocation8 + $0x1a8] ss:$16 sps:$4 sm:$0xff]  }
 0x254   :  { %4135 = vmatprep.subr.bf16.mxu0 %v7863_v2  ;;  %v7951_v2 = vld [vmem:[#allocation8 + $0x1e0] ss:$16 sps:$4 sm:$0xff]  }
 0x255   :  { %1775 = vmatpush1.bf16.msra.mxu1 %v7858_v11 }
 0x256   :  { %1736 = vmatmul.mubr.bf16.vlgmr.msra.gmra.mrb[8].mxu0 %v9576_v0  ;;  %4381 = vmatprep.subr.bf16.mxu1 %v7866_v12  ;;  %v9593_v12 = vld [vmem:[#allocation7] sm:$0xff] }
 0x257   :  { %4136 = vmatpush1.bf16.msra.mxu0 %v7861_v5  ;;  %v7948_v5 = vld [vmem:[#allocation8 + $0x1c8] ss:$16 sps:$4 sm:$0xff]  }
 0x258   :  { %4137 = vmatprep.subr.bf16.mxu0 %v7869_v6  ;;  %1777 = vmatmul.mubr.bf16.vlgmr.msra.gmra.mrb[8].mxu1 %v9576_v0  ;;  %v7899_v0 = vld [vmem:[#allocation8 + $0xc4] ss:$16 sps:$4 sm:$0xff]   ;;  %v7956_v6 = vld [vmem:[#allocation8 + $0x1ec] ss:$16 sps:$4 sm:$0xff]  }
 0x259   :  { %4382 = vmatpush1.bf16.msra.mxu1 %v7864_v15 }
 0x25a   :  { %4383 = vmatprep.subr.bf16.mxu1 %v7872_v16 }
 0x25b   :  { %4138 = vmatpush1.bf16.msra.mxu0 %v7867_v9  ;;  %v519_v9 = vlaneseq }
 0x25c   :  { %4139 = vmatprep.subr.bf16.mxu0 %v7875_v10 }
 0x25d   :  { %4384 = vmatpush1.bf16.msra.mxu1 %v7870_v19  ;;  %v9588_v10 = vshrl.u32 %v519_v9, 7  ;;  %v8019_v9 = vld [vmem:[#allocation8 + $0x344] ss:$16 sps:$4 sm:$0xff]  }
 0x25e   :  { %4385 = vmatprep.subr.bf16.mxu1 %v7878_v20 }
 0x25f   :  { %4140 = vmatpush1.bf16.msra.mxu0 %v7873_v13  ;;  %v9591_v11 = vsub.s32 0, %v9588_v10  ;;  %v9596_v13 = vsub.s32 1, %v9588_v10 }
 0x260   :  { %4141 = vmatprep.subr.bf16.mxu0 %v7881_v14 }
 0x261   :  { %4386 = vmatpush1.bf16.msra.mxu1 %v7876_v21  ;;  %v522_v14 = vrot.slane %v9593_v12, %v9591_v11  ;;  %v526_v15 = vrot.slane %v9593_v12, %v9596_v13 }
 0x262   :  { %4387 = vmatprep.subr.bf16.mxu1 %v7884_v23 }
 0x263   :  { %4142 = vmatpush1.bf16.msra.mxu0 %v7879_v17 }
 0x264   :  { %4143 = vmatprep.subr.bf16.mxu0 %v7887_v18 }
 0x265   :  { %4388 = vmatpush1.bf16.msra.mxu1 %v7882_v25  ;;  %v7960_v25 = vld [vmem:[#allocation8 + $0x208] ss:$16 sps:$4 sm:$0xff]  }
 0x266   :  { %4389 = vmatprep.subr.bf16.mxu1 %v7890_v27 }
 0x267   :  { %4144 = vmatpush1.bf16.msra.mxu0 %v7885_v22 }
 0x268   :  { %4145 = vmatprep.subr.bf16.mxu0 %v7893_v24  ;;  %v7957_v24 = vld [vmem:[#allocation8 + $0x200] ss:$16 sps:$4 sm:$0xff]  }
 0x269   :  { %4390 = vmatpush1.bf16.msra.mxu1 %v7888_v35  ;;  %v7965_v35 = vld [vmem:[#allocation8 + $0x224] ss:$16 sps:$4 sm:$0xff]  }
 0x26a   :  { %4391 = vmatprep.subr.bf16.mxu1 %v7896_v29 }
 0x26b   :  { %4146 = vmatpush1.bf16.msra.mxu0 %v7891_v26  ;;  %v9603_v26 = vsub.s32 3, %v9588_v10 }
 0x26c   :  { %4147 = vmatprep.subr.bf16.mxu0 %v7899_v0 }
 0x26d   :  { %4392 = vmatpush1.bf16.msra.mxu1 %v7894_v33  ;;  %v534_v29 = vrot.slane %v9593_v12, %v9603_v26  ;;  %v7971_v33 = vld [vmem:[#allocation8 + $0x244] ss:$16 sps:$4 sm:$0xff]  }
 0x26e   :  { %4393 = vmatprep.subr.bf16.mxu1 %v7902_v34  ;;  %v7974_v34 = vld [vmem:[#allocation8 + $0x24c] ss:$16 sps:$4 sm:$0xff]  }
 0x26f   :  { %4148 = vmatpush1.bf16.msra.mxu0 %v7897_v28  ;;  %v7968_v28 = vld [vmem:[#allocation8 + $0x22c] ss:$16 sps:$4 sm:$0xff]  }
 0x270   :  { %4149 = vmatprep.subr.bf16.mxu0 %v7905_v30  ;;  %v7963_v30 = vld [vmem:[#allocation8 + $0x220] ss:$16 sps:$4 sm:$0xff]  }
 0x271   :  { %4394 = vmatpush1.bf16.msra.mxu1 %v7900_v36 }
 0x272   :  { %4395 = vmatprep.subr.bf16.mxu1 %v7908_v38 }
 0x273   :  { %4150 = vmatpush1.bf16.msra.mxu0 %v7903_v31  ;;  %v7966_v31 = vld [vmem:[#allocation8 + $0x228] ss:$16 sps:$4 sm:$0xff]  }
 0x274   :  { %4151 = vmatprep.subr.bf16.mxu0 %v7911_v32 }
 0x275   :  { %4396 = vmatpush1.bf16.msra.mxu1 %v7906_v40  ;;  %v7969_v40 = vld [vmem:[#allocation8 + $0x240] ss:$16 sps:$4 sm:$0xff]  }
 0x276   :  { %4397 = vmatprep.subr.bf16.mxu1 %v7914_v42 }
 0x277   :  { %4152 = vmatpush1.bf16.msra.mxu0 %v7909_v37 }
 0x278   :  { %4153 = vmatprep.subr.bf16.mxu0 %v7917_v39 }
 0x279   :  { %4398 = vmatpush1.bf16.msra.mxu1 %v7912_v44  ;;  %v7980_v44 = vld [vmem:[#allocation8 + $0x26c] ss:$16 sps:$4 sm:$0xff]  }
 0x27a   :  { %4399 = vmatprep.subr.bf16.mxu1 %v7920_v46  ;;  %v7975_v46 = vld [vmem:[#allocation8 + $0x260] ss:$16 sps:$4 sm:$0xff]  }
 0x27b   :  { %4154 = vmatpush1.bf16.msra.mxu0 %v7915_v41  ;;  %v7972_v41 = vld [vmem:[#allocation8 + $0x248] ss:$16 sps:$4 sm:$0xff]  }
 0x27c   :  { %4155 = vmatprep.subr.bf16.mxu0 %v7923_v43  ;;  %v7977_v43 = vld [vmem:[#allocation8 + $0x264] ss:$16 sps:$4 sm:$0xff]  }
 0x27d   :  { %4400 = vmatpush1.bf16.msra.mxu1 %v7918_v48  ;;  %v7983_v48 = vld [vmem:[#allocation8 + $0x284] ss:$16 sps:$4 sm:$0xff]  }
 0x27e   :  { %4401 = vmatprep.subr.bf16.mxu1 %v7926_v50  ;;  %v7981_v50 = vld [vmem:[#allocation8 + $0x280] ss:$16 sps:$4 sm:$0xff]  }
 0x27f   :  { %4156 = vmatpush1.bf16.msra.mxu0 %v7921_v45 }
 0x280   :  { %4157 = vmatprep.subr.bf16.mxu0 %v7929_v47  ;;  %v7978_v47 = vld [vmem:[#allocation8 + $0x268] ss:$16 sps:$4 sm:$0xff]  }
 0x281   :  { %4402 = vmatpush1.bf16.msra.mxu1 %v7924_v52  ;;  %v7989_v52 = vld [vmem:[#allocation8 + $0x2a4] ss:$16 sps:$4 sm:$0xff]  }
 0x282   :  { %4403 = vmatprep.subr.bf16.mxu1 %v7932_v54  ;;  %v7987_v54 = vld [vmem:[#allocation8 + $0x2a0] ss:$16 sps:$4 sm:$0xff]  }
 0x283   :  { %4158 = vmatpush1.bf16.msra.mxu0 %v7927_v49  ;;  %v7986_v49 = vld [vmem:[#allocation8 + $0x28c] ss:$16 sps:$4 sm:$0xff]  }
 0x284   :  { %4159 = vmatprep.subr.bf16.mxu0 %v7935_v51  ;;  %v7984_v51 = vld [vmem:[#allocation8 + $0x288] ss:$16 sps:$4 sm:$0xff]  }
 0x285   :  { %4404 = vmatpush1.bf16.msra.mxu1 %v7930_v56  ;;  %v7995_v56 = vld [vmem:[#allocation8 + $0x2c4] ss:$16 sps:$4 sm:$0xff]  }
 0x286   :  { %4405 = vmatprep.subr.bf16.mxu1 %v7938_v58  ;;  %v7993_v58 = vld [vmem:[#allocation8 + $0x2c0] ss:$16 sps:$4 sm:$0xff]  }
 0x287   :  { %4160 = vmatpush1.bf16.msra.mxu0 %v7933_v53  ;;  %v7992_v53 = vld [vmem:[#allocation8 + $0x2ac] ss:$16 sps:$4 sm:$0xff]  }
 0x288   :  { %4161 = vmatprep.subr.bf16.mxu0 %v7941_v55  ;;  %v7990_v55 = vld [vmem:[#allocation8 + $0x2a8] ss:$16 sps:$4 sm:$0xff]  }
 0x289   :  { %4406 = vmatpush1.bf16.msra.mxu1 %v7936_v60  ;;  %v8001_v60 = vld [vmem:[#allocation8 + $0x2e4] ss:$16 sps:$4 sm:$0xff]  }
 0x28a   :  { %4407 = vmatprep.subr.bf16.mxu1 %v7944_v62  ;;  %v7999_v62 = vld [vmem:[#allocation8 + $0x2e0] ss:$16 sps:$4 sm:$0xff]  }
 0x28b   :  { %4162 = vmatpush1.bf16.msra.mxu0 %v7939_v57  ;;  %v7998_v57 = vld [vmem:[#allocation8 + $0x2cc] ss:$16 sps:$4 sm:$0xff]  }
 0x28c   :  { %4163 = vmatprep.subr.bf16.mxu0 %v7947_v59  ;;  %v7996_v59 = vld [vmem:[#allocation8 + $0x2c8] ss:$16 sps:$4 sm:$0xff]  }
 0x28d   :  { %4408 = vmatpush1.bf16.msra.mxu1 %v7942_v1  ;;  %v8007_v1 = vld [vmem:[#allocation8 + $0x304] ss:$16 sps:$4 sm:$0xff]  }
 0x28e   :  { %4409 = vmatprep.subr.bf16.mxu1 %v7950_v3  ;;  %v8005_v3 = vld [vmem:[#allocation8 + $0x300] ss:$16 sps:$4 sm:$0xff]  }
 0x28f   :  { %4164 = vmatpush1.bf16.msra.mxu0 %v7945_v61  ;;  %v8004_v61 = vld [vmem:[#allocation8 + $0x2ec] ss:$16 sps:$4 sm:$0xff]  }
 0x290   :  { %4165 = vmatprep.subr.bf16.mxu0 %v7953_v63  ;;  %v8002_v63 = vld [vmem:[#allocation8 + $0x2e8] ss:$16 sps:$4 sm:$0xff]  }
 0x291   :  { %4410 = vmatpush1.bf16.msra.mxu1 %v7948_v5  ;;  %v8013_v5 = vld [vmem:[#allocation8 + $0x324] ss:$16 sps:$4 sm:$0xff]  }
 0x292   :  { %4411 = vmatprep.subr.bf16.mxu1 %v7956_v6  ;;  %v8016_v6 = vld [vmem:[#allocation8 + $0x32c] ss:$16 sps:$4 sm:$0xff]  }
 0x293   :  { %4166 = vmatpush1.bf16.msra.mxu0 %v7951_v2  ;;  %v8010_v2 = vld [vmem:[#allocation8 + $0x30c] ss:$16 sps:$4 sm:$0xff]  }
 0x294   :  { %4176 = vmatprep.subr.bf16.mxu0 %v7959_v4  ;;  %v8008_v4 = vld [vmem:[#allocation8 + $0x308] ss:$16 sps:$4 sm:$0xff]  }
 0x295   :  { %4412 = vmatpush1.bf16.msra.mxu1 %v7954_v7  ;;  %v8011_v7 = vld [vmem:[#allocation8 + $0x320] ss:$16 sps:$4 sm:$0xff]  }
 0x296   :  { %4422 = vmatprep.subr.bf16.mxu1 %v7962_v8  ;;  %v8014_v8 = vld [vmem:[#allocation8 + $0x328] ss:$16 sps:$4 sm:$0xff]  }
 0x2a9   :  { %v1573_v16 = vpop.f32.mrb[0].mxu0 }
 0x2aa   :  { %v1574_v17 = vadd.f32 %v1573_v16, %v522_v14  ;;  %v1575_v18 = vpop.f32.mrb[1].mxu0  ;;  %v8022_v14 = vld [vmem:[#allocation8 + $0x34c] ss:$16 sps:$4 sm:$0xff]   ;;  %v8020_v16 = vld [vmem:[#allocation8 + $0x348] ss:$16 sps:$4 sm:$0xff]  }
 0x2ab   :  { %v1576_v19 = vadd.f32 %v1575_v18, %v526_v15  ;;  %v1577_v20 = vpop.f32.mrb[2].mxu0  ;;  %v9607_v32 = vpop.f32.mrb[0].mxu1  ;;  %v8017_v15 = vld [vmem:[#allocation8 + $0x340] ss:$16 sps:$4 sm:$0xff]   ;;  %v8028_v18 = vld [vmem:[#allocation8 + $0x36c] ss:$16 sps:$4 sm:$0xff]  }
 0x2ac   :  { %v1785_v21 = vmax.f32 %v1574_v17, 0.0  ;;  %v1578_v22 = vpop.f32.mrb[3].mxu0  ;;  %v1616_v36 = vpop.f32.mrb[1].mxu1  ;;  %v8025_v17 = vld [vmem:[#allocation8 + $0x364] ss:$16 sps:$4 sm:$0xff]  }
 0x2ad   :  { %v1786_v23 = vmax.f32 %v1576_v19, 0.0  ;;  %v1617_v37 = vadd.f32 %v1616_v36, %v534_v29  ;;  %v1618_v38 = vpop.f32.mrb[2].mxu1  ;;  %v8023_v19 = vld [vmem:[#allocation8 + $0x360] ss:$16 sps:$4 sm:$0xff]   ;;  %v8026_v20 = vld [vmem:[#allocation8 + $0x368] ss:$16 sps:$4 sm:$0xff]  }
 0x2ae   :  { %v1797_v0 = vpack.c.bf16 %v1785_v21, %v1785_v21  ;;  %v1619_v39 = vpop.f32.mrb[3].mxu1  ;;  %v8031_v21 = vld [vmem:[#allocation8 + $0x384] ss:$16 sps:$4 sm:$0xff]   ;;  %v8034_v22 = vld [vmem:[#allocation8 + $0x38c] ss:$16 sps:$4 sm:$0xff]  }
 0x2af   :  { %v1798_v27 = vpack.c.bf16 %v1786_v23, %v1786_v23  ;;  %v1788_v42 = vmax.f32 %v1617_v37, 0.0  ;;  %v9610_v23 = vsub.s32 2, %v9588_v10  ;;  %v8038_v29 = vld [vmem:[#allocation8 + $0x3a8] ss:$16 sps:$4 sm:$0xff]   ;;  %v8041_v36 = vld [vmem:[#allocation8 + $0x3c0] ss:$16 sps:$4 sm:$0xff]  }
 0x2b0   :  { %v8044_v37 = vld [vmem:[#allocation8 + $0x3c8] ss:$16 sps:$4 sm:$0xff]   ;;  %v8049_v39 = vld [vmem:[#allocation8 + $0x3e4] ss:$16 sps:$4 sm:$0xff]  }
 0x2b1   :  { %4167 = vmatprep.mubr.bf16.mxu0 %v1798_v27  ;;  %4413 = vmatprep.mubr.bf16.mxu1 %v1798_v27  ;;  %v1800_v45 = vpack.c.bf16 %v1788_v42, %v1788_v42  ;;  %v8037_v27 = vld [vmem:[#allocation8 + $0x3a4] ss:$16 sps:$4 sm:$0xff]  }
 0x2b2   :  { %4168 = vmatmul.mubr.bf16.vlgmr.msra.gmra.mrb[12].mxu0 %v1797_v0  ;;  %4414 = vmatmul.mubr.bf16.vlgmr.msra.gmra.mrb[12].mxu1 %v1797_v0  ;;  %v8040_v0 = vld [vmem:[#allocation8 + $0x3ac] ss:$16 sps:$4 sm:$0xff]  }
 0x2b3   :  { %4177 = vmatpush1.bf16.msra.mxu0 %v7957_v24  ;;  %4423 = vmatpush1.bf16.msra.mxu1 %v7960_v25  ;;  %v8029_v24 = vld [vmem:[#allocation8 + $0x380] ss:$16 sps:$4 sm:$0xff]   ;;  %v8032_v25 = vld [vmem:[#allocation8 + $0x388] ss:$16 sps:$4 sm:$0xff]  }
 0x2b4   :  { %4178 = vmatprep.subr.bf16.mxu0 %v7965_v35  ;;  %4424 = vmatprep.subr.bf16.mxu1 %v7968_v28  ;;  %v530_v35 = vrot.slane %v9593_v12, %v9610_v23  ;;  %v8035_v28 = vld [vmem:[#allocation8 + $0x3a0] ss:$16 sps:$4 sm:$0xff]  }
 0x2b5   :  { %4208 = vmatprep.mubr.bf16.mxu0 %v1800_v45  ;;  %4454 = vmatprep.mubr.bf16.mxu1 %v1800_v45  ;;  %v8050_v45 = vld [vmem:[#allocation8 + $0x3e8] ss:$16 sps:$4 sm:$0xff]  }
 0x2b7   :  { %4179 = vmatpush1.bf16.msra.mxu0 %v7963_v30  ;;  %4425 = vmatpush1.bf16.msra.mxu1 %v7966_v31  ;;  %v541_v30 = vsub.s32 5, %v9588_v10  ;;  %v8043_v31 = vld [vmem:[#allocation8 + $0x3c4] ss:$16 sps:$4 sm:$0xff]  }
 0x2b8   :  { %4180 = vmatprep.subr.bf16.mxu0 %v7971_v33  ;;  %4426 = vmatprep.subr.bf16.mxu1 %v7974_v34  ;;  %v8046_v33 = vld [vmem:[#allocation8 + $0x3cc] ss:$16 sps:$4 sm:$0xff]   ;;  %v1615_v34 = vadd.f32 %v9607_v32, %v530_v35  ;;  %v8103_v35 = vld [vmem:[#allocation8 + $0x504] ss:$16 sps:$4 sm:$0xff]  }
 0x2b9   :  { %v542_v38 = vrot.slane %v9593_v12, %v541_v30  ;;  %v8053_v12 = vld [vmem:[#allocation8 + $0x400] ss:$16 sps:$4 sm:$0xff]   ;;  %v8104_v30 = vld [vmem:[#allocation8 + $0x508] ss:$16 sps:$4 sm:$0xff]  }
 0x2ba   :  { %v1787_v42 = vmax.f32 %v1615_v34, 0.0  ;;  %v8107_v34 = vld [vmem:[#allocation8 + $0x520] ss:$16 sps:$4 sm:$0xff]  }
 0x2bb   :  { %4181 = vmatpush1.bf16.msra.mxu0 %v7969_v40  ;;  %4427 = vmatpush1.bf16.msra.mxu1 %v7972_v41  ;;  %v8052_v40 = vld [vmem:[#allocation8 + $0x3ec] ss:$16 sps:$4 sm:$0xff]  }
 0x2bc   :  { %4182 = vmatprep.subr.bf16.mxu0 %v7977_v43  ;;  %4428 = vmatprep.subr.bf16.mxu1 %v7980_v44  ;;  %v8047_v44 = vld [vmem:[#allocation8 + $0x3e0] ss:$16 sps:$4 sm:$0xff]  }
 0x2bf   :  { %4183 = vmatpush1.bf16.msra.mxu0 %v7975_v46  ;;  %4429 = vmatpush1.bf16.msra.mxu1 %v7978_v47  ;;  %v8055_v47 = vld [vmem:[#allocation8 + $0x404] ss:$16 sps:$4 sm:$0xff]  }
 0x2c0   :  { %4184 = vmatprep.subr.bf16.mxu0 %v7983_v48  ;;  %4430 = vmatprep.subr.bf16.mxu1 %v7986_v49  ;;  %v8058_v48 = vld [vmem:[#allocation8 + $0x40c] ss:$16 sps:$4 sm:$0xff]  }
 0x2c3   :  { %4185 = vmatpush1.bf16.msra.mxu0 %v7981_v50  ;;  %4431 = vmatpush1.bf16.msra.mxu1 %v7984_v51  ;;  %v8056_v50 = vld [vmem:[#allocation8 + $0x408] ss:$16 sps:$4 sm:$0xff]  }
 0x2c4   :  { %4186 = vmatprep.subr.bf16.mxu0 %v7989_v52  ;;  %4432 = vmatprep.subr.bf16.mxu1 %v7992_v53  ;;  %v1799_v52 = vpack.c.bf16 %v1787_v42, %v1787_v42  ;;  %v8061_v53 = vld [vmem:[#allocation8 + $0x424] ss:$16 sps:$4 sm:$0xff]  }
 0x2c5   :  { %v8121_v42 = vld [vmem:[#allocation8 + $0x564] ss:$16 sps:$4 sm:$0xff]  }
 0x2c7   :  { %4187 = vmatpush1.bf16.msra.mxu0 %v7987_v54  ;;  %4433 = vmatpush1.bf16.msra.mxu1 %v7990_v55  ;;  %v8064_v54 = vld [vmem:[#allocation8 + $0x42c] ss:$16 sps:$4 sm:$0xff]   ;;  %v8059_v55 = vld [vmem:[#allocation8 + $0x420] ss:$16 sps:$4 sm:$0xff]  }
 0x2c8   :  { %4188 = vmatprep.subr.bf16.mxu0 %v7995_v56  ;;  %4434 = vmatprep.subr.bf16.mxu1 %v7998_v57  ;;  %v8062_v56 = vld [vmem:[#allocation8 + $0x428] ss:$16 sps:$4 sm:$0xff]  }
 0x2cb   :  { %4189 = vmatpush1.bf16.msra.mxu0 %v7993_v58  ;;  %4435 = vmatpush1.bf16.msra.mxu1 %v7996_v59  ;;  %v8067_v59 = vld [vmem:[#allocation8 + $0x444] ss:$16 sps:$4 sm:$0xff]  }
 0x2cc   :  { %4190 = vmatprep.subr.bf16.mxu0 %v8001_v60  ;;  %4436 = vmatprep.subr.bf16.mxu1 %v8004_v61  ;;  %v8070_v60 = vld [vmem:[#allocation8 + $0x44c] ss:$16 sps:$4 sm:$0xff]  }
 0x2cf   :  { %4191 = vmatpush1.bf16.msra.mxu0 %v7999_v62  ;;  %4437 = vmatpush1.bf16.msra.mxu1 %v8002_v63  ;;  %v8065_v62 = vld [vmem:[#allocation8 + $0x440] ss:$16 sps:$4 sm:$0xff]   ;;  %v8068_v63 = vld [vmem:[#allocation8 + $0x448] ss:$16 sps:$4 sm:$0xff]  }
 0x2d0   :  { %4192 = vmatprep.subr.bf16.mxu0 %v8007_v1  ;;  %4438 = vmatprep.subr.bf16.mxu1 %v8010_v2 }
 0x2d3   :  { %4193 = vmatpush1.bf16.msra.mxu0 %v8005_v3  ;;  %4439 = vmatpush1.bf16.msra.mxu1 %v8008_v4  ;;  %v8073_v3 = vld [vmem:[#allocation8 + $0x464] ss:$16 sps:$4 sm:$0xff]   ;;  %v8076_v4 = vld [vmem:[#allocation8 + $0x46c] ss:$16 sps:$4 sm:$0xff]  }
 0x2d4   :  { %4194 = vmatprep.subr.bf16.mxu0 %v8013_v5  ;;  %4440 = vmatprep.subr.bf16.mxu1 %v8016_v6  ;;  %v8071_v5 = vld [vmem:[#allocation8 + $0x460] ss:$16 sps:$4 sm:$0xff]   ;;  %v8074_v6 = vld [vmem:[#allocation8 + $0x468] ss:$16 sps:$4 sm:$0xff]  }
 0x2d7   :  { %4195 = vmatpush1.bf16.msra.mxu0 %v8011_v7  ;;  %4441 = vmatpush1.bf16.msra.mxu1 %v8014_v8  ;;  %v8079_v7 = vld [vmem:[#allocation8 + $0x484] ss:$16 sps:$4 sm:$0xff]   ;;  %v8082_v8 = vld [vmem:[#allocation8 + $0x48c] ss:$16 sps:$4 sm:$0xff]  }
 0x2d8   :  { %4196 = vmatprep.subr.bf16.mxu0 %v8019_v9  ;;  %4442 = vmatprep.subr.bf16.mxu1 %v8022_v14  ;;  %v8077_v9 = vld [vmem:[#allocation8 + $0x480] ss:$16 sps:$4 sm:$0xff]   ;;  %v8080_v14 = vld [vmem:[#allocation8 + $0x488] ss:$16 sps:$4 sm:$0xff]  }
 0x2db   :  { %4197 = vmatpush1.bf16.msra.mxu0 %v8017_v15  ;;  %4443 = vmatpush1.bf16.msra.mxu1 %v8020_v16  ;;  %v8085_v15 = vld [vmem:[#allocation8 + $0x4a4] ss:$16 sps:$4 sm:$0xff]   ;;  %v8088_v16 = vld [vmem:[#allocation8 + $0x4ac] ss:$16 sps:$4 sm:$0xff]  }
 0x2dc   :  { %4198 = vmatprep.subr.bf16.mxu0 %v8025_v17  ;;  %4444 = vmatprep.subr.bf16.mxu1 %v8028_v18  ;;  %v8083_v17 = vld [vmem:[#allocation8 + $0x4a0] ss:$16 sps:$4 sm:$0xff]   ;;  %v8086_v18 = vld [vmem:[#allocation8 + $0x4a8] ss:$16 sps:$4 sm:$0xff]  }
 0x2df   :  { %4199 = vmatpush1.bf16.msra.mxu0 %v8023_v19  ;;  %4445 = vmatpush1.bf16.msra.mxu1 %v8026_v20  ;;  %v8091_v19 = vld [vmem:[#allocation8 + $0x4c4] ss:$16 sps:$4 sm:$0xff]   ;;  %v8094_v20 = vld [vmem:[#allocation8 + $0x4cc] ss:$16 sps:$4 sm:$0xff]  }
 0x2e0   :  { %4200 = vmatprep.subr.bf16.mxu0 %v8031_v21  ;;  %4446 = vmatprep.subr.bf16.mxu1 %v8034_v22  ;;  %v8089_v21 = vld [vmem:[#allocation8 + $0x4c0] ss:$16 sps:$4 sm:$0xff]   ;;  %v8092_v22 = vld [vmem:[#allocation8 + $0x4c8] ss:$16 sps:$4 sm:$0xff]  }
 0x2e3   :  { %4201 = vmatpush1.bf16.msra.mxu0 %v8029_v24  ;;  %4447 = vmatpush1.bf16.msra.mxu1 %v8032_v25  ;;  %v8097_v24 = vld [vmem:[#allocation8 + $0x4e4] ss:$16 sps:$4 sm:$0xff]   ;;  %v8100_v25 = vld [vmem:[#allocation8 + $0x4ec] ss:$16 sps:$4 sm:$0xff]  }
 0x2e4   :  { %4202 = vmatprep.subr.bf16.mxu0 %v8037_v27  ;;  %4448 = vmatprep.subr.bf16.mxu1 %v8040_v0  ;;  %v8095_v27 = vld [vmem:[#allocation8 + $0x4e0] ss:$16 sps:$4 sm:$0xff]   ;;  %v8098_v0 = vld [vmem:[#allocation8 + $0x4e8] ss:$16 sps:$4 sm:$0xff]  }
 0x2e7   :  { %4203 = vmatpush1.bf16.msra.mxu0 %v8035_v28  ;;  %4449 = vmatpush1.bf16.msra.mxu1 %v8038_v29  ;;  %v8106_v28 = vld [vmem:[#allocation8 + $0x50c] ss:$16 sps:$4 sm:$0xff]   ;;  %v8101_v29 = vld [vmem:[#allocation8 + $0x500] ss:$16 sps:$4 sm:$0xff]  }
 0x2e8   :  { %4204 = vmatprep.subr.bf16.mxu0 %v8043_v31  ;;  %4450 = vmatprep.subr.bf16.mxu1 %v8046_v33  ;;  %v8109_v31 = vld [vmem:[#allocation8 + $0x524] ss:$16 sps:$4 sm:$0xff]   ;;  %v8112_v33 = vld [vmem:[#allocation8 + $0x52c] ss:$16 sps:$4 sm:$0xff]  }
 0x2e9   :  { %v9617_v41 = vpop.f32.mrb[4].mxu0 }
 0x2ea   :  { %v1657_v43 = vpop.f32.mrb[5].mxu0 }
 0x2eb   :  { %4205 = vmatpush1.bf16.msra.mxu0 %v8041_v36  ;;  %4451 = vmatpush1.bf16.msra.mxu1 %v8044_v37  ;;  %v1658_v46 = vadd.f32 %v1657_v43, %v542_v38  ;;  %v1659_v32 = vpop.f32.mrb[6].mxu0  ;;  %v9619_v58 = vpop.f32.mrb[4].mxu1  ;;  %v8110_v36 = vld [vmem:[#allocation8 + $0x528] ss:$16 sps:$4 sm:$0xff]   ;;  %v8115_v37 = vld [vmem:[#allocation8 + $0x544] ss:$16 sps:$4 sm:$0xff]  }
 0x2ec   :  { %4206 = vmatprep.subr.bf16.mxu0 %v8049_v39  ;;  %4452 = vmatprep.subr.bf16.mxu1 %v8052_v40  ;;  %v1660_v49 = vpop.f32.mrb[7].mxu0  ;;  %v9621_v61 = vpop.f32.mrb[5].mxu1  ;;  %v8118_v38 = vld [vmem:[#allocation8 + $0x54c] ss:$16 sps:$4 sm:$0xff]   ;;  %v8113_v39 = vld [vmem:[#allocation8 + $0x540] ss:$16 sps:$4 sm:$0xff]  }
 0x2ed   :  { %v1790_v51 = vmax.f32 %v1658_v46, 0.0  ;;  %v1700_v1 = vpop.f32.mrb[6].mxu1  ;;  %v8116_v40 = vld [vmem:[#allocation8 + $0x548] ss:$16 sps:$4 sm:$0xff]   ;;  %v8124_v43 = vld [vmem:[#allocation8 + $0x56c] ss:$16 sps:$4 sm:$0xff]  }
 0x2ee   :  { %v1701_v2 = vpop.f32.mrb[7].mxu1  ;;  %v8127_v46 = vld [vmem:[#allocation8 + $0x584] ss:$16 sps:$4 sm:$0xff]   ;;  %v8130_v32 = vld [vmem:[#allocation8 + $0x58c] ss:$16 sps:$4 sm:$0xff]   ;;  %v537_v49 = vsub.s32 4, %v9588_v10 }
 0x2ef   :  { %4207 = vmatpush1.bf16.msra.mxu0 %v8047_v44  ;;  %4453 = vmatpush1.bf16.msra.mxu1 %v8050_v45  ;;  %v1802_v57 = vpack.c.bf16 %v1790_v51, %v1790_v51  ;;  %v8119_v44 = vld [vmem:[#allocation8 + $0x560] ss:$16 sps:$4 sm:$0xff]   ;;  %v8122_v45 = vld [vmem:[#allocation8 + $0x568] ss:$16 sps:$4 sm:$0xff]   ;;  %v8145_v1 = vld [vmem:[#allocation8 + $0x5e4] ss:$16 sps:$4 sm:$0xff]  }
 0x2f0   :  { %4217 = vmatprep.subr.bf16.mxu0 %v8055_v47  ;;  %4463 = vmatprep.subr.bf16.mxu1 %v8058_v48  ;;  %v8125_v47 = vld [vmem:[#allocation8 + $0x580] ss:$16 sps:$4 sm:$0xff]   ;;  %v8128_v48 = vld [vmem:[#allocation8 + $0x588] ss:$16 sps:$4 sm:$0xff]   ;;  %v8148_v2 = vld [vmem:[#allocation8 + $0x5ec] ss:$16 sps:$4 sm:$0xff]  }
 0x2f1   :  { %v8131_v51 = vld [vmem:[#allocation8 + $0x5a0] ss:$16 sps:$4 sm:$0xff]  }
 0x2f2   :  { %4209 = vmatmul.mubr.bf16.vlgmr.msra.gmra.mrb[12].mxu0 %v1799_v52  ;;  %4455 = vmatmul.mubr.bf16.vlgmr.msra.gmra.mrb[12].mxu1 %v1799_v52  ;;  %v8134_v52 = vld [vmem:[#allocation8 + $0x5a8] ss:$16 sps:$4 sm:$0xff]  }
 0x2f3   :  { %4218 = vmatpush1.bf16.msra.mxu0 %v8053_v12  ;;  %4464 = vmatpush1.bf16.msra.mxu1 %v8056_v50  ;;  %v8133_v12 = vld [vmem:[#allocation8 + $0x5a4] ss:$16 sps:$4 sm:$0xff]   ;;  %v8136_v50 = vld [vmem:[#allocation8 + $0x5ac] ss:$16 sps:$4 sm:$0xff]  }
 0x2f4   :  { %4219 = vmatprep.subr.bf16.mxu0 %v8061_v53  ;;  %4465 = vmatprep.subr.bf16.mxu1 %v8064_v54  ;;  %v549_v53 = vsub.s32 7, %v9588_v10  ;;  %v9625_v54 = vld [vmem:[#allocation7] sm:$0xff] }
 0x2f5   :  { %4249 = vmatprep.mubr.bf16.mxu0 %v1802_v57  ;;  %4495 = vmatprep.mubr.bf16.mxu1 %v1802_v57  ;;  %v8142_v57 = vld [vmem:[#allocation8 + $0x5cc] ss:$16 sps:$4 sm:$0xff]  }
 0x2f7   :  { %4220 = vmatpush1.bf16.msra.mxu0 %v8059_v55  ;;  %4466 = vmatpush1.bf16.msra.mxu1 %v8062_v56  ;;  %v538_v55 = vrot.slane %v9625_v54, %v537_v49  ;;  %v8139_v56 = vld [vmem:[#allocation8 + $0x5c4] ss:$16 sps:$4 sm:$0xff]   ;;  %v8179_v49 = vld [vmem:[#allocation8 + $0x6a0] ss:$16 sps:$4 sm:$0xff]  }
 0x2f8   :  { %4221 = vmatprep.subr.bf16.mxu0 %v8067_v59  ;;  %4467 = vmatprep.subr.bf16.mxu1 %v8070_v60  ;;  %v8137_v59 = vld [vmem:[#allocation8 + $0x5c0] ss:$16 sps:$4 sm:$0xff]   ;;  %v8140_v60 = vld [vmem:[#allocation8 + $0x5c8] ss:$16 sps:$4 sm:$0xff]  }
 0x2fb   :  { %4222 = vmatpush1.bf16.msra.mxu0 %v8065_v62  ;;  %4468 = vmatpush1.bf16.msra.mxu1 %v8068_v63  ;;  %v550_v62 = vrot.slane %v9625_v54, %v549_v53  ;;  %v1656_v63 = vadd.f32 %v9617_v41, %v538_v55  ;;  %v8154_v41 = vld [vmem:[#allocation8 + $0x60c] ss:$16 sps:$4 sm:$0xff]   ;;  %v8188_v53 = vld [vmem:[#allocation8 + $0x6c8] ss:$16 sps:$4 sm:$0xff]   ;;  %v8193_v55 = vld [vmem:[#allocation8 + $0x6e4] ss:$16 sps:$4 sm:$0xff]  }
 0x2fc   :  { %4223 = vmatprep.subr.bf16.mxu0 %v8073_v3  ;;  %4469 = vmatprep.subr.bf16.mxu1 %v8076_v4  ;;  %v8143_v3 = vld [vmem:[#allocation8 + $0x5e0] ss:$16 sps:$4 sm:$0xff]   ;;  %v8146_v4 = vld [vmem:[#allocation8 + $0x5e8] ss:$16 sps:$4 sm:$0xff]  }
 0x2ff   :  { %4224 = vmatpush1.bf16.msra.mxu0 %v8071_v5  ;;  %4470 = vmatpush1.bf16.msra.mxu1 %v8074_v6  ;;  %v1699_v5 = vadd.f32 %v9621_v61, %v550_v62  ;;  %v8160_v61 = vld [vmem:[#allocation8 + $0x62c] ss:$16 sps:$4 sm:$0xff]  }
 0x300   :  { %4225 = vmatprep.subr.bf16.mxu0 %v8079_v7  ;;  %4471 = vmatprep.subr.bf16.mxu1 %v8082_v8  ;;  %v8202_v62 = vld [vmem:[#allocation8 + $0x70c] ss:$16 sps:$4 sm:$0xff]  }
 0x303   :  { %4226 = vmatpush1.bf16.msra.mxu0 %v8077_v9  ;;  %4472 = vmatpush1.bf16.msra.mxu1 %v8080_v14  ;;  %v1789_v9 = vmax.f32 %v1656_v63, 0.0  ;;  %v8151_v14 = vld [vmem:[#allocation8 + $0x604] ss:$16 sps:$4 sm:$0xff]   ;;  %v8197_v63 = vld [vmem:[#allocation8 + $0x700] ss:$16 sps:$4 sm:$0xff]  }
 0x304   :  { %4227 = vmatprep.subr.bf16.mxu0 %v8085_v15  ;;  %4473 = vmatprep.subr.bf16.mxu1 %v8088_v16  ;;  %v8149_v16 = vld [vmem:[#allocation8 + $0x600] ss:$16 sps:$4 sm:$0xff]  }
 0x307   :  { %4228 = vmatpush1.bf16.msra.mxu0 %v8083_v17  ;;  %4474 = vmatpush1.bf16.msra.mxu1 %v8086_v18  ;;  %v8152_v17 = vld [vmem:[#allocation8 + $0x608] ss:$16 sps:$4 sm:$0xff]   ;;  %v1792_v18 = vmax.f32 %v1699_v5, 0.0 }
 0x308   :  { %4229 = vmatprep.subr.bf16.mxu0 %v8091_v19  ;;  %4475 = vmatprep.subr.bf16.mxu1 %v8094_v20  ;;  %v9635_v19 = vld [vmem:[#allocation7 + $0x8] sm:$0xf]  ;;  %v8157_v20 = vld [vmem:[#allocation8 + $0x624] ss:$16 sps:$4 sm:$0xff]   ;;  %v8206_v5 = vld [vmem:[#allocation8 + $0x728] ss:$16 sps:$4 sm:$0xff]  }
 0x30b   :  { %4230 = vmatpush1.bf16.msra.mxu0 %v8089_v21  ;;  %4476 = vmatpush1.bf16.msra.mxu1 %v8092_v22  ;;  %v1801_v21 = vpack.c.bf16 %v1789_v9, %v1789_v9  ;;  %v562_v22 = vrot.slane %v9635_v19, %v9610_v23  ;;  %v8214_v9 = vld [vmem:[#allocation8 + $0x74c] ss:$16 sps:$4 sm:$0xff]  }
 0x30c   :  { %4231 = vmatprep.subr.bf16.mxu0 %v8097_v24  ;;  %4477 = vmatprep.subr.bf16.mxu1 %v8100_v25  ;;  %v8155_v24 = vld [vmem:[#allocation8 + $0x620] ss:$16 sps:$4 sm:$0xff]   ;;  %v8158_v25 = vld [vmem:[#allocation8 + $0x628] ss:$16 sps:$4 sm:$0xff]  }
 0x30f   :  { %4232 = vmatpush1.bf16.msra.mxu0 %v8095_v27  ;;  %4478 = vmatpush1.bf16.msra.mxu1 %v8098_v0  ;;  %v1804_v27 = vpack.c.bf16 %v1792_v18, %v1792_v18  ;;  %v566_v0 = vrot.slane %v9635_v19, %v9603_v26  ;;  %v8218_v18 = vld [vmem:[#allocation8 + $0x768] ss:$16 sps:$4 sm:$0xff]  }
 0x310   :  { %4233 = vmatprep.subr.bf16.mxu0 %v8103_v35  ;;  %4479 = vmatprep.subr.bf16.mxu1 %v8106_v28  ;;  %v8163_v35 = vld [vmem:[#allocation8 + $0x644] ss:$16 sps:$4 sm:$0xff]   ;;  %v8166_v28 = vld [vmem:[#allocation8 + $0x64c] ss:$16 sps:$4 sm:$0xff]  }
 0x313   :  { %4234 = vmatpush1.bf16.msra.mxu0 %v8101_v29  ;;  %4480 = vmatpush1.bf16.msra.mxu1 %v8104_v30 }
 0x314   :  { %4235 = vmatprep.subr.bf16.mxu0 %v8109_v31  ;;  %4481 = vmatprep.subr.bf16.mxu1 %v8112_v33 }
 0x317   :  { %4236 = vmatpush1.bf16.msra.mxu0 %v8107_v34  ;;  %4482 = vmatpush1.bf16.msra.mxu1 %v8110_v36  ;;  %v8161_v36 = vld [vmem:[#allocation8 + $0x640] ss:$16 sps:$4 sm:$0xff]  }
 0x318   :  { %4237 = vmatprep.subr.bf16.mxu0 %v8115_v37  ;;  %4483 = vmatprep.subr.bf16.mxu1 %v8118_v38  ;;  %v8164_v37 = vld [vmem:[#allocation8 + $0x648] ss:$16 sps:$4 sm:$0xff]  }
 0x31b   :  { %4238 = vmatpush1.bf16.msra.mxu0 %v8113_v39  ;;  %4484 = vmatpush1.bf16.msra.mxu1 %v8116_v40  ;;  %v8169_v39 = vld [vmem:[#allocation8 + $0x664] ss:$16 sps:$4 sm:$0xff]   ;;  %v8172_v40 = vld [vmem:[#allocation8 + $0x66c] ss:$16 sps:$4 sm:$0xff]  }
 0x31c   :  { %4239 = vmatprep.subr.bf16.mxu0 %v8121_v42  ;;  %4485 = vmatprep.subr.bf16.mxu1 %v8124_v43  ;;  %v8167_v42 = vld [vmem:[#allocation8 + $0x660] ss:$16 sps:$4 sm:$0xff]   ;;  %v8170_v43 = vld [vmem:[#allocation8 + $0x668] ss:$16 sps:$4 sm:$0xff]  }
 0x31f   :  { %4240 = vmatpush1.bf16.msra.mxu0 %v8119_v44  ;;  %4486 = vmatpush1.bf16.msra.mxu1 %v8122_v45  ;;  %v8175_v44 = vld [vmem:[#allocation8 + $0x684] ss:$16 sps:$4 sm:$0xff]   ;;  %v8178_v45 = vld [vmem:[#allocation8 + $0x68c] ss:$16 sps:$4 sm:$0xff]  }
 0x320   :  { %4241 = vmatprep.subr.bf16.mxu0 %v8127_v46  ;;  %4487 = vmatprep.subr.bf16.mxu1 %v8130_v32  ;;  %v8173_v46 = vld [vmem:[#allocation8 + $0x680] ss:$16 sps:$4 sm:$0xff]   ;;  %v8176_v32 = vld [vmem:[#allocation8 + $0x688] ss:$16 sps:$4 sm:$0xff]  }
 0x323   :  { %4242 = vmatpush1.bf16.msra.mxu0 %v8125_v47  ;;  %4488 = vmatpush1.bf16.msra.mxu1 %v8128_v48  ;;  %v8181_v47 = vld [vmem:[#allocation8 + $0x6a4] ss:$16 sps:$4 sm:$0xff]   ;;  %v8184_v48 = vld [vmem:[#allocation8 + $0x6ac] ss:$16 sps:$4 sm:$0xff]  }
 0x324   :  { %4243 = vmatprep.subr.bf16.mxu0 %v8133_v12  ;;  %4489 = vmatprep.subr.bf16.mxu1 %v8136_v50  ;;  %v8182_v12 = vld [vmem:[#allocation8 + $0x6a8] ss:$16 sps:$4 sm:$0xff]   ;;  %v8187_v50 = vld [vmem:[#allocation8 + $0x6c4] ss:$16 sps:$4 sm:$0xff]  }
 0x327   :  { %4244 = vmatpush1.bf16.msra.mxu0 %v8131_v51  ;;  %4490 = vmatpush1.bf16.msra.mxu1 %v8134_v52  ;;  %v8190_v51 = vld [vmem:[#allocation8 + $0x6cc] ss:$16 sps:$4 sm:$0xff]   ;;  %v8185_v52 = vld [vmem:[#allocation8 + $0x6c0] ss:$16 sps:$4 sm:$0xff]  }
 0x328   :  { %4245 = vmatprep.subr.bf16.mxu0 %v8139_v56  ;;  %4491 = vmatprep.subr.bf16.mxu1 %v8142_v57  ;;  %v8196_v56 = vld [vmem:[#allocation8 + $0x6ec] ss:$16 sps:$4 sm:$0xff]   ;;  %v8191_v57 = vld [vmem:[#allocation8 + $0x6e0] ss:$16 sps:$4 sm:$0xff]  }
 0x329   :  { %v9631_v6 = vpop.f32.mrb[8].mxu0 }
 0x32a   :  { %v9633_v7 = vpop.f32.mrb[9].mxu0 }
 0x32b   :  { %4246 = vmatpush1.bf16.msra.mxu0 %v8137_v59  ;;  %4492 = vmatpush1.bf16.msra.mxu1 %v8140_v60  ;;  %v1741_v8 = vpop.f32.mrb[10].mxu0  ;;  %v1778_v29 = vpop.f32.mrb[8].mxu1  ;;  %v8194_v59 = vld [vmem:[#allocation8 + $0x6e8] ss:$16 sps:$4 sm:$0xff]   ;;  %v8199_v60 = vld [vmem:[#allocation8 + $0x704] ss:$16 sps:$4 sm:$0xff]  }
 0x32c   :  { %4247 = vmatprep.subr.bf16.mxu0 %v8145_v1  ;;  %4493 = vmatprep.subr.bf16.mxu1 %v8148_v2  ;;  %v1742_v15 = vpop.f32.mrb[11].mxu0  ;;  %v9641_v30 = vadd.f32 %v1778_v29, %v562_v22  ;;  %v1780_v31 = vpop.f32.mrb[9].mxu1  ;;  %v8200_v1 = vld [vmem:[#allocation8 + $0x708] ss:$16 sps:$4 sm:$0xff]   ;;  %v8205_v2 = vld [vmem:[#allocation8 + $0x724] ss:$16 sps:$4 sm:$0xff]  }
 0x32d   :  { %v9643_v33 = vadd.f32 %v1780_v31, %v566_v0  ;;  %v1782_v34 = vpop.f32.mrb[10].mxu1  ;;  %v8211_v8 = vld [vmem:[#allocation8 + $0x744] ss:$16 sps:$4 sm:$0xff]   ;;  %v8224_v22 = vld [vmem:[#allocation8 + $0x788] ss:$16 sps:$4 sm:$0xff]  }
 0x32e   :  { %v1783_v38 = vpop.f32.mrb[11].mxu1  ;;  %v8217_v15 = vld [vmem:[#allocation8 + $0x764] ss:$16 sps:$4 sm:$0xff]   ;;  %v8227_v0 = vld [vmem:[#allocation8 + $0x7a0] ss:$16 sps:$4 sm:$0xff]   ;;  %v558_v34 = vrot.slane %v9635_v19, %v9596_v13 }
 0x32f   :  { %4248 = vmatpush1.bf16.msra.mxu0 %v8143_v3  ;;  %4494 = vmatpush1.bf16.msra.mxu1 %v8146_v4  ;;  %v8208_v3 = vld [vmem:[#allocation8 + $0x72c] ss:$16 sps:$4 sm:$0xff]   ;;  %v8203_v4 = vld [vmem:[#allocation8 + $0x720] ss:$16 sps:$4 sm:$0xff]   ;;  %v8235_v29 = vld [vmem:[#allocation8 + $0x7c4] ss:$16 sps:$4 sm:$0xff]  }
 0x330   :  { %4258 = vmatprep.subr.bf16.mxu0 %v8151_v14  ;;  %4504 = vmatprep.subr.bf16.mxu1 %v8154_v41  ;;  %v8209_v14 = vld [vmem:[#allocation8 + $0x740] ss:$16 sps:$4 sm:$0xff]   ;;  %v8212_v41 = vld [vmem:[#allocation8 + $0x748] ss:$16 sps:$4 sm:$0xff]   ;;  %v8238_v31 = vld [vmem:[#allocation8 + $0x7cc] ss:$16 sps:$4 sm:$0xff]  }
 0x331   :  { %v8241_v38 = vld [vmem:[#allocation8 + $0x7e4] ss:$16 sps:$4 sm:$0xff]  }
 0x332   :  { %4250 = vmatmul.mubr.bf16.vlgmr.msra.gmra.mrb[12].mxu0 %v1801_v21  ;;  %4496 = vmatmul.mubr.bf16.vlgmr.msra.gmra.mrb[12].mxu1 %v1801_v21  ;;  %v8221_v21 = vld [vmem:[#allocation8 + $0x780] ss:$16 sps:$4 sm:$0xff]  }
 0x333   :  { %4259 = vmatpush1.bf16.msra.mxu0 %v8149_v16  ;;  %4505 = vmatpush1.bf16.msra.mxu1 %v8152_v17  ;;  %v8220_v16 = vld [vmem:[#allocation8 + $0x76c] ss:$16 sps:$4 sm:$0xff]   ;;  %v8215_v17 = vld [vmem:[#allocation8 + $0x760] ss:$16 sps:$4 sm:$0xff]  }
 0x334   :  { %4260 = vmatprep.subr.bf16.mxu0 %v8157_v20  ;;  %4506 = vmatprep.subr.bf16.mxu1 %v8160_v61  ;;  %v8223_v20 = vld [vmem:[#allocation8 + $0x784] ss:$16 sps:$4 sm:$0xff]   ;;  %v8226_v61 = vld [vmem:[#allocation8 + $0x78c] ss:$16 sps:$4 sm:$0xff]  }
 0x335   :  { %4290 = vmatprep.mubr.bf16.mxu0 %v1804_v27  ;;  %4536 = vmatprep.mubr.bf16.mxu1 %v1804_v27  ;;  %v8232_v27 = vld [vmem:[#allocation8 + $0x7ac] ss:$16 sps:$4 sm:$0xff]  }
 0x337   :  { %4261 = vmatpush1.bf16.msra.mxu0 %v8155_v24  ;;  %4507 = vmatpush1.bf16.msra.mxu1 %v8158_v25  ;;  %v545_v24 = vsub.s32 6, %v9588_v10  ;;  %v8229_v25 = vld [vmem:[#allocation8 + $0x7a4] ss:$16 sps:$4 sm:$0xff]  }
 0x338   :  { %4262 = vmatprep.subr.bf16.mxu0 %v8163_v35  ;;  %4508 = vmatprep.subr.bf16.mxu1 %v8166_v28  ;;  %v8230_v35 = vld [vmem:[#allocation8 + $0x7a8] ss:$16 sps:$4 sm:$0xff]  }
 0x339   :  { %v546_v28 = vrot.slane %v9625_v54, %v545_v24  ;;  %v8239_v54 = vld [vmem:[#allocation8 + $0x7e0] ss:$16 sps:$4 sm:$0xff]   ;;  %v8296_v24 = vld [vmem:[#allocation8 + $0x908] ss:$16 sps:$4 sm:$0xff]  }
 0x33b   :  { %4263 = vmatpush1.bf16.msra.mxu0 %v8161_v36  ;;  %4509 = vmatpush1.bf16.msra.mxu1 %v8164_v37  ;;  %v8233_v36 = vld [vmem:[#allocation8 + $0x7c0] ss:$16 sps:$4 sm:$0xff]   ;;  %v8236_v37 = vld [vmem:[#allocation8 + $0x7c8] ss:$16 sps:$4 sm:$0xff]   ;;  %v1697_v10 = vadd.f32 %v9619_v58, %v546_v28  ;;  %v8253_v58 = vld [vmem:[#allocation8 + $0x824] ss:$16 sps:$4 sm:$0xff]  }
 0x33c   :  { %4264 = vmatprep.subr.bf16.mxu0 %v8169_v39  ;;  %4510 = vmatprep.subr.bf16.mxu1 %v8172_v40  ;;  %v8244_v39 = vld [vmem:[#allocation8 + $0x7ec] ss:$16 sps:$4 sm:$0xff]   ;;  %v1740_v40 = vadd.f32 %v9633_v7, %v558_v34  ;;  %v8307_v28 = vld [vmem:[#allocation8 + $0x944] ss:$16 sps:$4 sm:$0xff]   ;;  %v8308_v34 = vld [vmem:[#allocation8 + $0x948] ss:$16 sps:$4 sm:$0xff]  }
 0x33d   :  { %v8256_v7 = vld [vmem:[#allocation8 + $0x82c] ss:$16 sps:$4 sm:$0xff]  }
 0x33f   :  { %4265 = vmatpush1.bf16.msra.mxu0 %v8167_v42  ;;  %4511 = vmatpush1.bf16.msra.mxu1 %v8170_v43  ;;  %v8242_v42 = vld [vmem:[#allocation8 + $0x7e8] ss:$16 sps:$4 sm:$0xff]   ;;  %v1791_v43 = vmax.f32 %v1697_v10, 0.0  ;;  %v8311_v10 = vld [vmem:[#allocation8 + $0x960] ss:$16 sps:$4 sm:$0xff]  }
 0x340   :  { %4266 = vmatprep.subr.bf16.mxu0 %v8175_v44  ;;  %4512 = vmatprep.subr.bf16.mxu1 %v8178_v45  ;;  %v8247_v44 = vld [vmem:[#allocation8 + $0x804] ss:$16 sps:$4 sm:$0xff]   ;;  %v8250_v45 = vld [vmem:[#allocation8 + $0x80c] ss:$16 sps:$4 sm:$0xff]  }
 0x343   :  { %4267 = vmatpush1.bf16.msra.mxu0 %v8173_v46  ;;  %4513 = vmatpush1.bf16.msra.mxu1 %v8176_v32  ;;  %v1794_v46 = vmax.f32 %v1740_v40, 0.0  ;;  %v8245_v32 = vld [vmem:[#allocation8 + $0x800] ss:$16 sps:$4 sm:$0xff]   ;;  %v8322_v40 = vld [vmem:[#allocation8 + $0x98c] ss:$16 sps:$4 sm:$0xff]  }
 0x344   :  { %4268 = vmatprep.subr.bf16.mxu0 %v8181_v47  ;;  %4514 = vmatprep.subr.bf16.mxu1 %v8184_v48  ;;  %v8248_v47 = vld [vmem:[#allocation8 + $0x808] ss:$16 sps:$4 sm:$0xff]   ;;  %v1803_v48 = vpack.c.bf16 %v1791_v43, %v1791_v43  ;;  %v8325_v43 = vld [vmem:[#allocation8 + $0x9a4] ss:$16 sps:$4 sm:$0xff]  }
 0x347   :  { %4269 = vmatpush1.bf16.msra.mxu0 %v8179_v49  ;;  %4515 = vmatpush1.bf16.msra.mxu1 %v8182_v12  ;;  %v1806_v49 = vpack.c.bf16 %v1794_v46, %v1794_v46  ;;  %v8251_v12 = vld [vmem:[#allocation8 + $0x820] ss:$16 sps:$4 sm:$0xff]   ;;  %v554_v46 = vrot.slane %v9635_v19, %v9591_v11  ;;  %v8338_v19 = vld [vmem:[#allocation8 + $0x9e8] ss:$16 sps:$4 sm:$0xff]  }
 0x348   :  { %4270 = vmatprep.subr.bf16.mxu0 %v8187_v50  ;;  %4516 = vmatprep.subr.bf16.mxu1 %v8190_v51  ;;  %v8254_v50 = vld [vmem:[#allocation8 + $0x828] ss:$16 sps:$4 sm:$0xff]   ;;  %v8259_v51 = vld [vmem:[#allocation8 + $0x844] ss:$16 sps:$4 sm:$0xff]  }
 0x34b   :  { %4271 = vmatpush1.bf16.msra.mxu0 %v8185_v52  ;;  %4517 = vmatpush1.bf16.msra.mxu1 %v8188_v53  ;;  %v8262_v52 = vld [vmem:[#allocation8 + $0x84c] ss:$16 sps:$4 sm:$0xff]   ;;  %v8257_v53 = vld [vmem:[#allocation8 + $0x840] ss:$16 sps:$4 sm:$0xff]  }
 0x34c   :  { %4272 = vmatprep.subr.bf16.mxu0 %v8193_v55  ;;  %4518 = vmatprep.subr.bf16.mxu1 %v8196_v56  ;;  %v8260_v55 = vld [vmem:[#allocation8 + $0x848] ss:$16 sps:$4 sm:$0xff]   ;;  %v8265_v56 = vld [vmem:[#allocation8 + $0x864] ss:$16 sps:$4 sm:$0xff]  }
 0x34f   :  { %4273 = vmatpush1.bf16.msra.mxu0 %v8191_v57  ;;  %4519 = vmatpush1.bf16.msra.mxu1 %v8194_v59  ;;  %v8268_v57 = vld [vmem:[#allocation8 + $0x86c] ss:$16 sps:$4 sm:$0xff]   ;;  %v8263_v59 = vld [vmem:[#allocation8 + $0x860] ss:$16 sps:$4 sm:$0xff]  }
 0x350   :  { %4274 = vmatprep.subr.bf16.mxu0 %v8199_v60  ;;  %4520 = vmatprep.subr.bf16.mxu1 %v8202_v62  ;;  %v8266_v60 = vld [vmem:[#allocation8 + $0x868] ss:$16 sps:$4 sm:$0xff]   ;;  %v8271_v62 = vld [vmem:[#allocation8 + $0x884] ss:$16 sps:$4 sm:$0xff]  }
 0x353   :  { %4275 = vmatpush1.bf16.msra.mxu0 %v8197_v63  ;;  %4521 = vmatpush1.bf16.msra.mxu1 %v8200_v1  ;;  %v8274_v63 = vld [vmem:[#allocation8 + $0x88c] ss:$16 sps:$4 sm:$0xff]   ;;  %v8269_v1 = vld [vmem:[#allocation8 + $0x880] ss:$16 sps:$4 sm:$0xff]  }
 0x354   :  { %4276 = vmatprep.subr.bf16.mxu0 %v8205_v2  ;;  %4522 = vmatprep.subr.bf16.mxu1 %v8208_v3  ;;  %v8272_v2 = vld [vmem:[#allocation8 + $0x888] ss:$16 sps:$4 sm:$0xff]   ;;  %v8277_v3 = vld [vmem:[#allocation8 + $0x8a4] ss:$16 sps:$4 sm:$0xff]  }
 0x357   :  { %4277 = vmatpush1.bf16.msra.mxu0 %v8203_v4  ;;  %4523 = vmatpush1.bf16.msra.mxu1 %v8206_v5  ;;  %v8280_v4 = vld [vmem:[#allocation8 + $0x8ac] ss:$16 sps:$4 sm:$0xff]   ;;  %v8275_v5 = vld [vmem:[#allocation8 + $0x8a0] ss:$16 sps:$4 sm:$0xff]  }
 0x358   :  { %4278 = vmatprep.subr.bf16.mxu0 %v8211_v8  ;;  %4524 = vmatprep.subr.bf16.mxu1 %v8214_v9  ;;  %v8278_v8 = vld [vmem:[#allocation8 + $0x8a8] ss:$16 sps:$4 sm:$0xff]   ;;  %v8283_v9 = vld [vmem:[#allocation8 + $0x8c4] ss:$16 sps:$4 sm:$0xff]  }
 0x35b   :  { %4279 = vmatpush1.bf16.msra.mxu0 %v8209_v14  ;;  %4525 = vmatpush1.bf16.msra.mxu1 %v8212_v41  ;;  %v8286_v14 = vld [vmem:[#allocation8 + $0x8cc] ss:$16 sps:$4 sm:$0xff]   ;;  %v8281_v41 = vld [vmem:[#allocation8 + $0x8c0] ss:$16 sps:$4 sm:$0xff]  }
 0x35c   :  { %4280 = vmatprep.subr.bf16.mxu0 %v8217_v15  ;;  %4526 = vmatprep.subr.bf16.mxu1 %v8220_v16  ;;  %v8284_v15 = vld [vmem:[#allocation8 + $0x8c8] ss:$16 sps:$4 sm:$0xff]   ;;  %v8289_v16 = vld [vmem:[#allocation8 + $0x8e4] ss:$16 sps:$4 sm:$0xff]  }
 0x35f   :  { %4281 = vmatpush1.bf16.msra.mxu0 %v8215_v17  ;;  %4527 = vmatpush1.bf16.msra.mxu1 %v8218_v18  ;;  %v8292_v17 = vld [vmem:[#allocation8 + $0x8ec] ss:$16 sps:$4 sm:$0xff]   ;;  %v8287_v18 = vld [vmem:[#allocation8 + $0x8e0] ss:$16 sps:$4 sm:$0xff]  }
 0x360   :  { %4282 = vmatprep.subr.bf16.mxu0 %v8223_v20  ;;  %4528 = vmatprep.subr.bf16.mxu1 %v8226_v61  ;;  %v8290_v20 = vld [vmem:[#allocation8 + $0x8e8] ss:$16 sps:$4 sm:$0xff]   ;;  %v8295_v61 = vld [vmem:[#allocation8 + $0x904] ss:$16 sps:$4 sm:$0xff]  }
 0x363   :  { %4283 = vmatpush1.bf16.msra.mxu0 %v8221_v21  ;;  %4529 = vmatpush1.bf16.msra.mxu1 %v8224_v22  ;;  %v8298_v21 = vld [vmem:[#allocation8 + $0x90c] ss:$16 sps:$4 sm:$0xff]   ;;  %v8293_v22 = vld [vmem:[#allocation8 + $0x900] ss:$16 sps:$4 sm:$0xff]  }
 0x364   :  { %4284 = vmatprep.subr.bf16.mxu0 %v8229_v25  ;;  %4530 = vmatprep.subr.bf16.mxu1 %v8232_v27  ;;  %v8301_v25 = vld [vmem:[#allocation8 + $0x924] ss:$16 sps:$4 sm:$0xff]   ;;  %v8304_v27 = vld [vmem:[#allocation8 + $0x92c] ss:$16 sps:$4 sm:$0xff]  }
 0x367   :  { %4285 = vmatpush1.bf16.msra.mxu0 %v8227_v0  ;;  %4531 = vmatpush1.bf16.msra.mxu1 %v8230_v35  ;;  %v8299_v0 = vld [vmem:[#allocation8 + $0x920] ss:$16 sps:$4 sm:$0xff]   ;;  %v8302_v35 = vld [vmem:[#allocation8 + $0x928] ss:$16 sps:$4 sm:$0xff]  }
 0x368   :  { %4286 = vmatprep.subr.bf16.mxu0 %v8235_v29  ;;  %4532 = vmatprep.subr.bf16.mxu1 %v8238_v31  ;;  %v8310_v29 = vld [vmem:[#allocation8 + $0x94c] ss:$16 sps:$4 sm:$0xff]   ;;  %v8305_v31 = vld [vmem:[#allocation8 + $0x940] ss:$16 sps:$4 sm:$0xff]  }
 0x36b   :  { %4287 = vmatpush1.bf16.msra.mxu0 %v8233_v36  ;;  %4533 = vmatpush1.bf16.msra.mxu1 %v8236_v37  ;;  %v8313_v36 = vld [vmem:[#allocation8 + $0x964] ss:$16 sps:$4 sm:$0xff]   ;;  %v8316_v37 = vld [vmem:[#allocation8 + $0x96c] ss:$16 sps:$4 sm:$0xff]  }
 0x36c   :  { %4288 = vmatprep.subr.bf16.mxu0 %v8241_v38  ;;  %4534 = vmatprep.subr.bf16.mxu1 %v8244_v39  ;;  %v8314_v38 = vld [vmem:[#allocation8 + $0x968] ss:$16 sps:$4 sm:$0xff]   ;;  %v8319_v39 = vld [vmem:[#allocation8 + $0x984] ss:$16 sps:$4 sm:$0xff]  }
 0x36f   :  { %4289 = vmatpush1.bf16.msra.mxu0 %v8239_v54  ;;  %4535 = vmatpush1.bf16.msra.mxu1 %v8242_v42  ;;  %v8317_v54 = vld [vmem:[#allocation8 + $0x980] ss:$16 sps:$4 sm:$0xff]   ;;  %v8320_v42 = vld [vmem:[#allocation8 + $0x988] ss:$16 sps:$4 sm:$0xff]  }
 0x370   :  { %4299 = vmatprep.subr.bf16.mxu0 %v8247_v44  ;;  %4545 = vmatprep.subr.bf16.mxu1 %v8250_v45  ;;  %v8328_v44 = vld [vmem:[#allocation8 + $0x9ac] ss:$16 sps:$4 sm:$0xff]   ;;  %v8323_v45 = vld [vmem:[#allocation8 + $0x9a0] ss:$16 sps:$4 sm:$0xff]  }
 0x372   :  { %4291 = vmatmul.mubr.bf16.vlgmr.msra.gmra.mrb[12].mxu0 %v1803_v48  ;;  %4537 = vmatmul.mubr.bf16.vlgmr.msra.gmra.mrb[12].mxu1 %v1803_v48  ;;  %v8329_v48 = vld [vmem:[#allocation8 + $0x9c0] ss:$16 sps:$4 sm:$0xff]  }
 0x373   :  { %4300 = vmatpush1.bf16.msra.mxu0 %v8245_v32  ;;  %4331 = vmatprep.mubr.bf16.mxu0 %v1806_v49  ;;  %v8326_v32 = vld [vmem:[#allocation8 + $0x9a8] ss:$16 sps:$4 sm:$0xff]  }
 0x374   :  { %4546 = vmatpush1.bf16.msra.mxu1 %v8248_v47  ;;  %4577 = vmatprep.mubr.bf16.mxu1 %v1806_v49  ;;  %v8331_v47 = vld [vmem:[#allocation8 + $0x9c4] ss:$16 sps:$4 sm:$0xff]   ;;  %v1738_v49 = vadd.f32 %v9631_v6, %v554_v46 }
 0x375   :  { %4301 = vmatprep.subr.bf16.mxu0 %v8253_v58  ;;  %4547 = vmatprep.subr.bf16.mxu1 %v8256_v7  ;;  %v8334_v58 = vld [vmem:[#allocation8 + $0x9cc] ss:$16 sps:$4 sm:$0xff]   ;;  %v8332_v7 = vld [vmem:[#allocation8 + $0x9c8] ss:$16 sps:$4 sm:$0xff]   ;;  %v8409_v46 = vld [vmem:[#allocation8 + $0xb64] ss:$16 sps:$4 sm:$0xff]  }
 0x377   :  { %4302 = vmatpush1.bf16.msra.mxu0 %v8251_v12  ;;  %v8337_v12 = vld [vmem:[#allocation8 + $0x9e4] ss:$16 sps:$4 sm:$0xff]  }
 0x378   :  { %4548 = vmatpush1.bf16.msra.mxu1 %v8254_v50  ;;  %4303 = vmatprep.subr.bf16.mxu0 %v8259_v51  ;;  %v8340_v50 = vld [vmem:[#allocation8 + $0x9ec] ss:$16 sps:$4 sm:$0xff]   ;;  %v8335_v51 = vld [vmem:[#allocation8 + $0x9e0] ss:$16 sps:$4 sm:$0xff]  }
 0x379   :  { %4549 = vmatprep.subr.bf16.mxu1 %v8262_v52  ;;  %v1793_v52 = vmax.f32 %v1738_v49, 0.0  ;;  %v8418_v49 = vld [vmem:[#allocation8 + $0xb8c] ss:$16 sps:$4 sm:$0xff]  }
 0x37b   :  { %4304 = vmatpush1.bf16.msra.mxu0 %v8257_v53  ;;  %v8343_v53 = vld [vmem:[#allocation8 + $0xa04] ss:$16 sps:$4 sm:$0xff]   ;;  %v1805_v6 = vpack.c.bf16 %v1793_v52, %v1793_v52  ;;  %v8419_v52 = vld [vmem:[#allocation8 + $0xba0] ss:$16 sps:$4 sm:$0xff]  }
 0x37c   :  { %4550 = vmatpush1.bf16.msra.mxu1 %v8260_v55  ;;  %4305 = vmatprep.subr.bf16.mxu0 %v8265_v56  ;;  %v8346_v55 = vld [vmem:[#allocation8 + $0xa0c] ss:$16 sps:$4 sm:$0xff]   ;;  %v1796_v56 = vmax.f32 %v9643_v33, 0.0 }
 0x37d   :  { %4551 = vmatprep.subr.bf16.mxu1 %v8268_v57  ;;  %v8341_v57 = vld [vmem:[#allocation8 + $0xa00] ss:$16 sps:$4 sm:$0xff]   ;;  %v8358_v33 = vld [vmem:[#allocation8 + $0xa4c] ss:$16 sps:$4 sm:$0xff]  }
 0x37f   :  { %4306 = vmatpush1.bf16.msra.mxu0 %v8263_v59  ;;  %v8344_v59 = vld [vmem:[#allocation8 + $0xa08] ss:$16 sps:$4 sm:$0xff]  }
 0x380   :  { %4552 = vmatpush1.bf16.msra.mxu1 %v8266_v60  ;;  %4307 = vmatprep.subr.bf16.mxu0 %v8271_v62  ;;  %v8349_v60 = vld [vmem:[#allocation8 + $0xa24] ss:$16 sps:$4 sm:$0xff]   ;;  %v1808_v62 = vpack.c.bf16 %v1796_v56, %v1796_v56  ;;  %v8425_v56 = vld [vmem:[#allocation8 + $0xbc0] ss:$16 sps:$4 sm:$0xff]  }
 0x381   :  { %4553 = vmatprep.subr.bf16.mxu1 %v8274_v63  ;;  %v8352_v63 = vld [vmem:[#allocation8 + $0xa2c] ss:$16 sps:$4 sm:$0xff]  }
 0x383   :  { %4308 = vmatpush1.bf16.msra.mxu0 %v8269_v1  ;;  %v8347_v1 = vld [vmem:[#allocation8 + $0xa20] ss:$16 sps:$4 sm:$0xff]  }
 0x384   :  { %4554 = vmatpush1.bf16.msra.mxu1 %v8272_v2  ;;  %4309 = vmatprep.subr.bf16.mxu0 %v8277_v3  ;;  %v8350_v2 = vld [vmem:[#allocation8 + $0xa28] ss:$16 sps:$4 sm:$0xff]   ;;  %v8355_v3 = vld [vmem:[#allocation8 + $0xa44] ss:$16 sps:$4 sm:$0xff]  }
 0x385   :  { %4555 = vmatprep.subr.bf16.mxu1 %v8280_v4  ;;  %v8353_v4 = vld [vmem:[#allocation8 + $0xa40] ss:$16 sps:$4 sm:$0xff]  }
 0x387   :  { %4310 = vmatpush1.bf16.msra.mxu0 %v8275_v5  ;;  %v8356_v5 = vld [vmem:[#allocation8 + $0xa48] ss:$16 sps:$4 sm:$0xff]  }
 0x388   :  { %4556 = vmatpush1.bf16.msra.mxu1 %v8278_v8  ;;  %4311 = vmatprep.subr.bf16.mxu0 %v8283_v9  ;;  %v8361_v8 = vld [vmem:[#allocation8 + $0xa64] ss:$16 sps:$4 sm:$0xff]   ;;  %v8364_v9 = vld [vmem:[#allocation8 + $0xa6c] ss:$16 sps:$4 sm:$0xff]  }
 0x389   :  { %4557 = vmatprep.subr.bf16.mxu1 %v8286_v14  ;;  %v8359_v14 = vld [vmem:[#allocation8 + $0xa60] ss:$16 sps:$4 sm:$0xff]  }
 0x38b   :  { %4312 = vmatpush1.bf16.msra.mxu0 %v8281_v41  ;;  %v8362_v41 = vld [vmem:[#allocation8 + $0xa68] ss:$16 sps:$4 sm:$0xff]  }
 0x38c   :  { %4558 = vmatpush1.bf16.msra.mxu1 %v8284_v15  ;;  %4313 = vmatprep.subr.bf16.mxu0 %v8289_v16  ;;  %v8367_v15 = vld [vmem:[#allocation8 + $0xa84] ss:$16 sps:$4 sm:$0xff]   ;;  %v8370_v16 = vld [vmem:[#allocation8 + $0xa8c] ss:$16 sps:$4 sm:$0xff]  }
 0x38d   :  { %4559 = vmatprep.subr.bf16.mxu1 %v8292_v17  ;;  %v8365_v17 = vld [vmem:[#allocation8 + $0xa80] ss:$16 sps:$4 sm:$0xff]  }
 0x38f   :  { %4314 = vmatpush1.bf16.msra.mxu0 %v8287_v18  ;;  %v8368_v18 = vld [vmem:[#allocation8 + $0xa88] ss:$16 sps:$4 sm:$0xff]  }
 0x390   :  { %4560 = vmatpush1.bf16.msra.mxu1 %v8290_v20  ;;  %4315 = vmatprep.subr.bf16.mxu0 %v8295_v61  ;;  %v8373_v20 = vld [vmem:[#allocation8 + $0xaa4] ss:$16 sps:$4 sm:$0xff]   ;;  %v8376_v61 = vld [vmem:[#allocation8 + $0xaac] ss:$16 sps:$4 sm:$0xff]  }
 0x391   :  { %4561 = vmatprep.subr.bf16.mxu1 %v8298_v21  ;;  %v8371_v21 = vld [vmem:[#allocation8 + $0xaa0] ss:$16 sps:$4 sm:$0xff]  }
 0x393   :  { %4316 = vmatpush1.bf16.msra.mxu0 %v8293_v22  ;;  %v8374_v22 = vld [vmem:[#allocation8 + $0xaa8] ss:$16 sps:$4 sm:$0xff]  }
 0x394   :  { %4562 = vmatpush1.bf16.msra.mxu1 %v8296_v24  ;;  %4317 = vmatprep.subr.bf16.mxu0 %v8301_v25  ;;  %v8379_v24 = vld [vmem:[#allocation8 + $0xac4] ss:$16 sps:$4 sm:$0xff]   ;;  %v8382_v25 = vld [vmem:[#allocation8 + $0xacc] ss:$16 sps:$4 sm:$0xff]  }
 0x395   :  { %4563 = vmatprep.subr.bf16.mxu1 %v8304_v27  ;;  %v8377_v27 = vld [vmem:[#allocation8 + $0xac0] ss:$16 sps:$4 sm:$0xff]  }
 0x397   :  { %4318 = vmatpush1.bf16.msra.mxu0 %v8299_v0  ;;  %v8380_v0 = vld [vmem:[#allocation8 + $0xac8] ss:$16 sps:$4 sm:$0xff]  }
 0x398   :  { %4564 = vmatpush1.bf16.msra.mxu1 %v8302_v35  ;;  %4319 = vmatprep.subr.bf16.mxu0 %v8307_v28  ;;  %v8385_v35 = vld [vmem:[#allocation8 + $0xae4] ss:$16 sps:$4 sm:$0xff]   ;;  %v8388_v28 = vld [vmem:[#allocation8 + $0xaec] ss:$16 sps:$4 sm:$0xff]  }
 0x399   :  { %4565 = vmatprep.subr.bf16.mxu1 %v8310_v29  ;;  %v8383_v29 = vld [vmem:[#allocation8 + $0xae0] ss:$16 sps:$4 sm:$0xff]  }
 0x39b   :  { %4320 = vmatpush1.bf16.msra.mxu0 %v8305_v31  ;;  %v8386_v31 = vld [vmem:[#allocation8 + $0xae8] ss:$16 sps:$4 sm:$0xff]  }
 0x39c   :  { %4566 = vmatpush1.bf16.msra.mxu1 %v8308_v34  ;;  %4321 = vmatprep.subr.bf16.mxu0 %v8313_v36  ;;  %v8391_v34 = vld [vmem:[#allocation8 + $0xb04] ss:$16 sps:$4 sm:$0xff]   ;;  %v8394_v36 = vld [vmem:[#allocation8 + $0xb0c] ss:$16 sps:$4 sm:$0xff]  }
 0x39d   :  { %4567 = vmatprep.subr.bf16.mxu1 %v8316_v37  ;;  %v8389_v37 = vld [vmem:[#allocation8 + $0xb00] ss:$16 sps:$4 sm:$0xff]  }
 0x39f   :  { %4322 = vmatpush1.bf16.msra.mxu0 %v8311_v10  ;;  %v8392_v10 = vld [vmem:[#allocation8 + $0xb08] ss:$16 sps:$4 sm:$0xff]  }
 0x3a0   :  { %4568 = vmatpush1.bf16.msra.mxu1 %v8314_v38  ;;  %4323 = vmatprep.subr.bf16.mxu0 %v8319_v39  ;;  %v8397_v38 = vld [vmem:[#allocation8 + $0xb24] ss:$16 sps:$4 sm:$0xff]   ;;  %v8400_v39 = vld [vmem:[#allocation8 + $0xb2c] ss:$16 sps:$4 sm:$0xff]  }
 0x3a1   :  { %4569 = vmatprep.subr.bf16.mxu1 %v8322_v40  ;;  %v8395_v40 = vld [vmem:[#allocation8 + $0xb20] ss:$16 sps:$4 sm:$0xff]  }
 0x3a3   :  { %4324 = vmatpush1.bf16.msra.mxu0 %v8317_v54  ;;  %v8398_v54 = vld [vmem:[#allocation8 + $0xb28] ss:$16 sps:$4 sm:$0xff]  }
 0x3a4   :  { %4570 = vmatpush1.bf16.msra.mxu1 %v8320_v42  ;;  %4325 = vmatprep.subr.bf16.mxu0 %v8325_v43  ;;  %v8403_v42 = vld [vmem:[#allocation8 + $0xb44] ss:$16 sps:$4 sm:$0xff]   ;;  %v8406_v43 = vld [vmem:[#allocation8 + $0xb4c] ss:$16 sps:$4 sm:$0xff]  }
 0x3a5   :  { %4571 = vmatprep.subr.bf16.mxu1 %v8328_v44  ;;  %v8401_v44 = vld [vmem:[#allocation8 + $0xb40] ss:$16 sps:$4 sm:$0xff]  }
 0x3a7   :  { %4326 = vmatpush1.bf16.msra.mxu0 %v8323_v45  ;;  %v8404_v45 = vld [vmem:[#allocation8 + $0xb48] ss:$16 sps:$4 sm:$0xff]  }
 0x3a8   :  { %4572 = vmatpush1.bf16.msra.mxu1 %v8326_v32  ;;  %4327 = vmatprep.subr.bf16.mxu0 %v8331_v47  ;;  %v8412_v32 = vld [vmem:[#allocation8 + $0xb6c] ss:$16 sps:$4 sm:$0xff]   ;;  %v8407_v47 = vld [vmem:[#allocation8 + $0xb60] ss:$16 sps:$4 sm:$0xff]  }
 0x3a9   :  { %4573 = vmatprep.subr.bf16.mxu1 %v8334_v58  ;;  %v8410_v58 = vld [vmem:[#allocation8 + $0xb68] ss:$16 sps:$4 sm:$0xff]  }
 0x3ab   :  { %4328 = vmatpush1.bf16.msra.mxu0 %v8329_v48  ;;  %v8415_v48 = vld [vmem:[#allocation8 + $0xb84] ss:$16 sps:$4 sm:$0xff]  }
 0x3ac   :  { %4574 = vmatpush1.bf16.msra.mxu1 %v8332_v7  ;;  %4329 = vmatprep.subr.bf16.mxu0 %v8337_v12  ;;  %v8413_v7 = vld [vmem:[#allocation8 + $0xb80] ss:$16 sps:$4 sm:$0xff]   ;;  %v8416_v12 = vld [vmem:[#allocation8 + $0xb88] ss:$16 sps:$4 sm:$0xff]  }
 0x3ad   :  { %4575 = vmatprep.subr.bf16.mxu1 %v8340_v50  ;;  %v8421_v50 = vld [vmem:[#allocation8 + $0xba4] ss:$16 sps:$4 sm:$0xff]  }
 0x3af   :  { %4330 = vmatpush1.bf16.msra.mxu0 %v8335_v51  ;;  %v8424_v51 = vld [vmem:[#allocation8 + $0xbac] ss:$16 sps:$4 sm:$0xff]  }
 0x3b0   :  { %4576 = vmatpush1.bf16.msra.mxu1 %v8338_v19  ;;  %4340 = vmatprep.subr.bf16.mxu0 %v8343_v53  ;;  %v8422_v19 = vld [vmem:[#allocation8 + $0xba8] ss:$16 sps:$4 sm:$0xff]   ;;  %v8427_v53 = vld [vmem:[#allocation8 + $0xbc4] ss:$16 sps:$4 sm:$0xff]  }
 0x3b1   :  { %4586 = vmatprep.subr.bf16.mxu1 %v8346_v55  ;;  %v8430_v55 = vld [vmem:[#allocation8 + $0xbcc] ss:$16 sps:$4 sm:$0xff]  }
 0x3b2   :  { %4332 = vmatmul.mubr.bf16.vlgmr.msra.gmra.mrb[12].mxu0 %v1805_v6 }
 0x3b3   :  { %4578 = vmatmul.mubr.bf16.vlgmr.msra.gmra.mrb[12].mxu1 %v1805_v6  ;;  %4341 = vmatpush1.bf16.msra.mxu0 %v8341_v57  ;;  %v8428_v57 = vld [vmem:[#allocation8 + $0xbc8] ss:$16 sps:$4 sm:$0xff]   ;;  %v8433_v6 = vld [vmem:[#allocation8 + $0xbe4] ss:$16 sps:$4 sm:$0xff]  }
 0x3b4   :  { %4372 = vmatprep.mubr.bf16.mxu0 %v1808_v62  ;;  %4587 = vmatpush1.bf16.msra.mxu1 %v8344_v59  ;;  %v8436_v59 = vld [vmem:[#allocation8 + $0xbec] ss:$16 sps:$4 sm:$0xff]  }
 0x3b5   :  { %4618 = vmatprep.mubr.bf16.mxu1 %v1808_v62  ;;  %4342 = vmatprep.subr.bf16.mxu0 %v8349_v60  ;;  %v8431_v60 = vld [vmem:[#allocation8 + $0xbe0] ss:$16 sps:$4 sm:$0xff]   ;;  %v1795_v62 = vmax.f32 %v9641_v30, 0.0  ;;  %v8445_v30 = vld [vmem:[#allocation11 + $0x34] ss:$12 sps:$4 sm:$0xff]  }
 0x3b6   :  { %4588 = vmatprep.subr.bf16.mxu1 %v8352_v63  ;;  %v8434_v63 = vld [vmem:[#allocation8 + $0xbe8] ss:$16 sps:$4 sm:$0xff]  }
 0x3b7   :  { %4343 = vmatpush1.bf16.msra.mxu0 %v8347_v1  ;;  %v8439_v1 = vld [vmem:[#allocation11 + $0x4] ss:$12 sps:$4 sm:$0xff]  }
 0x3b8   :  { %4589 = vmatpush1.bf16.msra.mxu1 %v8350_v2  ;;  %4344 = vmatprep.subr.bf16.mxu0 %v8355_v3  ;;  %v8464_v2 = vld [vmem:[#allocation11 + $0xc8] ss:$12 sps:$4 sm:$0xff]   ;;  %v8437_v3 = vld [vmem:[#allocation11] ss:$12 sps:$4 sm:$0xff]  }
 0x3b9   :  { %4590 = vmatprep.subr.bf16.mxu1 %v8358_v33  ;;  %v1807_v33 = vpack.c.bf16 %v1795_v62, %v1795_v62 }
 0x3bb   :  { %4345 = vmatpush1.bf16.msra.mxu0 %v8353_v4  ;;  %v8442_v4 = vld [vmem:[#allocation11 + $0x1c] ss:$12 sps:$4 sm:$0xff]  }
 0x3bc   :  { %4591 = vmatpush1.bf16.msra.mxu1 %v8356_v5  ;;  %4346 = vmatprep.subr.bf16.mxu0 %v8361_v8  ;;  %v8465_v5 = vld [vmem:[#allocation11 + $0x8] ss:$12 sps:$4 sm:$0xff]   ;;  %v8469_v8 = vld [vmem:[#allocation11 + $0xe0] ss:$12 sps:$4 sm:$0xff]  }
 0x3bd   :  { %4592 = vmatprep.subr.bf16.mxu1 %v8364_v9  ;;  %v8440_v9 = vld [vmem:[#allocation11 + $0x18] ss:$12 sps:$4 sm:$0xff]  }
 0x3bf   :  { %4347 = vmatpush1.bf16.msra.mxu0 %v8359_v14  ;;  %v8470_v14 = vld [vmem:[#allocation11 + $0x20] ss:$12 sps:$4 sm:$0xff]  }
 0x3c0   :  { %4593 = vmatpush1.bf16.msra.mxu1 %v8362_v41  ;;  %4348 = vmatprep.subr.bf16.mxu0 %v8367_v15  ;;  %v8474_v41 = vld [vmem:[#allocation11 + $0xf8] ss:$12 sps:$4 sm:$0xff]   ;;  %v8443_v15 = vld [vmem:[#allocation11 + $0x30] ss:$12 sps:$4 sm:$0xff]  }
 0x3c1   :  { %4594 = vmatprep.subr.bf16.mxu1 %v8370_v16  ;;  %v8448_v16 = vld [vmem:[#allocation11 + $0x4c] ss:$12 sps:$4 sm:$0xff]  }
 0x3c3   :  { %4349 = vmatpush1.bf16.msra.mxu0 %v8365_v17  ;;  %v8475_v17 = vld [vmem:[#allocation11 + $0x38] ss:$12 sps:$4 sm:$0xff]  }
 0x3c4   :  { %4595 = vmatpush1.bf16.msra.mxu1 %v8368_v18  ;;  %4350 = vmatprep.subr.bf16.mxu0 %v8373_v20  ;;  %v8479_v18 = vld [vmem:[#allocation11 + $0x110] ss:$12 sps:$4 sm:$0xff]   ;;  %v8446_v20 = vld [vmem:[#allocation11 + $0x48] ss:$12 sps:$4 sm:$0xff]  }
 0x3c5   :  { %4596 = vmatprep.subr.bf16.mxu1 %v8376_v61  ;;  %v8451_v61 = vld [vmem:[#allocation11 + $0x64] ss:$12 sps:$4 sm:$0xff]  }
 0x3c7   :  { %4351 = vmatpush1.bf16.msra.mxu0 %v8371_v21  ;;  %v8480_v21 = vld [vmem:[#allocation11 + $0x50] ss:$12 sps:$4 sm:$0xff]  }
 0x3c8   :  { %4597 = vmatpush1.bf16.msra.mxu1 %v8374_v22  ;;  %4352 = vmatprep.subr.bf16.mxu0 %v8379_v24  ;;  %v8484_v22 = vld [vmem:[#allocation11 + $0x128] ss:$12 sps:$4 sm:$0xff]   ;;  %v8449_v24 = vld [vmem:[#allocation11 + $0x60] ss:$12 sps:$4 sm:$0xff]  }
 0x3c9   :  { %4598 = vmatprep.subr.bf16.mxu1 %v8382_v25  ;;  %v8454_v25 = vld [vmem:[#allocation11 + $0x7c] ss:$12 sps:$4 sm:$0xff]  }
 0x3cb   :  { %4353 = vmatpush1.bf16.msra.mxu0 %v8377_v27  ;;  %v8485_v27 = vld [vmem:[#allocation11 + $0x68] ss:$12 sps:$4 sm:$0xff]  }
 0x3cc   :  { %4599 = vmatpush1.bf16.msra.mxu1 %v8380_v0  ;;  %4354 = vmatprep.subr.bf16.mxu0 %v8385_v35  ;;  %v8489_v0 = vld [vmem:[#allocation11 + $0x140] ss:$12 sps:$4 sm:$0xff]   ;;  %v8452_v35 = vld [vmem:[#allocation11 + $0x78] ss:$12 sps:$4 sm:$0xff]  }
 0x3cd   :  { %4600 = vmatprep.subr.bf16.mxu1 %v8388_v28  ;;  %v8457_v28 = vld [vmem:[#allocation11 + $0x94] ss:$12 sps:$4 sm:$0xff]  }
 0x3cf   :  { %4355 = vmatpush1.bf16.msra.mxu0 %v8383_v29  ;;  %v8490_v29 = vld [vmem:[#allocation11 + $0x80] ss:$12 sps:$4 sm:$0xff]  }
 0x3d0   :  { %4601 = vmatpush1.bf16.msra.mxu1 %v8386_v31  ;;  %4356 = vmatprep.subr.bf16.mxu0 %v8391_v34  ;;  %v8455_v31 = vld [vmem:[#allocation11 + $0x90] ss:$12 sps:$4 sm:$0xff]   ;;  %v8460_v34 = vld [vmem:[#allocation11 + $0xac] ss:$12 sps:$4 sm:$0xff]  }
 0x3d1   :  { %4602 = vmatprep.subr.bf16.mxu1 %v8394_v36  ;;  %v8458_v36 = vld [vmem:[#allocation11 + $0xa8] ss:$12 sps:$4 sm:$0xff]  }
 0x3d3   :  { %4357 = vmatpush1.bf16.msra.mxu0 %v8389_v37  ;;  %v8463_v37 = vld [vmem:[#allocation11 + $0xc4] ss:$12 sps:$4 sm:$0xff]  }
 0x3d4   :  { %4603 = vmatpush1.bf16.msra.mxu1 %v8392_v10  ;;  %4358 = vmatprep.subr.bf16.mxu0 %v8397_v38  ;;  %v8461_v10 = vld [vmem:[#allocation11 + $0xc0] ss:$12 sps:$4 sm:$0xff]   ;;  %v8468_v38 = vld [vmem:[#allocation11 + $0xdc] ss:$12 sps:$4 sm:$0xff]  }
 0x3d5   :  { %4604 = vmatprep.subr.bf16.mxu1 %v8400_v39  ;;  %v8466_v39 = vld [vmem:[#allocation11 + $0xd8] ss:$12 sps:$4 sm:$0xff]  }
 0x3d7   :  { %4359 = vmatpush1.bf16.msra.mxu0 %v8395_v40  ;;  %v8473_v40 = vld [vmem:[#allocation11 + $0xf4] ss:$12 sps:$4 sm:$0xff]  }
 0x3d8   :  { %4605 = vmatpush1.bf16.msra.mxu1 %v8398_v54  ;;  %4360 = vmatprep.subr.bf16.mxu0 %v8403_v42  ;;  %v8471_v54 = vld [vmem:[#allocation11 + $0xf0] ss:$12 sps:$4 sm:$0xff]   ;;  %v8478_v42 = vld [vmem:[#allocation11 + $0x10c] ss:$12 sps:$4 sm:$0xff]  }
 0x3d9   :  { %4606 = vmatprep.subr.bf16.mxu1 %v8406_v43  ;;  %v8476_v43 = vld [vmem:[#allocation11 + $0x108] ss:$12 sps:$4 sm:$0xff]  }
 0x3db   :  { %4361 = vmatpush1.bf16.msra.mxu0 %v8401_v44  ;;  %v8483_v44 = vld [vmem:[#allocation11 + $0x124] ss:$12 sps:$4 sm:$0xff]  }
 0x3dc   :  { %4607 = vmatpush1.bf16.msra.mxu1 %v8404_v45  ;;  %4362 = vmatprep.subr.bf16.mxu0 %v8409_v46  ;;  %v8481_v45 = vld [vmem:[#allocation11 + $0x120] ss:$12 sps:$4 sm:$0xff]   ;;  %v8488_v46 = vld [vmem:[#allocation11 + $0x13c] ss:$12 sps:$4 sm:$0xff]  }
 0x3dd   :  { %4608 = vmatprep.subr.bf16.mxu1 %v8412_v32  ;;  %v8486_v32 = vld [vmem:[#allocation11 + $0x138] ss:$12 sps:$4 sm:$0xff]  }
 0x3df   :  { %4363 = vmatpush1.bf16.msra.mxu0 %v8407_v47  ;;  %v8493_v47 = vld [vmem:[#allocation11 + $0x154] ss:$12 sps:$4 sm:$0xff]  }
 0x3e0   :  { %4609 = vmatpush1.bf16.msra.mxu1 %v8410_v58  ;;  %4364 = vmatprep.subr.bf16.mxu0 %v8415_v48  ;;  %v8494_v58 = vld [vmem:[#allocation11 + $0x158] ss:$12 sps:$4 sm:$0xff]   ;;  %v8491_v48 = vld [vmem:[#allocation11 + $0x150] ss:$12 sps:$4 sm:$0xff]  }
 0x3e1   :  { %4610 = vmatprep.subr.bf16.mxu1 %v8418_v49  ;;  %v8495_v49 = vld [vmem:[#allocation11 + $0x98] ss:$12 sps:$4 sm:$0xff]  }
 0x3e3   :  { %4365 = vmatpush1.bf16.msra.mxu0 %v8413_v7  ;;  %v8498_v7 = vld [vmem:[#allocation11 + $0x16c] ss:$12 sps:$4 sm:$0xff]  }
 0x3e4   :  { %4611 = vmatpush1.bf16.msra.mxu1 %v8416_v12  ;;  %4366 = vmatprep.subr.bf16.mxu0 %v8421_v50  ;;  %v8499_v12 = vld [vmem:[#allocation11 + $0x170] ss:$12 sps:$4 sm:$0xff]   ;;  %v8496_v50 = vld [vmem:[#allocation11 + $0x168] ss:$12 sps:$4 sm:$0xff]  }
 0x3e5   :  { %4612 = vmatprep.subr.bf16.mxu1 %v8424_v51  ;;  %v8500_v51 = vld [vmem:[#allocation11 + $0xb0] ss:$12 sps:$4 sm:$0xff]  }
 0x3e7   :  { %4367 = vmatpush1.bf16.msra.mxu0 %v8419_v52  ;;  %v8503_v52 = vld [vmem:[#allocation11 + $0x184] ss:$12 sps:$4 sm:$0xff]  }
 0x3e8   :  { %4613 = vmatpush1.bf16.msra.mxu1 %v8422_v19  ;;  %4368 = vmatprep.subr.bf16.mxu0 %v8427_v53  ;;  %v8504_v19 = vld [vmem:[#allocation11 + $0x248] ss:$12 sps:$4 sm:$0xff]   ;;  %v9656_v53 = vld [vmem:[#allocation10] sm:$0xf] }
 0x3e9   :  { %4614 = vmatprep.subr.bf16.mxu1 %v8430_v55  ;;  %v2198_v55 = vrot.slane %v9656_v53, %v9591_v11 }
 0x3eb   :  { %4369 = vmatpush1.bf16.msra.mxu0 %v8425_v56  ;;  %v2202_v56 = vrot.slane %v9656_v53, %v9596_v13 }
 0x3ec   :  { %4615 = vmatpush1.bf16.msra.mxu1 %v8428_v57  ;;  %4370 = vmatprep.subr.bf16.mxu0 %v8433_v6  ;;  %v2210_v57 = vrot.slane %v9656_v53, %v9603_v26  ;;  %v8508_v26 = vld [vmem:[#allocation11 + $0x19c] ss:$12 sps:$4 sm:$0xff]  }
 0x3ed   :  { %4616 = vmatprep.subr.bf16.mxu1 %v8436_v59 }
 0x3ef   :  { %4371 = vmatpush1.bf16.msra.mxu0 %v8431_v60 }
 0x3f0   :  { %4617 = vmatpush1.bf16.msra.mxu1 %v8434_v63  ;;  %5292 = vmatprep.subr.bf16.mxu0 %v8439_v1 }
 0x3f1   :  { %7298 = vmatprep.subr.bf16.mxu1 %v8464_v2 }
 0x3f2   :  { %4373 = vmatmul.mubr.bf16.vlgmr.msra.gmra.mrb[12].mxu0 %v1807_v33 }
 0x3f3   :  { %4619 = vmatmul.mubr.bf16.vlgmr.msra.gmra.mrb[12].mxu1 %v1807_v33  ;;  %5293 = vmatpush1.bf16.msra.mxu0 %v8437_v3 }
 0x3f4   :  { %5294 = vmatprep.subr.bf16.mxu0 %v8442_v4  ;;  %7299 = vmatpush3.bf16.msra.mxu1 %v8465_v5 }
 0x3f5   :  { %7300 = vmatprep.subr.bf16.mxu1 %v8469_v8 }
 0x3f7   :  { %5295 = vmatpush1.bf16.msra.mxu0 %v8440_v9 }
 0x3f8   :  { %5296 = vmatprep.subr.bf16.mxu0 %v8445_v30  ;;  %7301 = vmatpush3.bf16.msra.mxu1 %v8470_v14 }
 0x3f9   :  { %7302 = vmatprep.subr.bf16.mxu1 %v8474_v41  ;;  %v8501_v41 = vld [vmem:[#allocation11 + $0x180] ss:$12 sps:$4 sm:$0xff]  }
 0x3fb   :  { %5297 = vmatpush1.bf16.msra.mxu0 %v8443_v15  ;;  %v8505_v15 = vld [vmem:[#allocation11 + $0x188] ss:$12 sps:$4 sm:$0xff]  }
 0x3fc   :  { %5298 = vmatprep.subr.bf16.mxu0 %v8448_v16  ;;  %7303 = vmatpush3.bf16.msra.mxu1 %v8475_v17  ;;  %v8509_v17 = vld [vmem:[#allocation11 + $0x260] ss:$12 sps:$4 sm:$0xff]  }
 0x3fd   :  { %7304 = vmatprep.subr.bf16.mxu1 %v8479_v18 }
 0x3ff   :  { %5299 = vmatpush1.bf16.msra.mxu0 %v8446_v20  ;;  %v8506_v20 = vld [vmem:[#allocation11 + $0x198] ss:$12 sps:$4 sm:$0xff]  }
 0x400   :  { %5300 = vmatprep.subr.bf16.mxu0 %v8451_v61  ;;  %7305 = vmatpush3.bf16.msra.mxu1 %v8480_v21  ;;  %v8510_v61 = vld [vmem:[#allocation11 + $0x1a0] ss:$12 sps:$4 sm:$0xff]  }
 0x401   :  { %7306 = vmatprep.subr.bf16.mxu1 %v8484_v22  ;;  %v8513_v21 = vld [vmem:[#allocation11 + $0x1b4] ss:$12 sps:$4 sm:$0xff]   ;;  %v8514_v22 = vld [vmem:[#allocation11 + $0x278] ss:$12 sps:$4 sm:$0xff]  }
 0x403   :  { %5301 = vmatpush1.bf16.msra.mxu0 %v8449_v24  ;;  %v8511_v24 = vld [vmem:[#allocation11 + $0x1b0] ss:$12 sps:$4 sm:$0xff]  }
 0x404   :  { %5302 = vmatprep.subr.bf16.mxu0 %v8454_v25  ;;  %7307 = vmatpush3.bf16.msra.mxu1 %v8485_v27  ;;  %v8515_v25 = vld [vmem:[#allocation11 + $0x1b8] ss:$12 sps:$4 sm:$0xff]  }
 0x405   :  { %7308 = vmatprep.subr.bf16.mxu1 %v8489_v0  ;;  %v8518_v27 = vld [vmem:[#allocation11 + $0x1cc] ss:$12 sps:$4 sm:$0xff]   ;;  %v8519_v0 = vld [vmem:[#allocation11 + $0x290] ss:$12 sps:$4 sm:$0xff]  }
 0x407   :  { %5303 = vmatpush1.bf16.msra.mxu0 %v8452_v35  ;;  %v8516_v35 = vld [vmem:[#allocation11 + $0x1c8] ss:$12 sps:$4 sm:$0xff]  }
 0x408   :  { %5304 = vmatprep.subr.bf16.mxu0 %v8457_v28  ;;  %7309 = vmatpush3.bf16.msra.mxu1 %v8490_v29  ;;  %v8520_v28 = vld [vmem:[#allocation11 + $0x1d0] ss:$12 sps:$4 sm:$0xff]  }
 0x409   :  { %7310 = vmatprep.subr.bf16.mxu1 %v8494_v58  ;;  %v8523_v29 = vld [vmem:[#allocation11 + $0x1e4] ss:$12 sps:$4 sm:$0xff]  }
 0x40a   :  { %v8540_v58 = vld [vmem:[#allocation11 + $0x230] ss:$12 sps:$4 sm:$0xff]  }
 0x40b   :  { %5305 = vmatpush1.bf16.msra.mxu0 %v8455_v31  ;;  %v8524_v31 = vld [vmem:[#allocation11 + $0x2a8] ss:$12 sps:$4 sm:$0xff]  }
 0x40c   :  { %5306 = vmatprep.subr.bf16.mxu0 %v8460_v34  ;;  %7311 = vmatpush3.bf16.msra.mxu1 %v8495_v49  ;;  %v8521_v34 = vld [vmem:[#allocation11 + $0x1e0] ss:$12 sps:$4 sm:$0xff]   ;;  %v8543_v49 = vld [vmem:[#allocation11 + $0x244] ss:$12 sps:$4 sm:$0xff]  }
 0x40d   :  { %7312 = vmatprep.subr.bf16.mxu1 %v8499_v12 }
 0x40f   :  { %5307 = vmatpush1.bf16.msra.mxu0 %v8458_v36  ;;  %v8525_v36 = vld [vmem:[#allocation11 + $0x1e8] ss:$12 sps:$4 sm:$0xff]  }
 0x410   :  { %5308 = vmatprep.subr.bf16.mxu0 %v8463_v37  ;;  %7313 = vmatpush3.bf16.msra.mxu1 %v8500_v51  ;;  %v8528_v37 = vld [vmem:[#allocation11 + $0x1fc] ss:$12 sps:$4 sm:$0xff]   ;;  %v8544_v51 = vld [vmem:[#allocation11 + $0x258] ss:$12 sps:$4 sm:$0xff]  }
 0x411   :  { %7320 = vmatprep.subr.bf16.mxu1 %v8504_v19  ;;  %v8547_v19 = vld [vmem:[#allocation11 + $0x270] ss:$12 sps:$4 sm:$0xff]  }
 0x413   :  { %5309 = vmatpush1.bf16.msra.mxu0 %v8461_v10  ;;  %v8529_v10 = vld [vmem:[#allocation11 + $0x2c0] ss:$12 sps:$4 sm:$0xff]  }
 0x414   :  { %5310 = vmatprep.subr.bf16.mxu0 %v8468_v38  ;;  %v8526_v38 = vld [vmem:[#allocation11 + $0x1f8] ss:$12 sps:$4 sm:$0xff]  }
 0x417   :  { %5311 = vmatpush1.bf16.msra.mxu0 %v8466_v39  ;;  %v8530_v39 = vld [vmem:[#allocation11 + $0x200] ss:$12 sps:$4 sm:$0xff]  }
 0x418   :  { %5312 = vmatprep.subr.bf16.mxu0 %v8473_v40  ;;  %v2206_v40 = vrot.slane %v9656_v53, %v9610_v23  ;;  %v8552_v53 = vld [vmem:[#allocation11 + $0x28c] ss:$12 sps:$4 sm:$0xff]  }
 0x41b   :  { %5313 = vmatpush1.bf16.msra.mxu0 %v8471_v54  ;;  %v8533_v54 = vld [vmem:[#allocation11 + $0x214] ss:$12 sps:$4 sm:$0xff]  }
 0x41c   :  { %5314 = vmatprep.subr.bf16.mxu0 %v8478_v42  ;;  %v8534_v42 = vld [vmem:[#allocation11 + $0x2d8] ss:$12 sps:$4 sm:$0xff]  }
 0x41f   :  { %5315 = vmatpush1.bf16.msra.mxu0 %v8476_v43  ;;  %v8531_v43 = vld [vmem:[#allocation11 + $0x210] ss:$12 sps:$4 sm:$0xff]  }
 0x420   :  { %5316 = vmatprep.subr.bf16.mxu0 %v8483_v44  ;;  %v8535_v44 = vld [vmem:[#allocation11 + $0x218] ss:$12 sps:$4 sm:$0xff]  }
 0x423   :  { %5317 = vmatpush1.bf16.msra.mxu0 %v8481_v45 }
 0x424   :  { %5318 = vmatprep.subr.bf16.mxu0 %v8488_v46  ;;  %v8538_v46 = vld [vmem:[#allocation11 + $0x22c] ss:$12 sps:$4 sm:$0xff]  }
 0x427   :  { %5319 = vmatpush1.bf16.msra.mxu0 %v8486_v32  ;;  %v8539_v32 = vld [vmem:[#allocation11 + $0x2f0] ss:$12 sps:$4 sm:$0xff]  }
 0x428   :  { %5320 = vmatprep.subr.bf16.mxu0 %v8493_v47  ;;  %v8536_v47 = vld [vmem:[#allocation11 + $0x228] ss:$12 sps:$4 sm:$0xff]  }
 0x42b   :  { %5321 = vmatpush1.bf16.msra.mxu0 %v8491_v48 }
 0x42c   :  { %5322 = vmatprep.subr.bf16.mxu0 %v8498_v7  ;;  %v8541_v7 = vld [vmem:[#allocation11 + $0x240] ss:$12 sps:$4 sm:$0xff]  }
 0x42f   :  { %5323 = vmatpush1.bf16.msra.mxu0 %v8496_v50  ;;  %v8546_v50 = vld [vmem:[#allocation11 + $0x25c] ss:$12 sps:$4 sm:$0xff]  }
 0x430   :  { %5333 = vmatprep.subr.bf16.mxu0 %v8503_v52  ;;  %v8549_v52 = vld [vmem:[#allocation11 + $0x274] ss:$12 sps:$4 sm:$0xff]  }
 0x4c5   :  { %v4374_v6 = vpop.f32.mrb[12].mxu0 }
 0x4c6   :  { %v7480_v59 = vadd.f32 %v4374_v6, %v2198_v55  ;;  %v9664_v60 = vpop.f32.mrb[12].mxu1  ;;  %v4376_v62 = vpop.f32.mrb[13].mxu0  ;;  %v8550_v55 = vld [vmem:[#allocation11 + $0x288] ss:$12 sps:$4 sm:$0xff]  }
 0x4c7   :  { %v7481_v63 = vadd.f32 %v4376_v62, %v2202_v56  ;;  %v4622_v1 = vpop.f32.mrb[13].mxu1  ;;  %v4378_v2 = vpop.f32.mrb[14].mxu0  ;;  %v7482_v45 = vadd.f32 %v9664_v60, %v2206_v40  ;;  %v8555_v56 = vld [vmem:[#allocation11 + $0x2a4] ss:$12 sps:$4 sm:$0xff]   ;;  %v8558_v6 = vld [vmem:[#allocation11 + $0x2bc] ss:$12 sps:$4 sm:$0xff]  }
 0x4c8   :  { %v4627_v3 = vmax.f32 %v7480_v59, 0.0  ;;  %v7483_v33 = vadd.f32 %v4622_v1, %v2210_v57  ;;  %v4624_v4 = vpop.f32.mrb[14].mxu1  ;;  %v4379_v5 = vpop.f32.mrb[15].mxu0  ;;  %v8553_v57 = vld [vmem:[#allocation11 + $0x2a0] ss:$12 sps:$4 sm:$0xff]   ;;  %v9202_v40 = vmov 0  }
 0x4c9   :  { %v4628_v8 = vmax.f32 %v7481_v63, 0.0  ;;  %v4625_v9 = vpop.f32.mrb[15].mxu1  ;;  %v4629_v48 = vmax.f32 %v7482_v45, 0.0  ;;  %v8556_v59 = vld [vmem:[#allocation11 + $0x2b8] ss:$12 sps:$4 sm:$0xff]   ;;  %7571 = vset.pattern.permute.xlu0 %v9202_v40 }
 0x4ca   :  { %v4630_v30 = vmax.f32 %v7483_v33, 0.0  ;;  %v4631_v16 = vpack.c.bf16 %v4627_v3, %v4627_v3  ;;  %v8561_v60 = vld [vmem:[#allocation11 + $0x2d4] ss:$12 sps:$4 sm:$0xff]   ;;  %v8559_v62 = vld [vmem:[#allocation11 + $0x2d0] ss:$12 sps:$4 sm:$0xff]  }
 0x4cb   :  { %v4632_v14 = vpack.c.bf16 %v4628_v8, %v4628_v8  ;;  %v4633_v12 = vpack.c.bf16 %v4629_v48, %v4629_v48  ;;  %v8564_v63 = vld [vmem:[#allocation11 + $0x2ec] ss:$12 sps:$4 sm:$0xff]   ;;  %v8562_v1 = vld [vmem:[#allocation11 + $0x2e8] ss:$12 sps:$4 sm:$0xff]  }
 0x4cc   :  { %v4634_v18 = vpack.c.bf16 %v4630_v30, %v4630_v30  ;;  %v8565_v2 = vld [vmem:[#allocation14] ss:$8 sps:$4 sm:$0xff]   ;;  %v8567_v3 = vld [vmem:[#allocation14 + $0x4] ss:$8 sps:$4 sm:$0xff]   ;;  %v8570_v33 = vld [vmem:[#allocation14 + $0x14] ss:$8 sps:$4 sm:$0xff]  }
 0x4cd   :  { %5324 = vmatprep.mubr.bf16.mxu0 %v4632_v14  ;;  %5406 = vmatprep.mubr.bf16.mxu1 %v4632_v14  ;;  %v8568_v4 = vld [vmem:[#allocation14 + $0x10] ss:$8 sps:$4 sm:$0xff]   ;;  %v8573_v5 = vld [vmem:[#allocation14 + $0x24] ss:$8 sps:$4 sm:$0xff]   ;;  %v8571_v8 = vld [vmem:[#allocation14 + $0x20] ss:$8 sps:$4 sm:$0xff]  }
 0x4ce   :  { %5325 = vmatmul.mubr.bf16.vlgmr.msra.gmra.mrb[16].mxu0 %v4631_v16  ;;  %5407 = vmatmul.mubr.bf16.vlgmr.msra.gmra.mrb[16].mxu1 %v4631_v16  ;;  %v8576_v9 = vld [vmem:[#allocation14 + $0x34] ss:$8 sps:$4 sm:$0xff]   ;;  %v8574_v30 = vld [vmem:[#allocation14 + $0x30] ss:$8 sps:$4 sm:$0xff]   ;;  %v8579_v14 = vld [vmem:[#allocation14 + $0x44] ss:$8 sps:$4 sm:$0xff]  }
 0x4cf   :  { %5334 = vmatpush1.bf16.msra.mxu0 %v8501_v41  ;;  %7321 = vmatpush3.bf16.msra.mxu1 %v8505_v15  ;;  %v8577_v41 = vld [vmem:[#allocation14 + $0x40] ss:$8 sps:$4 sm:$0xff]   ;;  %v8582_v15 = vld [vmem:[#allocation14 + $0x54] ss:$8 sps:$4 sm:$0xff]   ;;  %v8580_v16 = vld [vmem:[#allocation14 + $0x50] ss:$8 sps:$4 sm:$0xff]  }
 0x4d0   :  { %5365 = vmatprep.mubr.bf16.mxu0 %v4634_v18  ;;  %5446 = vmatprep.mubr.bf16.mxu1 %v4634_v18  ;;  %v8588_v18 = vld [vmem:[#allocation14 + $0x74] ss:$8 sps:$4 sm:$0xff]   ;;  %v8646_v48 = vld [vmem:[#allocation17 + $0x20] sm:$0xff]  }
 0x4d1   :  { %5335 = vmatprep.subr.bf16.mxu0 %v8508_v26  ;;  %7322 = vmatprep.subr.bf16.mxu1 %v8509_v17  ;;  %v8585_v26 = vld [vmem:[#allocation14 + $0x64] ss:$8 sps:$4 sm:$0xff]   ;;  %v8583_v17 = vld [vmem:[#allocation14 + $0x60] ss:$8 sps:$4 sm:$0xff]   ;;  %v8641_v45 = vld [vmem:[#allocation17 + $0x50] sm:$0xff]  }
 0x4d3   :  { %5336 = vmatpush1.bf16.msra.mxu0 %v8506_v20  ;;  %7323 = vmatpush3.bf16.msra.mxu1 %v8510_v61  ;;  %v8586_v20 = vld [vmem:[#allocation14 + $0x70] ss:$8 sps:$4 sm:$0xff]   ;;  %v8591_v61 = vld [vmem:[#allocation14 + $0x84] ss:$8 sps:$4 sm:$0xff]  }
 0x4d4   :  { %5337 = vmatprep.subr.bf16.mxu0 %v8513_v21  ;;  %7324 = vmatprep.subr.bf16.mxu1 %v8514_v22  ;;  %v8589_v21 = vld [vmem:[#allocation14 + $0x80] ss:$8 sps:$4 sm:$0xff]   ;;  %v8594_v22 = vld [vmem:[#allocation14 + $0x94] ss:$8 sps:$4 sm:$0xff]  }
 0x4d7   :  { %5338 = vmatpush1.bf16.msra.mxu0 %v8511_v24  ;;  %7325 = vmatpush3.bf16.msra.mxu1 %v8515_v25  ;;  %v8592_v24 = vld [vmem:[#allocation14 + $0x90] ss:$8 sps:$4 sm:$0xff]   ;;  %v8597_v25 = vld [vmem:[#allocation14 + $0xa4] ss:$8 sps:$4 sm:$0xff]  }
 0x4d8   :  { %5339 = vmatprep.subr.bf16.mxu0 %v8518_v27  ;;  %7326 = vmatprep.subr.bf16.mxu1 %v8519_v0  ;;  %v8595_v27 = vld [vmem:[#allocation14 + $0xa0] ss:$8 sps:$4 sm:$0xff]   ;;  %v8600_v0 = vld [vmem:[#allocation14 + $0xb4] ss:$8 sps:$4 sm:$0xff]  }
 0x4db   :  { %5340 = vmatpush1.bf16.msra.mxu0 %v8516_v35  ;;  %7327 = vmatpush3.bf16.msra.mxu1 %v8520_v28  ;;  %v8598_v35 = vld [vmem:[#allocation14 + $0xb0] ss:$8 sps:$4 sm:$0xff]   ;;  %v8603_v28 = vld [vmem:[#allocation14 + $0xc4] ss:$8 sps:$4 sm:$0xff]  }
 0x4dc   :  { %5341 = vmatprep.subr.bf16.mxu0 %v8523_v29  ;;  %7328 = vmatprep.subr.bf16.mxu1 %v8524_v31  ;;  %v8601_v29 = vld [vmem:[#allocation14 + $0xc0] ss:$8 sps:$4 sm:$0xff]   ;;  %v8606_v31 = vld [vmem:[#allocation14 + $0xd4] ss:$8 sps:$4 sm:$0xff]  }
 0x4df   :  { %5342 = vmatpush1.bf16.msra.mxu0 %v8521_v34  ;;  %7329 = vmatpush3.bf16.msra.mxu1 %v8525_v36  ;;  %v8604_v34 = vld [vmem:[#allocation14 + $0xd0] ss:$8 sps:$4 sm:$0xff]   ;;  %v8609_v36 = vld [vmem:[#allocation14 + $0xe4] ss:$8 sps:$4 sm:$0xff]  }
 0x4e0   :  { %5343 = vmatprep.subr.bf16.mxu0 %v8528_v37  ;;  %7330 = vmatprep.subr.bf16.mxu1 %v8529_v10  ;;  %v8607_v37 = vld [vmem:[#allocation14 + $0xe0] ss:$8 sps:$4 sm:$0xff]   ;;  %v8612_v10 = vld [vmem:[#allocation14 + $0xf4] ss:$8 sps:$4 sm:$0xff]  }
 0x4e3   :  { %5344 = vmatpush1.bf16.msra.mxu0 %v8526_v38  ;;  %7331 = vmatpush3.bf16.msra.mxu1 %v8530_v39  ;;  %v8610_v38 = vld [vmem:[#allocation14 + $0xf0] ss:$8 sps:$4 sm:$0xff]   ;;  %v8615_v39 = vld [vmem:[#allocation14 + $0x104] ss:$8 sps:$4 sm:$0xff]  }
 0x4e4   :  { %5345 = vmatprep.subr.bf16.mxu0 %v8533_v54  ;;  %7332 = vmatprep.subr.bf16.mxu1 %v8534_v42  ;;  %v8637_v54 = vld [vmem:[#allocation17 + $0x40] sm:$0xff]  }
 0x4e5   :  { %v8638_v42 = vld [vmem:[#allocation17] sm:$0xff]  }
 0x4e7   :  { %5346 = vmatpush1.bf16.msra.mxu0 %v8531_v43  ;;  %7333 = vmatpush3.bf16.msra.mxu1 %v8535_v44  ;;  %v8639_v43 = vld [vmem:[#allocation17 + $0x48] sm:$0xff]  }
 0x4e8   :  { %5347 = vmatprep.subr.bf16.mxu0 %v8538_v46  ;;  %7334 = vmatprep.subr.bf16.mxu1 %v8539_v32  ;;  %v8640_v44 = vld [vmem:[#allocation17 + $0x8] sm:$0xff]   ;;  %v8642_v46 = vld [vmem:[#allocation17 + $0x10] sm:$0xff]   ;;  %v8643_v32 = vld [vmem:[#allocation17 + $0x58] sm:$0xff]  }
 0x4eb   :  { %5348 = vmatpush1.bf16.msra.mxu0 %v8536_v47  ;;  %7335 = vmatpush3.bf16.msra.mxu1 %v8540_v58  ;;  %v8644_v47 = vld [vmem:[#allocation17 + $0x18] sm:$0xff]   ;;  %v8645_v58 = vld [vmem:[#allocation17 + $0x60] sm:$0xff]  }
 0x4ec   :  { %5349 = vmatprep.subr.bf16.mxu0 %v8543_v49  ;;  %5760 = vmatprep.subr.bf16.mxu1 %v8567_v3  ;;  %v8647_v49 = vld [vmem:[#allocation17 + $0x68] sm:$0xff]  }
 0x4ee   :  { %5447 = vmatmul.mubr.bf16.vlgmr.msra.gmra.mrb[20].mxu1 %v4633_v12 }
 0x4ef   :  { %5350 = vmatpush1.bf16.msra.mxu0 %v8541_v7  ;;  %5761 = vmatpush1.bf16.msra.mxu1 %v8565_v2  ;;  %v8648_v7 = vld [vmem:[#allocation17 + $0x28] sm:$0xff]  }
 0x4f0   :  { %5351 = vmatprep.subr.bf16.mxu0 %v8546_v50  ;;  %5762 = vmatprep.subr.bf16.mxu1 %v8570_v33 }
 0x4f3   :  { %5352 = vmatpush1.bf16.msra.mxu0 %v8544_v51  ;;  %5763 = vmatpush1.bf16.msra.mxu1 %v8568_v4 }
 0x4f4   :  { %5353 = vmatprep.subr.bf16.mxu0 %v8549_v52  ;;  %5764 = vmatprep.subr.bf16.mxu1 %v8573_v5 }
 0x4f7   :  { %5354 = vmatpush1.bf16.msra.mxu0 %v8547_v19  ;;  %5765 = vmatpush1.bf16.msra.mxu1 %v8571_v8 }
 0x4f8   :  { %5355 = vmatprep.subr.bf16.mxu0 %v8552_v53  ;;  %5766 = vmatprep.subr.bf16.mxu1 %v8576_v9  ;;  %v4763_v53 = vld [vmem:[#allocation13] sm:$0x7] }
 0x4f9   :  { %v4772_v2 = vrot.slane %v4763_v53, %v9596_v13 }
 0x4fb   :  { %5356 = vmatpush1.bf16.msra.mxu0 %v8550_v55  ;;  %5767 = vmatpush1.bf16.msra.mxu1 %v8574_v30  ;;  %v4776_v55 = vrot.slane %v4763_v53, %v9610_v23 }
 0x4fc   :  { %5357 = vmatprep.subr.bf16.mxu0 %v8555_v56  ;;  %5768 = vmatprep.subr.bf16.mxu1 %v8579_v14 }
 0x4ff   :  { %5358 = vmatpush1.bf16.msra.mxu0 %v8553_v57  ;;  %5769 = vmatpush1.bf16.msra.mxu1 %v8577_v41  ;;  %v8613_v41 = vld [vmem:[#allocation14 + $0x100] ss:$8 sps:$4 sm:$0xff]  }
 0x500   :  { %5359 = vmatprep.subr.bf16.mxu0 %v8558_v6  ;;  %5770 = vmatprep.subr.bf16.mxu1 %v8582_v15 }
 0x503   :  { %5360 = vmatpush1.bf16.msra.mxu0 %v8556_v59  ;;  %5771 = vmatpush1.bf16.msra.mxu1 %v8580_v16  ;;  %v8618_v16 = vld [vmem:[#allocation14 + $0x114] ss:$8 sps:$4 sm:$0xff]  }
 0x504   :  { %5361 = vmatprep.subr.bf16.mxu0 %v8561_v60  ;;  %5772 = vmatprep.subr.bf16.mxu1 %v8585_v26  ;;  %v8616_v26 = vld [vmem:[#allocation14 + $0x110] ss:$8 sps:$4 sm:$0xff]  }
 0x507   :  { %5362 = vmatpush1.bf16.msra.mxu0 %v8559_v62  ;;  %5773 = vmatpush1.bf16.msra.mxu1 %v8583_v17  ;;  %v8621_v17 = vld [vmem:[#allocation14 + $0x124] ss:$8 sps:$4 sm:$0xff]  }
 0x508   :  { %5363 = vmatprep.subr.bf16.mxu0 %v8564_v63  ;;  %5774 = vmatprep.subr.bf16.mxu1 %v8588_v18  ;;  %v8619_v18 = vld [vmem:[#allocation14 + $0x120] ss:$8 sps:$4 sm:$0xff]  }
 0x50b   :  { %5364 = vmatpush1.bf16.msra.mxu0 %v8562_v1  ;;  %5775 = vmatpush1.bf16.msra.mxu1 %v8586_v20  ;;  %v4768_v1 = vrot.slane %v4763_v53, %v9591_v11  ;;  %v8624_v20 = vld [vmem:[#allocation14 + $0x134] ss:$8 sps:$4 sm:$0xff]  }
 0x50c   :  { %5776 = vmatprep.subr.bf16.mxu1 %v8591_v61  ;;  %7342 = vmatprep.subr.bf16.mxu0 %v8637_v54  ;;  %v8622_v61 = vld [vmem:[#allocation14 + $0x130] ss:$8 sps:$4 sm:$0xff]   ;;  %v6022_v53 = vld [vmem:[%s9772_s29] sm:$0xff] }
 0x50d   :  { %6026 = vperm.xlu0 %7571, %v6022_v53  }
 0x50e   :  { %5366 = vmatmul.mubr.bf16.vlgmr.msra.gmra.mrb[16].mxu0 %v4633_v12 }
 0x50f   :  { %5777 = vmatpush1.bf16.msra.mxu1 %v8589_v21  ;;  %7343 = vmatpush3.bf16.msra.mxu0 %v8638_v42  ;;  %v8627_v21 = vld [vmem:[#allocation14 + $0x144] ss:$8 sps:$4 sm:$0xff]  }
 0x510   :  { %5778 = vmatprep.subr.bf16.mxu1 %v8594_v22  ;;  %7344 = vmatprep.subr.bf16.mxu0 %v8639_v43  ;;  %v8625_v22 = vld [vmem:[#allocation14 + $0x140] ss:$8 sps:$4 sm:$0xff]  }
 0x513   :  { %5779 = vmatpush1.bf16.msra.mxu1 %v8592_v24  ;;  %7345 = vmatpush3.bf16.msra.mxu0 %v8640_v44  ;;  %v8630_v24 = vld [vmem:[#allocation14 + $0x154] ss:$8 sps:$4 sm:$0xff]  }
 0x514   :  { %5780 = vmatprep.subr.bf16.mxu1 %v8597_v25  ;;  %7346 = vmatprep.subr.bf16.mxu0 %v8641_v45  ;;  %v8628_v25 = vld [vmem:[#allocation14 + $0x150] ss:$8 sps:$4 sm:$0xff]  }
 0x517   :  { %5781 = vmatpush1.bf16.msra.mxu1 %v8595_v27  ;;  %7347 = vmatpush3.bf16.msra.mxu0 %v8642_v46  ;;  %v8633_v27 = vld [vmem:[#allocation14 + $0x164] ss:$8 sps:$4 sm:$0xff]  }
 0x518   :  { %5782 = vmatprep.subr.bf16.mxu1 %v8600_v0  ;;  %7348 = vmatprep.subr.bf16.mxu0 %v8643_v32  ;;  %v8631_v0 = vld [vmem:[#allocation14 + $0x160] ss:$8 sps:$4 sm:$0xff]  }
 0x51b   :  { %5783 = vmatpush1.bf16.msra.mxu1 %v8598_v35  ;;  %7349 = vmatpush3.bf16.msra.mxu0 %v8644_v47  ;;  %v8636_v35 = vld [vmem:[#allocation14 + $0x174] ss:$8 sps:$4 sm:$0xff]  }
 0x51c   :  { %5784 = vmatprep.subr.bf16.mxu1 %v8603_v28  ;;  %7350 = vmatprep.subr.bf16.mxu0 %v8645_v58  ;;  %v8634_v28 = vld [vmem:[#allocation14 + $0x170] ss:$8 sps:$4 sm:$0xff]  }
 0x51f   :  { %5785 = vmatpush1.bf16.msra.mxu1 %v8601_v29  ;;  %7351 = vmatpush3.bf16.msra.mxu0 %v8646_v48 }
 0x520   :  { %5786 = vmatprep.subr.bf16.mxu1 %v8606_v31  ;;  %7352 = vmatprep.subr.bf16.mxu0 %v8647_v49  ;;  %v8653_v49 = vld [vmem:[#allocation20] sm:$0xff]  }
 0x523   :  { %5787 = vmatpush1.bf16.msra.mxu1 %v8604_v34  ;;  %7353 = vmatpush3.bf16.msra.mxu0 %v8648_v7  ;;  %v8649_v34 = vld [vmem:[#allocation17 + $0x70] sm:$0xff]  }
 0x524   :  { %5788 = vmatprep.subr.bf16.mxu1 %v8609_v36  ;;  %v8650_v36 = vld [vmem:[#allocation17 + $0x30] sm:$0xff]   ;;  %7354 = vmatprep.subr.bf16.mxu0 %v8649_v34 }
 0x527   :  { %5789 = vmatpush1.bf16.msra.mxu1 %v8607_v37  ;;  %7355 = vmatpush3.bf16.msra.mxu0 %v8650_v36  ;;  %v8651_v37 = vld [vmem:[#allocation17 + $0x78] sm:$0xff]  }
 0x528   :  { %5790 = vmatprep.subr.bf16.mxu1 %v8612_v10  ;;  %v8652_v10 = vld [vmem:[#allocation17 + $0x38] sm:$0xff]   ;;  %7356 = vmatprep.subr.bf16.mxu0 %v8651_v37 }
 0x52b   :  { %5791 = vmatpush1.bf16.msra.mxu1 %v8610_v38  ;;  %7357 = vmatpush3.bf16.msra.mxu0 %v8652_v10  ;;  %v9203_v38 = vmov 0.0   ;;  %v8675_v10 = vld [vmem:[#allocation28 + $0x30] sm:$0xff]  }
 0x52c   :  { %5801 = vmatprep.subr.bf16.mxu1 %v8615_v39  ;;  %7400 = vmatprep.subr.bf16.mxu0 %v9203_v38  ;;  %v5508_v39 = vld [vmem:[#allocation16] sm:$0x3] }
 0x52d   :  { %v5517_v54 = vrot.slane %v5508_v39, %v9596_v13  ;;  %v8656_v13 = vld [vmem:[#allocation20 + $0x18] sm:$0xff]  }
 0x5a1   :  { %v7314_v12 = vpop.f32.mrb[16].mxu1 }
 0x5a2   :  { %v7315_v50 = vpop.f32.mrb[17].mxu1 }
 0x5a3   :  { %v7316_v51 = vadd.f32 %v7315_v50, %v7314_v12  ;;  %v7317_v52 = vpop.f32.mrb[18].mxu1  ;;  %v8654_v12 = vld [vmem:[#allocation20 + $0x8] sm:$0xff]   ;;  %v8657_v50 = vld [vmem:[#allocation20 + $0x20] sm:$0xff]  }
 0x5a4   :  { %v7318_v19 = vpop.f32.mrb[19].mxu1  ;;  %v8659_v52 = vld [vmem:[#allocation20 + $0x30] sm:$0xff]  }
 0x5a5   :  { %v5409_v6 = vadd.f32 %v7316_v51, %v4776_v55  ;;  %v8658_v51 = vld [vmem:[#allocation20 + $0x28] sm:$0xff]   ;;  %v8660_v19 = vld [vmem:[#allocation20 + $0x38] sm:$0xff]  }
 0x5a6   :  { %v8661_v55 = vld [vmem:[#allocation25] sm:$0xff]  }
 0x5c1   :  { %v7336_v56 = vpop.f32.mrb[20].mxu1 }
 0x5c2   :  { %v7337_v57 = vpop.f32.mrb[21].mxu1 }
 0x5c3   :  { %v7338_v59 = vadd.f32 %v7337_v57, %v7336_v56  ;;  %v7339_v60 = vpop.f32.mrb[22].mxu1  ;;  %v8662_v56 = vld [vmem:[#allocation25 + $0x8] sm:$0xff]   ;;  %v9205_v57 = vmov 1  }
 0x5c4   :  { %v7340_v62 = vpop.f32.mrb[23].mxu1  ;;  %7572 = vset.pattern.permute.xlu0 %v9205_v57  ;;  %v8665_v60 = vld [vmem:[#allocation25 + $0x20] sm:$0xff]  }
 0x5c5   :  { %v5449_v63 = vadd.f32 %v7338_v59, %v5409_v6  ;;  %6036 = vperm.xlu0 %7572, %v6022_v53   ;;  %v8663_v6 = vld [vmem:[#allocation25 + $0x10] sm:$0xff]   ;;  %v8664_v59 = vld [vmem:[#allocation25 + $0x18] sm:$0xff]   ;;  %v8666_v62 = vld [vmem:[#allocation25 + $0x28] sm:$0xff]  }
 0x5c7   :  { %v5456_v29 = vmax.f32 %v5449_v63, 0.0 }
 0x5c9   :  { %v5459_v31 = vpack.c.bf16 %v5456_v29, %v5456_v29 }
 0x5e1   :  { %v5367_v3 = vpop.f32.mrb[16].mxu0 }
 0x5e2   :  { %v7484_v33 = vadd.f32 %v5367_v3, %v4768_v1  ;;  %v5369_v4 = vpop.f32.mrb[17].mxu0  ;;  %v7243_v1 = vld [vmem:[#allocation19] ss:$0 sm:$0xff] }
 0x5e3   :  { %v7485_v5 = vadd.f32 %v5369_v4, %v4772_v2  ;;  %v5371_v8 = vpop.f32.mrb[18].mxu0 }
 0x5e4   :  { %v5454_v9 = vmax.f32 %v7484_v33, 0.0  ;;  %v5372_v30 = vpop.f32.mrb[19].mxu0 }
 0x5e5   :  { %v5455_v14 = vmax.f32 %v7485_v5, 0.0  ;;  %v8667_v30 = vld [vmem:[#allocation25 + $0x30] sm:$0xff]  }
 0x5e6   :  { %v5457_v15 = vpack.c.bf16 %v5454_v9, %v5454_v9 }
 0x5e7   :  { %v5458_v23 = vpack.c.bf16 %v5455_v14, %v5455_v14  ;;  %v8668_v14 = vld [vmem:[#allocation25 + $0x38] sm:$0xff]  }
 0x5e9   :  { %5792 = vmatprep.mubr.bf16.mxu1 %v5458_v23  ;;  %v8669_v23 = vld [vmem:[#allocation28] sm:$0xff]  }
 0x5ea   :  { %5793 = vmatmul.mubr.bf16.vlgmr.msra.gmra.mrb[24].mxu1 %v5457_v15  ;;  %v8671_v15 = vld [vmem:[#allocation28 + $0x10] sm:$0xff]  }
 0x5eb   :  { %5802 = vmatpush1.bf16.msra.mxu1 %v8613_v41  ;;  %5833 = vmatprep.mubr.bf16.mxu1 %v9202_v40  ;;  %v5513_v40 = vrot.slane %v5508_v39, %v9591_v11  ;;  %v8655_v11 = vld [vmem:[#allocation20 + $0x10] sm:$0xff]   ;;  %v8676_v39 = vld [vmem:[#allocation28 + $0x38] sm:$0xff]  }
 0x5ec   :  { %5803 = vmatprep.subr.bf16.mxu1 %v8618_v16  ;;  %v8670_v41 = vld [vmem:[#allocation28 + $0x8] sm:$0xff]   ;;  %v8672_v16 = vld [vmem:[#allocation28 + $0x18] sm:$0xff]  }
 0x5ef   :  { %5804 = vmatpush1.bf16.msra.mxu1 %v8616_v26  ;;  %v8673_v26 = vld [vmem:[#allocation28 + $0x20] sm:$0xff]  }
 0x5f0   :  { %5805 = vmatprep.subr.bf16.mxu1 %v8621_v17  ;;  %v8674_v17 = vld [vmem:[#allocation28 + $0x28] sm:$0xff]  }
 0x5f3   :  { %5806 = vmatpush1.bf16.msra.mxu1 %v8619_v18  ;;  %v6027_v18 = vpop.permute.xlu0 %6026 }
 0x5f4   :  { %5807 = vmatprep.subr.bf16.mxu1 %v8624_v20  ;;  %v7260_v20 = vld [vmem:[#allocation22] ss:$0 sm:$0xff] }
 0x5f7   :  { %5808 = vmatpush1.bf16.msra.mxu1 %v8622_v61  ;;  %v7261_v61 = vld [vmem:[#allocation22 + $0x1] ss:$0 sm:$0xff] }
 0x5f8   :  { %5809 = vmatprep.subr.bf16.mxu1 %v8627_v21 }
 0x5fb   :  { %5810 = vmatpush1.bf16.msra.mxu1 %v8625_v22  ;;  %v6033_v22 = vmul.f32 %v7260_v20, %v6027_v18 }
 0x5fc   :  { %5811 = vmatprep.subr.bf16.mxu1 %v8630_v24 }
 0x5ff   :  { %5812 = vmatpush1.bf16.msra.mxu1 %v8628_v25 }
 0x600   :  { %5813 = vmatprep.subr.bf16.mxu1 %v8633_v27 }
 0x603   :  { %5814 = vmatpush1.bf16.msra.mxu1 %v8631_v0  ;;  %v7270_v0 = vld [vmem:[#allocation23] ss:$0 sm:$0xff] }
 0x604   :  { %5815 = vmatprep.subr.bf16.mxu1 %v8636_v35 }
 0x607   :  { %5816 = vmatpush1.bf16.msra.mxu1 %v8634_v28 }
 0x608   :  { %7420 = vmatprep.subr.bf16.mxu1 %v9203_v38 }
 0x60a   :  { %5834 = vmatmul.mubr.bf16.vlgmr.msra.gmra.mrb[24].mxu1 %v5459_v31 }
 0x60b   :  { %7436 = vmatprep.mubr.msk.bf16.mxu1 %vm9204_vm0, %v9203_v38  ;;  %7421 = vmatpush3.bf16.msra.mxu1 %v8661_v55 }
 0x60c   :  { %7422 = vmatprep.subr.bf16.mxu1 %v9203_v38 }
 0x60f   :  { %7423 = vmatpush3.bf16.msra.mxu1 %v8662_v56 }
 0x610   :  { %7424 = vmatprep.subr.bf16.mxu1 %v9203_v38 }
 0x613   :  { %7425 = vmatpush3.bf16.msra.mxu1 %v8663_v6  ;;  %v7289_v6 = vld [vmem:[#allocation32] ss:$0 sm:$0xff] }
 0x614   :  { %7426 = vmatprep.subr.bf16.mxu1 %v9203_v38 }
 0x617   :  { %7427 = vmatpush3.bf16.msra.mxu1 %v8664_v59 }
 0x618   :  { %7428 = vmatprep.subr.bf16.mxu1 %v9203_v38 }
 0x61b   :  { %7429 = vmatpush3.bf16.msra.mxu1 %v8665_v60 }
 0x61c   :  { %7430 = vmatprep.subr.bf16.mxu1 %v9203_v38 }
 0x61f   :  { %7431 = vmatpush3.bf16.msra.mxu1 %v8666_v62 }
 0x620   :  { %7432 = vmatprep.subr.bf16.mxu1 %v9203_v38 }
 0x623   :  { %7433 = vmatpush3.bf16.msra.mxu1 %v8667_v30 }
 0x624   :  { %7434 = vmatprep.subr.bf16.mxu1 %v9203_v38 }
 0x627   :  { %7435 = vmatpush3.bf16.msra.mxu1 %v8668_v14 }
 0x628   :  { %7460 = vmatprep.subr.bf16.mxu1 %v9203_v38 }
 0x644   :  { %v6037_v21 = vpop.permute.xlu0 %6036 }
 0x645   :  { %v6043_v24 = vmul.f32 %v7261_v61, %v6037_v21 }
 0x647   :  { %v6044_v25 = vadd.f32 %v6043_v24, %v6033_v22 }
 0x6dd   :  { %v5835_v42 = vpop.f32.mrb[24].mxu1 }
 0x6de   :  { %v7486_v43 = vadd.f32 %v5835_v42, %v5513_v40  ;;  %v5837_v44 = vpop.f32.mrb[25].mxu1  ;;  %v8677_v40 = vld [vmem:[#allocation31] sm:$0xff]   ;;  %v8679_v42 = vld [vmem:[#allocation31 + $0x10] sm:$0xff]  }
 0x6df   :  { %v7487_v45 = vadd.f32 %v5837_v44, %v5517_v54  ;;  %v5839_v46 = vpop.f32.mrb[26].mxu1  ;;  %v8678_v54 = vld [vmem:[#allocation31 + $0x8] sm:$0xff]   ;;  %v8681_v44 = vld [vmem:[#allocation31 + $0x20] sm:$0xff]  }
 0x6e0   :  { %v5842_v32 = vmax.f32 %v7486_v43, 0.0  ;;  %v5840_v47 = vpop.f32.mrb[27].mxu1  ;;  %v8680_v43 = vld [vmem:[#allocation31 + $0x18] sm:$0xff]  }
 0x6e1   :  { %v5843_v58 = vmax.f32 %v7487_v45, 0.0  ;;  %v8682_v45 = vld [vmem:[#allocation31 + $0x28] sm:$0xff]   ;;  %v7271_v46 = vld [vmem:[#allocation26] ss:$0 sm:$0xff] }
 0x6e2   :  { %v5844_v7 = vpack.c.bf16 %v5842_v32, %v5842_v32 }
 0x6e3   :  { %v5845_v48 = vpack.c.bf16 %v5843_v58, %v5843_v58 }
 0x6e5   :  { %6013 = vmatprep.mubr.bf16.mxu0 %v5845_v48 }
 0x6e6   :  { %6014 = vmatmul.mubr.bf16.vlgmr.msra.gmra.mrb[20].mxu0 %v5844_v7 }
 0x6e7   :  { %7401 = vmatpush3.bf16.msra.mxu0 %v8653_v49  ;;  %7416 = vmatprep.mubr.msk.bf16.mxu0 %vm9204_vm0, %v9203_v38 }
 0x6e8   :  { %7402 = vmatprep.subr.bf16.mxu0 %v9203_v38 }
 0x6eb   :  { %7403 = vmatpush3.bf16.msra.mxu0 %v8654_v12 }
 0x6ec   :  { %7404 = vmatprep.subr.bf16.mxu0 %v9203_v38 }
 0x6ef   :  { %7405 = vmatpush3.bf16.msra.mxu0 %v8655_v11  ;;  %v8683_v11 = vld [vmem:[#allocation31 + $0x30] sm:$0xff]  }
 0x6f0   :  { %7406 = vmatprep.subr.bf16.mxu0 %v9203_v38 }
 0x6f3   :  { %7407 = vmatpush3.bf16.msra.mxu0 %v8656_v13  ;;  %v8684_v13 = vld [vmem:[#allocation31 + $0x38] sm:$0xff]  }
 0x6f4   :  { %7408 = vmatprep.subr.bf16.mxu0 %v9203_v38 }
 0x6f7   :  { %7409 = vmatpush3.bf16.msra.mxu0 %v8657_v50  ;;  %v7280_v50 = vld [vmem:[#allocation29] ss:$0 sm:$0xff] }
 0x6f8   :  { %7410 = vmatprep.subr.bf16.mxu0 %v9203_v38 }
 0x6fb   :  { %7411 = vmatpush3.bf16.msra.mxu0 %v8658_v51 }
 0x6fc   :  { %7412 = vmatprep.subr.bf16.mxu0 %v9203_v38 }
 0x6ff   :  { %7413 = vmatpush3.bf16.msra.mxu0 %v8659_v52 }
 0x700   :  { %7414 = vmatprep.subr.bf16.mxu0 %v9203_v38 }
 0x703   :  { %7415 = vmatpush3.bf16.msra.mxu0 %v8660_v19 }
 0x704   :  { %7440 = vmatprep.subr.bf16.mxu0 %v9203_v38 }
 0x7b9   :  { %v7358_v63 = vpop.f32.mrb[20].mxu0 }
 0x7ba   :  { %v7359_v2 = vpop.f32.mrb[21].mxu0 }
 0x7bb   :  { %v7360_v3 = vadd.f32 %v7359_v2, %v7358_v63  ;;  %v7361_v33 = vpop.f32.mrb[22].mxu0 }
 0x7bc   :  { %v7362_v4 = vpop.f32.mrb[23].mxu0 }
 0x7bd   :  { %v6016_v5 = vadd.f32 %v7360_v3, %v7243_v1 }
 0x7bf   :  { %v6021_v8 = vmax.f32 %v6016_v5, 0.0 }
 0x7c1   :  { %v6045_v9 = vpack.c.bf16 %v6021_v8, %v6021_v8 }
 0x7c3   :  { %7417 = vmatmul.mubr.bf16.vlgmr.msra.gmra.mrb[24].mxu0 %v6045_v9 }
 0x7c4   :  { %7456 = vmatprep.mubr.msk.bf16.mxu0 %vm9204_vm0, %v9203_v38  ;;  %7441 = vmatpush3.bf16.msra.mxu0 %v8669_v23 }
 0x7c5   :  { %7442 = vmatprep.subr.bf16.mxu0 %v9203_v38 }
 0x7c8   :  { %7443 = vmatpush3.bf16.msra.mxu0 %v8670_v41 }
 0x7c9   :  { %7444 = vmatprep.subr.bf16.mxu0 %v9203_v38 }
 0x7cc   :  { %7445 = vmatpush3.bf16.msra.mxu0 %v8671_v15 }
 0x7cd   :  { %7446 = vmatprep.subr.bf16.mxu0 %v9203_v38 }
 0x7d0   :  { %7447 = vmatpush3.bf16.msra.mxu0 %v8672_v16 }
 0x7d1   :  { %7448 = vmatprep.subr.bf16.mxu0 %v9203_v38 }
 0x7d4   :  { %7449 = vmatpush3.bf16.msra.mxu0 %v8673_v26 }
 0x7d5   :  { %7450 = vmatprep.subr.bf16.mxu0 %v9203_v38 }
 0x7d8   :  { %7451 = vmatpush3.bf16.msra.mxu0 %v8674_v17 }
 0x7d9   :  { %7452 = vmatprep.subr.bf16.mxu0 %v9203_v38 }
 0x7dc   :  { %7453 = vmatpush3.bf16.msra.mxu0 %v8675_v10 }
 0x7dd   :  { %7454 = vmatprep.subr.bf16.mxu0 %v9203_v38 }
 0x7e0   :  { %7455 = vmatpush3.bf16.msra.mxu0 %v8676_v39 }
 0x896   :  { %v6144_v27 = vpop.f32.mrb[24].mxu0 }
 0x897   :  { %v6145_v35 = vadd.f32 %v6144_v27, %v6044_v25  ;;  %v7418_v28 = vpop.f32.mrb[25].mxu0 }
 0x898   :  { %v6147_v29 = vpop.f32.mrb[26].mxu0 }
 0x899   :  { %v6157_v31 = vadd.f32 %v7270_v0, %v6145_v35  ;;  %v7419_v34 = vpop.f32.mrb[27].mxu0 }
 0x89b   :  { %v6158_v36 = vmax.f32 %v6157_v31, 0.0 }
 0x89d   :  { %v6159_v37 = vpack.c.bf16 %v6158_v36, %v6158_v36 }
 0x89f   :  { %7437 = vmatmul.mubr.bf16.vlgmr.msra.gmra.mrb[28].mxu1 %v6159_v37 }
 0x8a0   :  { %7476 = vmatprep.mubr.msk.bf16.mxu1 %vm9204_vm0, %v9203_v38  ;;  %7461 = vmatpush3.bf16.msra.mxu1 %v8677_v40 }
 0x8a1   :  { %7462 = vmatprep.subr.bf16.mxu1 %v9203_v38 }
 0x8a4   :  { %7463 = vmatpush3.bf16.msra.mxu1 %v8678_v54 }
 0x8a5   :  { %7464 = vmatprep.subr.bf16.mxu1 %v9203_v38 }
 0x8a8   :  { %7465 = vmatpush3.bf16.msra.mxu1 %v8679_v42 }
 0x8a9   :  { %7466 = vmatprep.subr.bf16.mxu1 %v9203_v38 }
 0x8ac   :  { %7467 = vmatpush3.bf16.msra.mxu1 %v8680_v43 }
 0x8ad   :  { %7468 = vmatprep.subr.bf16.mxu1 %v9203_v38 }
 0x8b0   :  { %7469 = vmatpush3.bf16.msra.mxu1 %v8681_v44 }
 0x8b1   :  { %7470 = vmatprep.subr.bf16.mxu1 %v9203_v38 }
 0x8b4   :  { %7471 = vmatpush3.bf16.msra.mxu1 %v8682_v45 }
 0x8b5   :  { %7472 = vmatprep.subr.bf16.mxu1 %v9203_v38 }
 0x8b8   :  { %7473 = vmatpush3.bf16.msra.mxu1 %v8683_v11 }
 0x8b9   :  { %7474 = vmatprep.subr.bf16.mxu1 %v9203_v38 }
 0x8bc   :  { %7475 = vmatpush3.bf16.msra.mxu1 %v8684_v13 }
 0x972   :  { %v6265_v32 = vpop.f32.mrb[28].mxu1 }
 0x973   :  { %v6266_v47 = vadd.f32 %v7271_v46, %v6265_v32  ;;  %v7438_v58 = vpop.f32.mrb[29].mxu1 }
 0x974   :  { %v6268_v48 = vpop.f32.mrb[30].mxu1 }
 0x975   :  { %v6271_v49 = vmax.f32 %v6266_v47, 0.0  ;;  %v7439_v7 = vpop.f32.mrb[31].mxu1 }
 0x977   :  { %v6272_v12 = vpack.c.bf16 %v6271_v49, %v6271_v49 }
 0x979   :  { %7457 = vmatmul.mubr.bf16.vlgmr.msra.gmra.mrb[28].mxu0 %v6272_v12 }
 0xa4c   :  { %v6378_v51 = vpop.f32.mrb[28].mxu0 }
 0xa4d   :  { %v6379_v52 = vadd.f32 %v7280_v50, %v6378_v51  ;;  %v7458_v19 = vpop.f32.mrb[29].mxu0 }
 0xa4e   :  { %v6381_v53 = vpop.f32.mrb[30].mxu0 }
 0xa4f   :  { %v6384_v55 = vmax.f32 %v6379_v52, 0.0  ;;  %v7459_v56 = vpop.f32.mrb[31].mxu0 }
 0xa51   :  { %v6385_v57 = vpack.c.bf16 %v6384_v55, %v6384_v55 }
 0xa53   :  { %7477 = vmatmul.mubr.bf16.vlgmr.msra.gmra.mrb[32].mxu1 %v6385_v57 }
 0xb26   :  { %v6491_v59 = vpop.f32.mrb[32].mxu1 }
 0xb27   :  { %v6492_v60 = vadd.f32 %v7289_v6, %v6491_v59  ;;  %v7478_v62 = vpop.f32.mrb[33].mxu1 }
 0xb28   :  { %v6494_v63 = vpop.f32.mrb[34].mxu1 }
 0xb29   :  { %6497 = vst [vmem:[#allocation34] sm:$0xff] %v6492_v60  ;;  %v7479_v38 = vpop.f32.mrb[35].mxu1 }
 0xb2a   :  { %9137 = shalt.err (!%p9134_p10)
}
 0xb2b   :  { %s9773_s1 = sld [smem:[#allocation54_spill]] }
 0xb31   :  { %s9138_s16 = scalar_lea.hbm %s9773_s1, 128 }
 0xb32   :  { %p9139_p11 = scmp.ne.s32.totalorder %s9773_s1, %s9138_s16  ;;  %p9142_p12 = scmp.lt.u32.totalorder %s9138_s16, %s9773_s1 }
 0xb34   :  { %p9144_p13 = pnand %p9142_p12, %p9139_p11 }
 0xb36   :  { %9147 = shalt.err (!%p9144_p13)
}
 0xb37   :  { %6507 = dma.vmem_to_hbm [thread:$0]  %s6505_s15, 128, %s9773_s1, [#allocation4]  }
 0xb38   :  { %9170 = dma.done.wait [#allocation4], 128  }
 0xb39   :  { %9171 = vsyncadd [#allocation4], 4294967168 }
 0xb3a   :  { %6511 = vsyncpa [#allocation3], 1 }
 0xb3b   :  { %6512 = vsyncpa [#allocation6], 1 }
 0xb3c   :  { %6513 = vsyncpa [#allocation9], 1 }
 0xb3d   :  { %6514 = vsyncpa [#allocation12], 1 }
 0xb3e   :  { %6515 = vsyncpa [#allocation15], 1 }
 0xb3f   :  { %6516 = vsyncpa [#allocation18], 1 }
 0xb40   :  { %6517 = vsyncpa [#allocation21], 1 }
 0xb41   :  { %6518 = vsyncpa [#allocation24], 1 }
 0xb42   :  { %6519 = vsyncpa [#allocation27], 1 }
 0xb43   :  { %6520 = vsyncpa [#allocation30], 1 }
 0xb44   :  { %6521 = vsyncpa [#allocation33], 1 }
 0xb45   :  { %6522 = vsyncpa [#allocation4], 1 }

</bundles_post_ra>
